<compile_context>
chip_gen: v7x
topology: tpu7x:2x2x1
jax: 0.10.0
libtpu: 0.0.40
codegen_flags: <defaults>
</compile_context>

<pallas_src>
import functools

import jax
import jax.numpy as jnp
from jax.experimental import pallas as pl
from jax.experimental.pallas import tpu as pltpu

LANE = 128


def _round_up(x, m):
    return ((x + m - 1) // m) * m


def _vgg_block_kernel(H, W, Wp, cins_pad, cout_pad, num_convs, *refs):
    """Fused (conv3x3 + bias + ReLU) x num_convs -> maxpool 2x2, one batch element.

    refs layout:
      x_ref        (1, H*Wp, Cin)             width-padded, row-flattened input
      w_refs[l]    (9*cins_pad[l], cout_pad)  bf16, zero-padded taps/channels
      b_refs[l]    (1, cout_pad)              f32
      o_ref        (1, (H//2)*Wp, cout_pad)   f32 (host decimates columns)
      act0, act1   (R, Cscr) f32              VMEM ping-pong padded slabs
    """
    x_ref = refs[0]
    w_refs = refs[1:1 + num_convs]
    b_refs = refs[1 + num_convs:1 + 2 * num_convs]
    o_ref = refs[1 + 2 * num_convs]
    act = (refs[2 + 2 * num_convs], refs[3 + 2 * num_convs])

    M = H * Wp                      # rows of one layer's (flattened) output
    cin0 = x_ref.shape[-1]

    # Zero both slabs every step: establishes the zero halo (top/bottom rows,
    # side columns) and clears stale lane-padding channels from the previous
    # grid iteration.  Cheap (pure vst) relative to the MXU work.
    act[0][...] = jnp.zeros_like(act[0])
    act[1][...] = jnp.zeros_like(act[1])

    # Drop the input into padded rows 1..H of slab 0 (single contiguous store).
    act[0][pl.ds(Wp, M), 0:cin0] = x_ref[0]

    # Column-validity mask over the flattened (H, Wp) output grid: w < W valid.
    # Full (M, cout_pad) shape -> plain elementwise select, no odd broadcasts.
    col_valid = None
    if num_convs > 1:
        wcol = jax.lax.broadcasted_iota(jnp.int32, (H, Wp, cout_pad), 1)
        col_valid = wcol.reshape(M, cout_pad) < W

    y = None
    for l in range(num_convs):
        src = act[l % 2]
        cin_p = cins_pad[l]
        # im2col: the 9 taps are contiguous row-slices of the flattened padded
        # slab; concatenate along lanes -> one K = 9*cin_p MXU contraction.
        taps = []
        for dy in range(3):
            for dx in range(3):
                taps.append(
                    src[pl.ds(dy * Wp + dx, M), 0:cin_p].astype(jnp.bfloat16))
        xcol = jnp.concatenate(taps, axis=-1)                # (M, 9*cin_p) bf16
        acc = jnp.dot(xcol, w_refs[l][...], preferred_element_type=jnp.float32)
        y = jnp.maximum(acc + b_refs[l][...], 0.0)           # (M, cout_pad) f32

        if l + 1 < num_convs:
            # Write into the interior of the other slab. Garbage columns
            # (w >= W) land exactly on halo positions -> mask them to zero.
            dst = act[(l + 1) % 2]
            dst[pl.ds(Wp + 1, M), 0:cout_pad] = jnp.where(col_valid, y, 0.0)

    # Fused 2x2 stride-2 max pool on the last conv output (ReLU already done).
    # Only tile-aligned relabel reshapes (Wp % 8 == 0) and an offset-by-1 slab
    # read are used; the stride-2 column pick happens on the host.
    Mv = (H // 2) * Wp
    y4 = y.reshape(H // 2, 2, Wp, cout_pad)              # tile-aligned relabel
    vf = jnp.maximum(y4[:, 0], y4[:, 1]).reshape(Mv, cout_pad)   # vertical max
    pslab = act[num_convs % 2]                           # free scratch now
    pslab[pl.ds(0, Mv), 0:cout_pad] = vf
    right = pslab[pl.ds(1, Mv), 0:cout_pad]              # neighbour column w+1
    z = jnp.maximum(vf, right)                           # max over 2x2 window
    o_ref[0] = z.astype(o_ref.dtype)


def init_block_params(key, in_channels, out_channels, num_layers):
    """Deterministic synthetic init; conv weights stored HWIO (3,3,Cin,Cout)."""
    params = []
    cin = in_channels
    for _ in range(1 + num_layers):
        key, kw, kb = jax.random.split(key, 3)
        fan_in = cin * 3 * 3
        bound = 1.0 / jnp.sqrt(fan_in)
        w = jax.random.uniform(kw, (3, 3, cin, out_channels), jnp.float32,
                               minval=-bound, maxval=bound)
        b = jax.random.uniform(kb, (out_channels,), jnp.float32,
                               minval=-bound, maxval=bound)
        params.append((w, b))
        cin = out_channels
    return params


def _prepare_params(params):
    """Zero-pad channels to the 128-lane width, flatten taps, cast weights to bf16."""
    prepared = []
    for (w, b) in params:
        cin, cout = int(w.shape[2]), int(w.shape[3])
        cin_p, cout_p = _round_up(cin, LANE), _round_up(cout, LANE)
        wpad = jnp.zeros((3, 3, cin_p, cout_p), jnp.float32)
        wpad = wpad.at[:, :, :cin, :cout].set(w)
        wpad = wpad.reshape(9 * cin_p, cout_p).astype(jnp.bfloat16)
        bpad = jnp.zeros((1, cout_p), jnp.float32).at[0, :cout].set(b)
        prepared.append((wpad, bpad, cin_p, cout_p))
    return prepared


def block_forward(x_nchw, params):
    """Matches VGG Block.forward: (conv3x3+ReLU) x len(params), then 2x2 max pool."""
    N, Cin, H, W = x_nchw.shape
    assert H % 2 == 0 and W % 2 == 0
    prepared = _prepare_params(params)
    num_convs = len(prepared)
    cins_pad = tuple(p[2] for p in prepared)
    cout_pad = prepared[-1][3]
    cout = int(params[-1][0].shape[-1])

    # Flattened, width-padded activation slab geometry (8-aligned row stride).
    Wp = _round_up(W + 2, 8)                 # padded row stride
    M = H * Wp                               # rows of one layer's output
    Mv = (H // 2) * Wp                       # rows after vertical pooling
    R = _round_up((H + 2) * Wp + 2, 8)       # scratch rows (covers dy=2,dx=2 tap)
    Cscr = max(max(cins_pad), cout_pad)

    # NCHW -> NHWC, pad width only (1 left, Wp-W-1 right), flatten (H, Wp) rows.
    # This is the only host-side pad (first-layer input); all per-layer
    # padding/halos live in VMEM inside the kernel.
    x = jnp.transpose(x_nchw, (0, 2, 3, 1))
    x = jnp.pad(x, ((0, 0), (0, 0), (1, Wp - W - 1), (0, 0)))
    x = x.reshape(N, M, Cin)

    kernel = functools.partial(_vgg_block_kernel, H, W, Wp, cins_pad,
                               cout_pad, num_convs)

    in_specs = [pl.BlockSpec((1, M, Cin), lambda n: (n, 0, 0))]
    args = [x]
    for (wl, _, _, _) in prepared:
        in_specs.append(pl.BlockSpec(wl.shape, lambda n: (0, 0)))
        args.append(wl)
    for (_, bl, _, _) in prepared:
        in_specs.append(pl.BlockSpec(bl.shape, lambda n: (0, 0)))
        args.append(bl)

    # TODO(synk): for large images / late VGG blocks the whole-image slab exceeds
    # VMEM (esp. v7x's 64 MiB) — tile H with a halo and grid over (N, H-tiles).
    out = pl.pallas_call(
        kernel,
        out_shape=jax.ShapeDtypeStruct((N, Mv, cout_pad), jnp.float32),
        grid=(N,),
        in_specs=in_specs,
        out_specs=pl.BlockSpec((1, Mv, cout_pad), lambda n: (n, 0, 0)),
        scratch_shapes=[pltpu.VMEM((R, Cscr), jnp.float32),
                        pltpu.VMEM((R, Cscr), jnp.float32)],
        compiler_params=pltpu.CompilerParams(
            dimension_semantics=("parallel",),
            vmem_limit_bytes=32 * 1024 * 1024),
    )(*args)

    # (N, Mv, C) -> (N, H/2, Wp, C); keep even columns (the 2x2 window starts)
    # and real channels only, then NHWC -> NCHW.
    out = out.reshape(N, H // 2, Wp, cout_pad)[:, :, 0:W:2, :cout]
    return jnp.transpose(out, (0, 3, 1, 2))


def _block_reference(x_nchw, params):
    """Pure-JAX f32 reference matching the PyTorch module (for a sanity check)."""
    x = x_nchw
    for (w_hwio, b) in params:
        w_oihw = jnp.transpose(w_hwio, (3, 2, 0, 1))
        x = jax.lax.conv_general_dilated(
            x, w_oihw, window_strides=(1, 1), padding=((1, 1), (1, 1)),
            dimension_numbers=("NCHW", "OIHW", "NCHW"))
        x = jnp.maximum(x + b[None, :, None, None], 0.0)
    return jax.lax.reduce_window(x, -jnp.inf, jax.lax.max,
                                 (1, 1, 2, 2), (1, 1, 2, 2), "VALID")


if __name__ == "__main__":
    key = jax.random.PRNGKey(0)
    k_in, k_p = jax.random.split(key)

    batch, in_channels, out_channels, num_layers = 2, 4, 8, 1
    H = W = 16

    x = jax.random.normal(k_in, (batch, in_channels, H, W), jnp.float32)  # NCHW
    params = init_block_params(k_p, in_channels, out_channels, num_layers)

    out = jax.jit(block_forward)(x, params)
    out = jax.block_until_ready(out)

    expected_shape = (batch, out_channels, H // 2, W // 2)
    assert out.shape == expected_shape, (out.shape, expected_shape)

    # Loose tolerance: kernel uses bf16 MXU operands with f32 accumulation.
    ref = _block_reference(x, params)
    max_err = float(jnp.max(jnp.abs(out - ref)))
    assert jnp.allclose(out, ref, atol=1e-1, rtol=1e-1), max_err

    print("KERNEL_OK")
</pallas_src>

<mosaic_0001>
module attributes {stable_mosaic.version = 11 : i64} {
  func.func @_vgg_block_kernel(%arg0: i32, %arg1: memref<1x384x4xf32, #tpu.memory_space<vmem>>, %arg2: memref<1152x128xbf16, #tpu.memory_space<vmem>>, %arg3: memref<1152x128xbf16, #tpu.memory_space<vmem>>, %arg4: memref<1x128xf32, #tpu.memory_space<vmem>>, %arg5: memref<1x128xf32, #tpu.memory_space<vmem>>, %arg6: memref<1x192x128xf32, #tpu.memory_space<vmem>>, %arg7: memref<440x128xf32, #tpu.memory_space<vmem>>, %arg8: memref<440x128xf32, #tpu.memory_space<vmem>>) attributes {dimension_semantics = [#tpu.dimension_semantics<parallel>], iteration_bounds = array<i64: 2>, scalar_prefetch = 0 : i64, scratch_operands = 2 : i64, tpu.core_type = #tpu.core_type<tc>, window_params = [{transform_indices = @transform_0, window_bounds = array<i64: 1, 384, 4>}, {pipeline_mode = #tpu.pipeline_mode<synchronous>, transform_indices = @transform_1, window_bounds = array<i64: 1152, 128>}, {pipeline_mode = #tpu.pipeline_mode<synchronous>, transform_indices = @transform_2, window_bounds = array<i64: 1152, 128>}, {pipeline_mode = #tpu.pipeline_mode<synchronous>, transform_indices = @transform_3, window_bounds = array<i64: 1, 128>}, {pipeline_mode = #tpu.pipeline_mode<synchronous>, transform_indices = @transform_4, window_bounds = array<i64: 1, 128>}, {transform_indices = @transform_5, window_bounds = array<i64: 1, 192, 128>}]} {
    %cst = arith.constant 0.000000e+00 : f32
    %0 = vector.broadcast %cst : f32 to vector<440x128xf32>
    %c0 = arith.constant 0 : index
    %c0_0 = arith.constant 0 : index
    %1 = vector.load %arg7[%c0, %c0_0] : memref<440x128xf32, #tpu.memory_space<vmem>>, vector<440x128xf32>
    tpu.vector_store %arg7[%c0, %c0_0], %0 {strides = array<i32>} : memref<440x128xf32, #tpu.memory_space<vmem>>, vector<440x128xf32>,
    %cst_1 = arith.constant 0.000000e+00 : f32
    %2 = vector.broadcast %cst_1 : f32 to vector<440x128xf32>
    %c0_2 = arith.constant 0 : index
    %c0_3 = arith.constant 0 : index
    %3 = vector.load %arg8[%c0_2, %c0_3] : memref<440x128xf32, #tpu.memory_space<vmem>>, vector<440x128xf32>
    tpu.vector_store %arg8[%c0_2, %c0_3], %2 {strides = array<i32>} : memref<440x128xf32, #tpu.memory_space<vmem>>, vector<440x128xf32>,
    %c0_4 = arith.constant 0 : index
    %c0_5 = arith.constant 0 : index
    %c0_6 = arith.constant 0 : index
    %4 = vector.load %arg1[%c0_4, %c0_5, %c0_6] : memref<1x384x4xf32, #tpu.memory_space<vmem>>, vector<1x384x4xf32>
    %5 = vector.shape_cast %4 : vector<1x384x4xf32> to vector<384x4xf32>
    %c24 = arith.constant 24 : index
    %c0_7 = arith.constant 0 : index
    %6 = vector.load %arg7[%c24, %c0_7] : memref<440x128xf32, #tpu.memory_space<vmem>>, vector<384x4xf32>
    tpu.vector_store %arg7[%c24, %c0_7], %5 {strides = array<i32>} : memref<440x128xf32, #tpu.memory_space<vmem>>, vector<384x4xf32>,
    %7 = tpu.iota {dimensions = array<i32: 1>} : vector<16x24x128xi32>
    %8 = vector.shape_cast %7 : vector<16x24x128xi32> to vector<384x128xi32>
    %c16_i32 = arith.constant 16 : i32
    %9 = vector.broadcast %c16_i32 : i32 to vector<384x128xi32>
    %10 = arith.cmpi slt, %8, %9 : vector<384x128xi32>
    %c0_8 = arith.constant 0 : index
    %c0_9 = arith.constant 0 : index
    %11 = vector.load %arg7[%c0_8, %c0_9] : memref<440x128xf32, #tpu.memory_space<vmem>>, vector<384x128xf32>
    %12 = arith.truncf %11 : vector<384x128xf32> to vector<384x128xbf16>
    %c1 = arith.constant 1 : index
    %c0_10 = arith.constant 0 : index
    %13 = vector.load %arg7[%c1, %c0_10] : memref<440x128xf32, #tpu.memory_space<vmem>>, vector<384x128xf32>
    %14 = arith.truncf %13 : vector<384x128xf32> to vector<384x128xbf16>
    %c2 = arith.constant 2 : index
    %c0_11 = arith.constant 0 : index
    %15 = vector.load %arg7[%c2, %c0_11] : memref<440x128xf32, #tpu.memory_space<vmem>>, vector<384x128xf32>
    %16 = arith.truncf %15 : vector<384x128xf32> to vector<384x128xbf16>
    %c24_12 = arith.constant 24 : index
    %c0_13 = arith.constant 0 : index
    %17 = vector.load %arg7[%c24_12, %c0_13] : memref<440x128xf32, #tpu.memory_space<vmem>>, vector<384x128xf32>
    %18 = arith.truncf %17 : vector<384x128xf32> to vector<384x128xbf16>
    %c25 = arith.constant 25 : index
    %c0_14 = arith.constant 0 : index
    %19 = vector.load %arg7[%c25, %c0_14] : memref<440x128xf32, #tpu.memory_space<vmem>>, vector<384x128xf32>
    %20 = arith.truncf %19 : vector<384x128xf32> to vector<384x128xbf16>
    %c26 = arith.constant 26 : index
    %c0_15 = arith.constant 0 : index
    %21 = vector.load %arg7[%c26, %c0_15] : memref<440x128xf32, #tpu.memory_space<vmem>>, vector<384x128xf32>
    %22 = arith.truncf %21 : vector<384x128xf32> to vector<384x128xbf16>
    %c48 = arith.constant 48 : index
    %c0_16 = arith.constant 0 : index
    %23 = vector.load %arg7[%c48, %c0_16] : memref<440x128xf32, #tpu.memory_space<vmem>>, vector<384x128xf32>
    %24 = arith.truncf %23 : vector<384x128xf32> to vector<384x128xbf16>
    %c49 = arith.constant 49 : index
    %c0_17 = arith.constant 0 : index
    %25 = vector.load %arg7[%c49, %c0_17] : memref<440x128xf32, #tpu.memory_space<vmem>>, vector<384x128xf32>
    %26 = arith.truncf %25 : vector<384x128xf32> to vector<384x128xbf16>
    %c50 = arith.constant 50 : index
    %c0_18 = arith.constant 0 : index
    %27 = vector.load %arg7[%c50, %c0_18] : memref<440x128xf32, #tpu.memory_space<vmem>>, vector<384x128xf32>
    %28 = arith.truncf %27 : vector<384x128xf32> to vector<384x128xbf16>
    %29 = tpu.concatenate %12, %14, %16, %18, %20, %22, %24, %26, %28 in 1 : vector<384x128xbf16>, vector<384x128xbf16>, vector<384x128xbf16>, vector<384x128xbf16>, vector<384x128xbf16>, vector<384x128xbf16>, vector<384x128xbf16>, vector<384x128xbf16>, vector<384x128xbf16> -> vector<384x1152xbf16>
    %c0_19 = arith.constant 0 : index
    %c0_20 = arith.constant 0 : index
    %30 = vector.load %arg2[%c0_19, %c0_20] : memref<1152x128xbf16, #tpu.memory_space<vmem>>, vector<1152x128xbf16>
    %cst_21 = arith.constant dense<0.000000e+00> : vector<384x128xf32>
    %31 = tpu.matmul %29, %30, %cst_21 {dimension_numbers = #tpu.dot_dimension_numbers<[1], [0], [0], [1], [0, 0, 1, 1], [], []>} : vector<384x1152xbf16>, vector<1152x128xbf16>, vector<384x128xf32> -> vector<384x128xf32>
    %c0_22 = arith.constant 0 : index
    %c0_23 = arith.constant 0 : index
    %32 = vector.load %arg4[%c0_22, %c0_23] : memref<1x128xf32, #tpu.memory_space<vmem>>, vector<1x128xf32>
    %33 = vector.broadcast %32 : vector<1x128xf32> to vector<384x128xf32>
    %34 = arith.addf %31, %33 : vector<384x128xf32>
    %cst_24 = arith.constant 0.000000e+00 : f32
    %35 = vector.broadcast %cst_24 : f32 to vector<384x128xf32>
    %36 = arith.maximumf %34, %35 : vector<384x128xf32>
    %cst_25 = arith.constant 0.000000e+00 : f32
    %37 = vector.broadcast %cst_25 : f32 to vector<384x128xf32>
    %38 = arith.select %10, %36, %37 : vector<384x128xi1>, vector<384x128xf32>
    %c25_26 = arith.constant 25 : index
    %c0_27 = arith.constant 0 : index
    %39 = vector.load %arg8[%c25_26, %c0_27] : memref<440x128xf32, #tpu.memory_space<vmem>>, vector<384x128xf32>
    tpu.vector_store %arg8[%c25_26, %c0_27], %38 {strides = array<i32>} : memref<440x128xf32, #tpu.memory_space<vmem>>, vector<384x128xf32>,
    %c0_28 = arith.constant 0 : index
    %c0_29 = arith.constant 0 : index
    %40 = vector.load %arg8[%c0_28, %c0_29] : memref<440x128xf32, #tpu.memory_space<vmem>>, vector<384x128xf32>
    %41 = arith.truncf %40 : vector<384x128xf32> to vector<384x128xbf16>
    %c1_30 = arith.constant 1 : index
    %c0_31 = arith.constant 0 : index
    %42 = vector.load %arg8[%c1_30, %c0_31] : memref<440x128xf32, #tpu.memory_space<vmem>>, vector<384x128xf32>
    %43 = arith.truncf %42 : vector<384x128xf32> to vector<384x128xbf16>
    %c2_32 = arith.constant 2 : index
    %c0_33 = arith.constant 0 : index
    %44 = vector.load %arg8[%c2_32, %c0_33] : memref<440x128xf32, #tpu.memory_space<vmem>>, vector<384x128xf32>
    %45 = arith.truncf %44 : vector<384x128xf32> to vector<384x128xbf16>
    %c24_34 = arith.constant 24 : index
    %c0_35 = arith.constant 0 : index
    %46 = vector.load %arg8[%c24_34, %c0_35] : memref<440x128xf32, #tpu.memory_space<vmem>>, vector<384x128xf32>
    %47 = arith.truncf %46 : vector<384x128xf32> to vector<384x128xbf16>
    %c25_36 = arith.constant 25 : index
    %c0_37 = arith.constant 0 : index
    %48 = vector.load %arg8[%c25_36, %c0_37] : memref<440x128xf32, #tpu.memory_space<vmem>>, vector<384x128xf32>
    %49 = arith.truncf %48 : vector<384x128xf32> to vector<384x128xbf16>
    %c26_38 = arith.constant 26 : index
    %c0_39 = arith.constant 0 : index
    %50 = vector.load %arg8[%c26_38, %c0_39] : memref<440x128xf32, #tpu.memory_space<vmem>>, vector<384x128xf32>
    %51 = arith.truncf %50 : vector<384x128xf32> to vector<384x128xbf16>
    %c48_40 = arith.constant 48 : index
    %c0_41 = arith.constant 0 : index
    %52 = vector.load %arg8[%c48_40, %c0_41] : memref<440x128xf32, #tpu.memory_space<vmem>>, vector<384x128xf32>
    %53 = arith.truncf %52 : vector<384x128xf32> to vector<384x128xbf16>
    %c49_42 = arith.constant 49 : index
    %c0_43 = arith.constant 0 : index
    %54 = vector.load %arg8[%c49_42, %c0_43] : memref<440x128xf32, #tpu.memory_space<vmem>>, vector<384x128xf32>
    %55 = arith.truncf %54 : vector<384x128xf32> to vector<384x128xbf16>
    %c50_44 = arith.constant 50 : index
    %c0_45 = arith.constant 0 : index
    %56 = vector.load %arg8[%c50_44, %c0_45] : memref<440x128xf32, #tpu.memory_space<vmem>>, vector<384x128xf32>
    %57 = arith.truncf %56 : vector<384x128xf32> to vector<384x128xbf16>
    %58 = tpu.concatenate %41, %43, %45, %47, %49, %51, %53, %55, %57 in 1 : vector<384x128xbf16>, vector<384x128xbf16>, vector<384x128xbf16>, vector<384x128xbf16>, vector<384x128xbf16>, vector<384x128xbf16>, vector<384x128xbf16>, vector<384x128xbf16>, vector<384x128xbf16> -> vector<384x1152xbf16>
    %c0_46 = arith.constant 0 : index
    %c0_47 = arith.constant 0 : index
    %59 = vector.load %arg3[%c0_46, %c0_47] : memref<1152x128xbf16, #tpu.memory_space<vmem>>, vector<1152x128xbf16>
    %cst_48 = arith.constant dense<0.000000e+00> : vector<384x128xf32>
    %60 = tpu.matmul %58, %59, %cst_48 {dimension_numbers = #tpu.dot_dimension_numbers<[1], [0], [0], [1], [0, 0, 1, 1], [], []>} : vector<384x1152xbf16>, vector<1152x128xbf16>, vector<384x128xf32> -> vector<384x128xf32>
    %c0_49 = arith.constant 0 : index
    %c0_50 = arith.constant 0 : index
    %61 = vector.load %arg5[%c0_49, %c0_50] : memref<1x128xf32, #tpu.memory_space<vmem>>, vector<1x128xf32>
    %62 = vector.broadcast %61 : vector<1x128xf32> to vector<384x128xf32>
    %63 = arith.addf %60, %62 : vector<384x128xf32>
    %cst_51 = arith.constant 0.000000e+00 : f32
    %64 = vector.broadcast %cst_51 : f32 to vector<384x128xf32>
    %65 = arith.maximumf %63, %64 : vector<384x128xf32>
    %66 = vector.shape_cast %65 : vector<384x128xf32> to vector<8x2x24x128xf32>
    %67 = vector.extract_strided_slice %66 {offsets = [0, 0, 0, 0], sizes = [8, 1, 24, 128], strides = [1, 1, 1, 1]} : vector<8x2x24x128xf32> to vector<8x1x24x128xf32>
    %68 = vector.shape_cast %67 : vector<8x1x24x128xf32> to vector<8x24x128xf32>
    %69 = vector.extract_strided_slice %66 {offsets = [0, 1, 0, 0], sizes = [8, 1, 24, 128], strides = [1, 1, 1, 1]} : vector<8x2x24x128xf32> to vector<8x1x24x128xf32>
    %70 = vector.shape_cast %69 : vector<8x1x24x128xf32> to vector<8x24x128xf32>
    %71 = arith.maximumf %68, %70 : vector<8x24x128xf32>
    %72 = vector.shape_cast %71 : vector<8x24x128xf32> to vector<192x128xf32>
    %c0_52 = arith.constant 0 : index
    %c0_53 = arith.constant 0 : index
    %73 = vector.load %arg7[%c0_52, %c0_53] : memref<440x128xf32, #tpu.memory_space<vmem>>, vector<192x128xf32>
    tpu.vector_store %arg7[%c0_52, %c0_53], %72 {strides = array<i32>} : memref<440x128xf32, #tpu.memory_space<vmem>>, vector<192x128xf32>,
    %c1_54 = arith.constant 1 : index
    %c0_55 = arith.constant 0 : index
    %74 = vector.load %arg7[%c1_54, %c0_55] : memref<440x128xf32, #tpu.memory_space<vmem>>, vector<192x128xf32>
    %75 = arith.maximumf %72, %74 : vector<192x128xf32>
    %c0_56 = arith.constant 0 : index
    %c0_57 = arith.constant 0 : index
    %c0_58 = arith.constant 0 : index
    %76 = vector.load %arg6[%c0_56, %c0_57, %c0_58] : memref<1x192x128xf32, #tpu.memory_space<vmem>>, vector<1x192x128xf32>
    %77 = vector.shape_cast %76 : vector<1x192x128xf32> to vector<192x128xf32>
    %78 = vector.shape_cast %75 : vector<192x128xf32> to vector<1x192x128xf32>
    tpu.vector_store %arg6[%c0_56, %c0_57, %c0_58], %78 {strides = array<i32>} : memref<1x192x128xf32, #tpu.memory_space<vmem>>, vector<1x192x128xf32>,
    return
  }
  func.func @transform_0(%arg0: i32) -> (i32, i32, i32) {
    %c0_i32 = arith.constant 0 : i32
    %c0_i32_0 = arith.constant 0 : i32
    %c0_i32_1 = arith.constant 0 : i32
    return %arg0, %c0_i32, %c0_i32_0 : i32, i32, i32
  }
  func.func @transform_1(%arg0: i32) -> (i32, i32) {
    %c0_i32 = arith.constant 0 : i32
    %c0_i32_0 = arith.constant 0 : i32
    %c0_i32_1 = arith.constant 0 : i32
    return %c0_i32, %c0_i32_0 : i32, i32
  }
  func.func @transform_2(%arg0: i32) -> (i32, i32) {
    %c0_i32 = arith.constant 0 : i32
    %c0_i32_0 = arith.constant 0 : i32
    %c0_i32_1 = arith.constant 0 : i32
    return %c0_i32, %c0_i32_0 : i32, i32
  }
  func.func @transform_3(%arg0: i32) -> (i32, i32) {
    %c0_i32 = arith.constant 0 : i32
    %c0_i32_0 = arith.constant 0 : i32
    %c0_i32_1 = arith.constant 0 : i32
    return %c0_i32, %c0_i32_0 : i32, i32
  }
  func.func @transform_4(%arg0: i32) -> (i32, i32) {
    %c0_i32 = arith.constant 0 : i32
    %c0_i32_0 = arith.constant 0 : i32
    %c0_i32_1 = arith.constant 0 : i32
    return %c0_i32, %c0_i32_0 : i32, i32
  }
  func.func @transform_5(%arg0: i32) -> (i32, i32, i32) {
    %c0_i32 = arith.constant 0 : i32
    %c0_i32_0 = arith.constant 0 : i32
    %c0_i32_1 = arith.constant 0 : i32
    return %arg0, %c0_i32, %c0_i32_0 : i32, i32, i32
  }
}

</mosaic_0001>

<bundles_post_ra>
// kernel: block_forward.1
= control target key start
LH: loop header
LB: loop body
LE: loop exit
PB: predicated region body
PF: predicated region fallthrough
CT: control target
= control target key end

     0   :  { %s5954_s18 = smov 0   ;;  %s8977_s0 = inlined_call_operand.vmem [shape: f32[2,384,4], index: 0, kind: input, shape index: {}]   ;;  %s8978_s1 = inlined_call_operand.vmem [shape: bf16[1152,128], index: 1, kind: input, shape index: {}]   ;;  %s8979_s2 = inlined_call_operand.vmem [shape: bf16[1152,128], index: 2, kind: input, shape index: {}]   ;;  %s8980_s3 = inlined_call_operand.vmem [shape: f32[1,128], index: 3, kind: input, shape index: {}]   ;;  %s8981_s4 = inlined_call_operand.vmem [shape: f32[1,128], index: 4, kind: input, shape index: {}]   ;;  %s8982_s5 = inlined_call_operand.vmem [shape: f32[2,192,128], index: 5, kind: output, shape index: {}]  }
   0x1 LB: > { %s4853_s19 = sadd.s32 4294967295, %s5919_s18   ;;  %p4857_p0 = scmp.ge.s32.totalorder %s5919_s18, 1  ;;  %s5919_s18 = sphi %s5954_s18, %s15_s18  }
   0x2   : > { %p187_p1 = scmp.lt.s32.totalorder %s5919_s18, 3 }
   0x4   : > { %p188_p2 = pnand %p4857_p0, %p187_p1 }
   0x6   : > { %191 = sbr.rel (%p188_p2) target bundleno = 1886 (0x75e), region = 40 }
   0xd   : > { %v5724_v0 = vld [vmem:[%s8978_s1] sm:$0xff]   ;;  %v8983_v1 = vmov 0   ;;  %v5969_v2 = vld [vmem:[%s8978_s1 + $0x8] sm:$0xff]   ;;  %v5922_v3 = vmov 0.0   ;;  %p6083_p3 = scmp.lt.s32.totalorder %s4853_s19, 1  ;;  %v5726_v4 = vld [vmem:[%s8978_s1 + $0x10] sm:$0xff]  }
   0xe   : > { %1338 = vmatprep.subr.bf16.mxu0 %v8983_v1  ;;  %226 = vst [vmem:[#allocation2] sm:$0xff] %v5922_v3  ;;  %227 = vst [vmem:[#allocation2 + $0x8] sm:$0xff] %v5922_v3  ;;  %v5727_v5 = vld [vmem:[%s8978_s1 + $0x18] sm:$0xff]   ;;  %v5728_v6 = vld [vmem:[%s8978_s1 + $0x20] sm:$0xff]   ;;  %vm384_vm0 = vcmask 31744   ;;  %v5923_v61 = vmov 0.0|0.0  }
   0xf   : > { %1339 = vmatpush1.bf16.msra.mxu0 %v5724_v0  ;;  %228 = vst [vmem:[#allocation2 + $0x10] sm:$0xff] %v5922_v3  ;;  %229 = vst [vmem:[#allocation2 + $0x18] sm:$0xff] %v5922_v3  ;;  %s9687_s19 = smov (!%p6083_p3, %s4853_s19), 1  ;;  %v5729_v9 = vld [vmem:[%s8978_s1 + $0x28] sm:$0xff]   ;;  %v5730_v17 = vld [vmem:[%s8978_s1 + $0x30] sm:$0xff]  }
  0x10   : > { %230 = vst [vmem:[#allocation2 + $0x20] sm:$0xff] %v5922_v3  ;;  %231 = vst [vmem:[#allocation2 + $0x28] sm:$0xff] %v5922_v3  ;;  %1340 = vmatprep.subr.bf16.mxu0 %v8983_v1  ;;  %s5712_s29 = smul.u32 384, %s9687_s19  ;;  %v5731_v24 = vld [vmem:[%s8978_s1 + $0x38] sm:$0xff]   ;;  %v5732_v25 = vld [vmem:[%s8978_s1 + $0x40] sm:$0xff]  }
  0x11   : > { %232 = vst [vmem:[#allocation2 + $0x30] sm:$0xff] %v5922_v3  ;;  %233 = vst [vmem:[#allocation2 + $0x38] sm:$0xff] %v5922_v3  ;;  %v5733_v28 = vld [vmem:[%s8978_s1 + $0x48] sm:$0xff]   ;;  %v5734_v33 = vld [vmem:[%s8978_s1 + $0x50] sm:$0xff]   ;;  %s5713_s14 = smul.u32 192, %s9687_s19 }
  0x12   : > { %234 = vst [vmem:[#allocation2 + $0x40] sm:$0xff] %v5922_v3  ;;  %235 = vst [vmem:[#allocation2 + $0x48] sm:$0xff] %v5922_v3  ;;  %s6126_s9 = scalar_lea.vmem %s8977_s0, %s5712_s29  ;;  %v5735_v40 = vld [vmem:[%s8978_s1 + $0x58] sm:$0xff]   ;;  %v5736_v41 = vld [vmem:[%s8978_s1 + $0x60] sm:$0xff]  }
  0x13   : > { %236 = vst [vmem:[#allocation2 + $0x50] sm:$0xff] %v5922_v3  ;;  %237 = vst [vmem:[#allocation2 + $0x58] sm:$0xff] %v5922_v3  ;;  %1341 = vmatpush1.bf16.msra.mxu0 %v5969_v2  ;;  %v336_v11 = vld [vmem:[%s6126_s9] sm:$0xff]  ;;  %v337_v12 = vld [vmem:[%s6126_s9 + $0x8] sm:$0xff]  ;;  %s8872_s17 = scalar_lea.vmem %s8982_s5, %s5713_s14 }
  0x14   : > { %238 = vst [vmem:[#allocation2 + $0x60] sm:$0xff] %v5922_v3  ;;  %239 = vst [vmem:[#allocation2 + $0x68] sm:$0xff] %v5922_v3  ;;  %1342 = vmatprep.subr.bf16.mxu0 %v8983_v1  ;;  %v338_v13 = vld [vmem:[%s6126_s9 + $0x10] sm:$0xff]  ;;  %v339_v14 = vld [vmem:[%s6126_s9 + $0x18] sm:$0xff] }
  0x15   : > { %240 = vst [vmem:[#allocation2 + $0x70] sm:$0xff] %v5922_v3  ;;  %241 = vst [vmem:[#allocation2 + $0x78] sm:$0xff] %v5922_v3  ;;  %v512_v7 = vld [vmem:[#allocation2 + $0x1] sm:$0xff]  ;;  %v342_v18 = vld [vmem:[%s6126_s9 + $0x30] sm:$0xff] }
  0x16   : > { %242 = vst [vmem:[#allocation2 + $0x80] sm:$0xff] %v5922_v3  ;;  %243 = vst [vmem:[#allocation2 + $0x88] sm:$0xff] %v5922_v3  ;;  %v513_v8 = vld [vmem:[#allocation2 + $0x9] sm:$0xff]  ;;  %v340_v15 = vld [vmem:[%s6126_s9 + $0x20] sm:$0xff] }
  0x17   : > { %244 = vst [vmem:[#allocation2 + $0x90] sm:$0xff] %v5922_v3  ;;  %245 = vst [vmem:[#allocation2 + $0x98] sm:$0xff] %v5922_v3  ;;  %1343 = vmatpush1.bf16.msra.mxu0 %v5726_v4  ;;  %v560_v10 = vpack.c.bf16 %v513_v8, %v512_v7  ;;  %v341_v16 = vld [vmem:[%s6126_s9 + $0x28] sm:$0xff]  ;;  %v343_v19 = vld [vmem:[%s6126_s9 + $0x38] sm:$0xff] }
  0x18   : > { %246 = vst [vmem:[#allocation2 + $0xa0] sm:$0xff] %v5922_v3  ;;  %247 = vst [vmem:[#allocation2 + $0xa8] sm:$0xff] %v5922_v3  ;;  %1344 = vmatprep.subr.bf16.mxu0 %v8983_v1  ;;  %v344_v20 = vld [vmem:[%s6126_s9 + $0x40] sm:$0xff]  ;;  %v345_v21 = vld [vmem:[%s6126_s9 + $0x48] sm:$0xff] }
  0x19   : > { %248 = vst [vmem:[#allocation2 + $0xb0] sm:$0xff] %v5922_v3  ;;  %249 = vst [vmem:[#allocation2 + $0xb8] sm:$0xff] %v5922_v3  ;;  %1370 = vmatprep.mubr.bf16.mxu0 %v560_v10  ;;  %v346_v22 = vld [vmem:[%s6126_s9 + $0x50] sm:$0xff]  ;;  %v347_v23 = vld [vmem:[%s6126_s9 + $0x58] sm:$0xff] }
  0x1a   : > { %250 = vst [vmem:[#allocation2 + $0xc0] sm:$0xff] %v5922_v3  ;;  %251 = vst [vmem:[#allocation2 + $0xc8] sm:$0xff] %v5922_v3  ;;  %v348_v26 = vld [vmem:[%s6126_s9 + $0x60] sm:$0xff]  ;;  %v349_v27 = vld [vmem:[%s6126_s9 + $0x68] sm:$0xff] }
  0x1b   : > { %252 = vst [vmem:[#allocation2 + $0xd0] sm:$0xff] %v5922_v3  ;;  %253 = vst [vmem:[#allocation2 + $0xd8] sm:$0xff] %v5922_v3  ;;  %1345 = vmatpush1.bf16.msra.mxu0 %v5727_v5  ;;  %v350_v29 = vld [vmem:[%s6126_s9 + $0x70] sm:$0xff]  ;;  %v351_v30 = vld [vmem:[%s6126_s9 + $0x78] sm:$0xff] }
  0x1c   : > { %254 = vst [vmem:[#allocation2 + $0xe0] sm:$0xff] %v5922_v3  ;;  %255 = vst [vmem:[#allocation2 + $0xe8] sm:$0xff] %v5922_v3  ;;  %1346 = vmatprep.subr.bf16.mxu0 %v8983_v1  ;;  %v352_v31 = vld [vmem:[%s6126_s9 + $0x80] sm:$0xff]  ;;  %v353_v32 = vld [vmem:[%s6126_s9 + $0x88] sm:$0xff] }
  0x1d   : > { %256 = vst [vmem:[#allocation2 + $0xf0] sm:$0xff] %v5922_v3  ;;  %257 = vst [vmem:[#allocation2 + $0xf8] sm:$0xff] %v5922_v3  ;;  %v354_v34 = vld [vmem:[%s6126_s9 + $0x90] sm:$0xff]  ;;  %v355_v35 = vld [vmem:[%s6126_s9 + $0x98] sm:$0xff] }
  0x1e   : > { %258 = vst [vmem:[#allocation2 + $0x100] sm:$0xff] %v5922_v3  ;;  %259 = vst [vmem:[#allocation2 + $0x108] sm:$0xff] %v5922_v3  ;;  %v356_v36 = vld [vmem:[%s6126_s9 + $0xa0] sm:$0xff]  ;;  %v357_v37 = vld [vmem:[%s6126_s9 + $0xa8] sm:$0xff] }
  0x1f   : > { %260 = vst [vmem:[#allocation2 + $0x110] sm:$0xff] %v5922_v3  ;;  %261 = vst [vmem:[#allocation2 + $0x118] sm:$0xff] %v5922_v3  ;;  %1347 = vmatpush1.bf16.msra.mxu0 %v5728_v6  ;;  %v358_v38 = vld [vmem:[%s6126_s9 + $0xb0] sm:$0xff]  ;;  %v359_v39 = vld [vmem:[%s6126_s9 + $0xb8] sm:$0xff] }
  0x20   : > { %262 = vst [vmem:[#allocation2 + $0x120] sm:$0xff] %v5922_v3  ;;  %263 = vst [vmem:[#allocation2 + $0x128] sm:$0xff] %v5922_v3  ;;  %1348 = vmatprep.subr.bf16.mxu0 %v8983_v1  ;;  %v360_v42 = vld [vmem:[%s6126_s9 + $0xc0] sm:$0xff]  ;;  %v361_v43 = vld [vmem:[%s6126_s9 + $0xc8] sm:$0xff] }
  0x21   : > { %264 = vst [vmem:[#allocation2 + $0x130] sm:$0xff] %v5922_v3  ;;  %265 = vst [vmem:[#allocation2 + $0x138] sm:$0xff] %v5922_v3  ;;  %v5737_v44 = vld [vmem:[%s8978_s1 + $0x68] sm:$0xff]   ;;  %v362_v45 = vld [vmem:[%s6126_s9 + $0xd0] sm:$0xff] }
  0x22   : > { %266 = vst [vmem:[#allocation2 + $0x140] sm:$0xff] %v5922_v3  ;;  %267 = vst [vmem:[#allocation2 + $0x148] sm:$0xff] %v5922_v3  ;;  %v363_v46 = vld [vmem:[%s6126_s9 + $0xd8] sm:$0xff]  ;;  %v5738_v47 = vld [vmem:[%s8978_s1 + $0x70] sm:$0xff]  }
  0x23   : > { %268 = vst [vmem:[#allocation2 + $0x150] sm:$0xff] %v5922_v3  ;;  %269 = vst [vmem:[#allocation2 + $0x158] sm:$0xff] %v5922_v3  ;;  %1349 = vmatpush1.bf16.msra.mxu0 %v5729_v9  ;;  %v364_v48 = vld [vmem:[%s6126_s9 + $0xe0] sm:$0xff]  ;;  %v365_v49 = vld [vmem:[%s6126_s9 + $0xe8] sm:$0xff] }
  0x24   : > { %270 = vst [vmem:[#allocation2 + $0x160] sm:$0xff] %v5922_v3  ;;  %271 = vst [vmem:[#allocation2 + $0x168] sm:$0xff] %v5922_v3  ;;  %1350 = vmatprep.subr.bf16.mxu0 %v8983_v1  ;;  %v366_v50 = vld [vmem:[%s6126_s9 + $0xf0] sm:$0xff]  ;;  %v367_v51 = vld [vmem:[%s6126_s9 + $0xf8] sm:$0xff] }
  0x25   : > { %272 = vst [vmem:[#allocation2 + $0x170] sm:$0xff] %v5922_v3  ;;  %273 = vst [vmem:[#allocation2 + $0x178] sm:$0xff] %v5922_v3  ;;  %v5739_v52 = vld [vmem:[%s8978_s1 + $0x78] sm:$0xff]   ;;  %v5740_v55 = vld [vmem:[%s8978_s1 + $0x80] sm:$0xff]  }
  0x26   : > { %274 = vst [vmem:[#allocation2 + $0x180] sm:$0xff] %v5922_v3  ;;  %275 = vst [vmem:[#allocation2 + $0x188] sm:$0xff] %v5922_v3  ;;  %v368_v57 = vld [vmem:[%s6126_s9 + $0x100] sm:$0xff]  ;;  %v369_v58 = vld [vmem:[%s6126_s9 + $0x108] sm:$0xff] }
  0x27   : > { %276 = vst [vmem:[#allocation2 + $0x190] sm:$0xff] %v5922_v3  ;;  %277 = vst [vmem:[#allocation2 + $0x198] sm:$0xff] %v5922_v3  ;;  %1351 = vmatpush1.bf16.msra.mxu0 %v5730_v17  ;;  %v5741_v60 = vld [vmem:[%s8978_s1 + $0x88] sm:$0xff]   ;;  %v370_v2 = vld [vmem:[%s6126_s9 + $0x110] sm:$0xff] }
  0x28   : > { %278 = vst [vmem:[#allocation2 + $0x1a0] sm:$0xff] %v5922_v3  ;;  %279 = vst [vmem:[#allocation2 + $0x1a8] sm:$0xff] %v5922_v3  ;;  %1352 = vmatprep.subr.bf16.mxu0 %v8983_v1  ;;  %v371_v4 = vld [vmem:[%s6126_s9 + $0x118] sm:$0xff]  ;;  %v5742_v6 = vld [vmem:[%s8978_s1 + $0x90] sm:$0xff]  }
  0x29   : > { %280 = vst [vmem:[#allocation2 + $0x1b0] sm:$0xff] %v5922_v3  ;;  %281 = vst [vmem:[#allocation3] sm:$0xff] %v5922_v3 }
  0x2a   : > { %282 = vst [vmem:[#allocation3 + $0x8] sm:$0xff] %v5922_v3  ;;  %283 = vst [vmem:[#allocation3 + $0x10] sm:$0xff] %v5922_v3 }
  0x2b   : > { %284 = vst [vmem:[#allocation3 + $0x18] sm:$0xff] %v5922_v3  ;;  %285 = vst [vmem:[#allocation3 + $0x20] sm:$0xff] %v5922_v3  ;;  %1353 = vmatpush1.bf16.msra.mxu0 %v5731_v24 }
  0x2c   : > { %286 = vst [vmem:[#allocation3 + $0x28] sm:$0xff] %v5922_v3  ;;  %287 = vst [vmem:[#allocation3 + $0x30] sm:$0xff] %v5922_v3  ;;  %1354 = vmatprep.subr.bf16.mxu0 %v8983_v1 }
  0x2d   : > { %288 = vst [vmem:[#allocation3 + $0x38] sm:$0xff] %v5922_v3  ;;  %289 = vst [vmem:[#allocation3 + $0x40] sm:$0xff] %v5922_v3 }
  0x2e   : > { %290 = vst [vmem:[#allocation3 + $0x48] sm:$0xff] %v5922_v3  ;;  %291 = vst [vmem:[#allocation3 + $0x50] sm:$0xff] %v5922_v3 }
  0x2f   : > { %292 = vst [vmem:[#allocation3 + $0x58] sm:$0xff] %v5922_v3  ;;  %293 = vst [vmem:[#allocation3 + $0x60] sm:$0xff] %v5922_v3  ;;  %1355 = vmatpush1.bf16.msra.mxu0 %v5732_v25  ;;  %v5746_v25 = vld [vmem:[%s8978_s1 + $0xb0] sm:$0xff]  }
  0x30   : > { %294 = vst [vmem:[#allocation3 + $0x68] sm:$0xff] %v5922_v3  ;;  %295 = vst [vmem:[#allocation3 + $0x70] sm:$0xff] %v5922_v3  ;;  %1356 = vmatprep.subr.bf16.mxu0 %v8983_v1 }
  0x31   : > { %296 = vst [vmem:[#allocation3 + $0x78] sm:$0xff] %v5922_v3  ;;  %297 = vst [vmem:[#allocation3 + $0x80] sm:$0xff] %v5922_v3 }
  0x32   : > { %298 = vst [vmem:[#allocation3 + $0x88] sm:$0xff] %v5922_v3  ;;  %299 = vst [vmem:[#allocation3 + $0x90] sm:$0xff] %v5922_v3 }
  0x33   : > { %300 = vst [vmem:[#allocation3 + $0x98] sm:$0xff] %v5922_v3  ;;  %301 = vst [vmem:[#allocation3 + $0xa0] sm:$0xff] %v5922_v3  ;;  %1357 = vmatpush1.bf16.msra.mxu0 %v5733_v28 }
  0x34   : > { %302 = vst [vmem:[#allocation3 + $0xa8] sm:$0xff] %v5922_v3  ;;  %303 = vst [vmem:[#allocation3 + $0xb0] sm:$0xff] %v5922_v3  ;;  %1358 = vmatprep.subr.bf16.mxu0 %v8983_v1 }
  0x35   : > { %304 = vst [vmem:[#allocation3 + $0xb8] sm:$0xff] %v5922_v3  ;;  %305 = vst [vmem:[#allocation3 + $0xc0] sm:$0xff] %v5922_v3 }
  0x36   : > { %306 = vst [vmem:[#allocation3 + $0xc8] sm:$0xff] %v5922_v3  ;;  %307 = vst [vmem:[#allocation3 + $0xd0] sm:$0xff] %v5922_v3 }
  0x37   : > { %308 = vst [vmem:[#allocation3 + $0xd8] sm:$0xff] %v5922_v3  ;;  %309 = vst [vmem:[#allocation3 + $0xe0] sm:$0xff] %v5922_v3  ;;  %1359 = vmatpush1.bf16.msra.mxu0 %v5734_v33 }
  0x38   : > { %310 = vst [vmem:[#allocation3 + $0xe8] sm:$0xff] %v5922_v3  ;;  %311 = vst [vmem:[#allocation3 + $0xf0] sm:$0xff] %v5922_v3  ;;  %1360 = vmatprep.subr.bf16.mxu0 %v8983_v1 }
  0x39   : > { %312 = vst [vmem:[#allocation3 + $0xf8] sm:$0xff] %v5922_v3  ;;  %313 = vst [vmem:[#allocation3 + $0x100] sm:$0xff] %v5922_v3 }
  0x3a   : > { %314 = vst [vmem:[#allocation3 + $0x108] sm:$0xff] %v5922_v3  ;;  %315 = vst [vmem:[#allocation3 + $0x110] sm:$0xff] %v5922_v3 }
  0x3b   : > { %316 = vst [vmem:[#allocation3 + $0x118] sm:$0xff] %v5922_v3  ;;  %317 = vst [vmem:[#allocation3 + $0x120] sm:$0xff] %v5922_v3  ;;  %1361 = vmatpush1.bf16.msra.mxu0 %v5735_v40  ;;  %v5749_v40 = vld [vmem:[%s8978_s1 + $0xc8] sm:$0xff]  }
  0x3c   : > { %318 = vst [vmem:[#allocation3 + $0x128] sm:$0xff] %v5922_v3  ;;  %319 = vst [vmem:[#allocation3 + $0x130] sm:$0xff] %v5922_v3  ;;  %1362 = vmatprep.subr.bf16.mxu0 %v8983_v1 }
  0x3d   : > { %320 = vst [vmem:[#allocation3 + $0x138] sm:$0xff] %v5922_v3  ;;  %321 = vst [vmem:[#allocation3 + $0x140] sm:$0xff] %v5922_v3 }
  0x3e   : > { %322 = vst [vmem:[#allocation3 + $0x148] sm:$0xff] %v5922_v3  ;;  %323 = vst [vmem:[#allocation3 + $0x150] sm:$0xff] %v5922_v3 }
  0x3f   : > { %324 = vst [vmem:[#allocation3 + $0x158] sm:$0xff] %v5922_v3  ;;  %325 = vst [vmem:[#allocation3 + $0x160] sm:$0xff] %v5922_v3  ;;  %1363 = vmatpush1.bf16.msra.mxu0 %v5736_v41 }
  0x40   : > { %326 = vst [vmem:[#allocation3 + $0x168] sm:$0xff] %v5922_v3  ;;  %327 = vst [vmem:[#allocation3 + $0x170] sm:$0xff] %v5922_v3  ;;  %1364 = vmatprep.subr.bf16.mxu0 %v8983_v1 }
  0x41   : > { %328 = vst [vmem:[#allocation3 + $0x178] sm:$0xff] %v5922_v3  ;;  %329 = vst [vmem:[#allocation3 + $0x180] sm:$0xff] %v5922_v3 }
  0x42   : > { %330 = vst [vmem:[#allocation3 + $0x188] sm:$0xff] %v5922_v3  ;;  %331 = vst [vmem:[#allocation3 + $0x190] sm:$0xff] %v5922_v3 }
  0x43   : > { %332 = vst [vmem:[#allocation3 + $0x198] sm:$0xff] %v5922_v3  ;;  %333 = vst [vmem:[#allocation3 + $0x1a0] sm:$0xff] %v5922_v3  ;;  %1365 = vmatpush1.bf16.msra.mxu0 %v5737_v44 }
  0x44   : > { %334 = vst [vmem:[#allocation3 + $0x1a8] sm:$0xff] %v5922_v3  ;;  %335 = vst [vmem:[#allocation3 + $0x1b0] sm:$0xff] %v5922_v3  ;;  %1366 = vmatprep.subr.bf16.mxu0 %v8983_v1 }
  0x45   : > { %2561 = vst [vmem:[#allocation3 + $0x29] sm:$0xff] %v5922_v3  ;;  %2564 = vst [vmem:[#allocation3 + $0x41] sm:$0xff] %v5922_v3 }
  0x46   : > { %2567 = vst [vmem:[#allocation3 + $0x59] sm:$0xff] %v5922_v3  ;;  %2570 = vst [vmem:[#allocation3 + $0x71] sm:$0xff] %v5922_v3 }
  0x47   : > { %2573 = vst [vmem:[#allocation3 + $0x89] sm:$0xff] %v5922_v3  ;;  %2576 = vst [vmem:[#allocation3 + $0xa1] sm:$0xff] %v5922_v3  ;;  %1367 = vmatpush1.bf16.msra.mxu0 %v5738_v47 }
  0x48   : > { %2579 = vst [vmem:[#allocation3 + $0xb9] sm:$0xff] %v5922_v3  ;;  %2582 = vst [vmem:[#allocation3 + $0xd1] sm:$0xff] %v5922_v3  ;;  %1368 = vmatprep.subr.bf16.mxu0 %v8983_v1 }
  0x49   : > { %2585 = vst [vmem:[#allocation3 + $0xe9] sm:$0xff] %v5922_v3  ;;  %2588 = vst [vmem:[#allocation3 + $0x101] sm:$0xff] %v5922_v3 }
  0x4a   : > { %2591 = vst [vmem:[#allocation3 + $0x119] sm:$0xff] %v5922_v3  ;;  %2594 = vst [vmem:[#allocation3 + $0x131] sm:$0xff] %v5922_v3 }
  0x4b   : > { %2597 = vst [vmem:[#allocation3 + $0x149] sm:$0xff] %v5922_v3  ;;  %2600 = vst [vmem:[#allocation3 + $0x161] sm:$0xff] %v5922_v3  ;;  %1369 = vmatpush1.bf16.msra.mxu0 %v5739_v52  ;;  %v5752_v52 = vld [vmem:[%s8978_s1 + $0xe0] sm:$0xff]  }
  0x4c   : > { %2603 = vst [vmem:[#allocation3 + $0x179] sm:$0xff] %v5922_v3  ;;  %2606 = vst [vmem:[#allocation3 + $0x191] sm:$0xff] %v5922_v3  ;;  %1563 = vmatprep.subr.bf16.mxu0 %v8983_v1 }
  0x4d   : > { %385 = vst.msk [vmem:[#allocation2 + $0x18] sm:$0xff] %vm384_vm0, %v336_v11  ;;  %386 = vst.msk [vmem:[#allocation2 + $0x20] sm:$0xff] %vm384_vm0, %v337_v12  ;;  %v5744_v12 = vld [vmem:[%s8978_s1 + $0xa0] sm:$0xff]  }
  0x4e   : > { %387 = vst.msk [vmem:[#allocation2 + $0x28] sm:$0xff] %vm384_vm0, %v338_v13  ;;  %388 = vst.msk [vmem:[#allocation2 + $0x30] sm:$0xff] %vm384_vm0, %v339_v14  ;;  %1371 = vmatmul.mubr.bf16.vlgmr.msra.gmra.mrb[0].mxu0 %v5923_v61  ;;  %v372_v14 = vld [vmem:[%s6126_s9 + $0x120] sm:$0xff]  ;;  %v5753_v61 = vld [vmem:[%s8978_s1 + $0xe8] sm:$0xff]  }
  0x4f   : > { %389 = vst.msk [vmem:[#allocation2 + $0x38] sm:$0xff] %vm384_vm0, %v340_v15  ;;  %390 = vst.msk [vmem:[#allocation2 + $0x40] sm:$0xff] %vm384_vm0, %v341_v16  ;;  %1564 = vmatpush1.bf16.msra.mxu0 %v5740_v55  ;;  %v373_v15 = vld [vmem:[%s6126_s9 + $0x128] sm:$0xff] }
  0x50   : > { %391 = vst.msk [vmem:[#allocation2 + $0x48] sm:$0xff] %vm384_vm0, %v342_v18  ;;  %392 = vst.msk [vmem:[#allocation2 + $0x50] sm:$0xff] %vm384_vm0, %v343_v19  ;;  %1565 = vmatprep.subr.bf16.mxu0 %v8983_v1  ;;  %v381_v55 = vld [vmem:[%s6126_s9 + $0x168] sm:$0xff] }
  0x51   : > { %393 = vst.msk [vmem:[#allocation2 + $0x58] sm:$0xff] %vm384_vm0, %v344_v20  ;;  %394 = vst.msk [vmem:[#allocation2 + $0x60] sm:$0xff] %vm384_vm0, %v345_v21  ;;  %v5745_v20 = vld [vmem:[%s8978_s1 + $0xa8] sm:$0xff]  }
  0x52   : > { %395 = vst.msk [vmem:[#allocation2 + $0x68] sm:$0xff] %vm384_vm0, %v346_v22  ;;  %396 = vst.msk [vmem:[#allocation2 + $0x70] sm:$0xff] %vm384_vm0, %v347_v23  ;;  %v374_v22 = vld [vmem:[%s6126_s9 + $0x130] sm:$0xff]  ;;  %v375_v23 = vld [vmem:[%s6126_s9 + $0x138] sm:$0xff] }
  0x53   : > { %397 = vst.msk [vmem:[#allocation2 + $0x78] sm:$0xff] %vm384_vm0, %v348_v26  ;;  %398 = vst.msk [vmem:[#allocation2 + $0x80] sm:$0xff] %vm384_vm0, %v349_v27  ;;  %1566 = vmatpush1.bf16.msra.mxu0 %v5741_v60 }
  0x54   : > { %399 = vst.msk [vmem:[#allocation2 + $0x88] sm:$0xff] %vm384_vm0, %v350_v29  ;;  %400 = vst.msk [vmem:[#allocation2 + $0x90] sm:$0xff] %vm384_vm0, %v351_v30  ;;  %v514_v53 = vld [vmem:[#allocation2 + $0x11] sm:$0xff]  ;;  %v515_v54 = vld [vmem:[#allocation2 + $0x19] sm:$0xff]  ;;  %1567 = vmatprep.subr.bf16.mxu0 %v8983_v1 }
  0x55   : > { %401 = vst.msk [vmem:[#allocation2 + $0x98] sm:$0xff] %vm384_vm0, %v352_v31  ;;  %402 = vst.msk [vmem:[#allocation2 + $0xa0] sm:$0xff] %vm384_vm0, %v353_v32  ;;  %v561_v56 = vpack.c.bf16 %v515_v54, %v514_v53  ;;  %v6244_v59 = vld [vmem:[#allocation2 + $0x18] sm:$0xff]  ;;  %v516_v62 = vld [vmem:[#allocation2 + $0x21] sm:$0xff] }
  0x56   : > { %403 = vst.msk [vmem:[#allocation2 + $0xa8] sm:$0xff] %vm384_vm0, %v354_v34  ;;  %404 = vst.msk [vmem:[#allocation2 + $0xb0] sm:$0xff] %vm384_vm0, %v355_v35  ;;  %v517_v63 = vld [vmem:[#allocation2 + $0x29] sm:$0xff]  ;;  %v489_v0 = vpack.c.bf16 %v6244_v59, %v5922_v3  ;;  %v6261_v7 = vld [vmem:[#allocation2 + $0x20] sm:$0xff] }
  0x57   : > { %405 = vst.msk [vmem:[#allocation2 + $0xb8] sm:$0xff] %vm384_vm0, %v356_v36  ;;  %406 = vst.msk [vmem:[#allocation2 + $0xc0] sm:$0xff] %vm384_vm0, %v357_v37  ;;  %1378 = vmatprep.mubr.bf16.mxu0 %v561_v56  ;;  %v562_v5 = vpack.c.bf16 %v517_v63, %v516_v62  ;;  %v6263_v8 = vld [vmem:[#allocation2 + $0x28] sm:$0xff]  ;;  %v5743_v3 = vld [vmem:[%s8978_s1 + $0x98] sm:$0xff]   ;;  %1568 = vmatpush1.bf16.msra.mxu0 %v5742_v6 }
  0x58   : > { %407 = vst.msk [vmem:[#allocation2 + $0xc8] sm:$0xff] %vm384_vm0, %v358_v38  ;;  %408 = vst.msk [vmem:[#allocation2 + $0xd0] sm:$0xff] %vm384_vm0, %v359_v39  ;;  %1379 = vmatmul.mubr.bf16.gmra.mrb[4].mxu0 %v489_v0  ;;  %v518_v9 = vld [vmem:[#allocation2 + $0x31] sm:$0xff]  ;;  %v519_v10 = vld [vmem:[#allocation2 + $0x39] sm:$0xff]  ;;  %1569 = vmatprep.subr.bf16.mxu0 %v8983_v1  ;;  %v490_v11 = vpack.c.bf16 %v6263_v8, %v6261_v7 }
  0x59   : > { %409 = vst.msk [vmem:[#allocation2 + $0xd8] sm:$0xff] %vm384_vm0, %v360_v42  ;;  %410 = vst.msk [vmem:[#allocation2 + $0xe0] sm:$0xff] %vm384_vm0, %v361_v43  ;;  %1386 = vmatprep.mubr.bf16.mxu0 %v562_v5  ;;  %v6274_v13 = vpack.c.bf16 %v519_v10, %v518_v9  ;;  %v6281_v16 = vld [vmem:[#allocation2 + $0x30] sm:$0xff]  ;;  %v6283_v17 = vld [vmem:[#allocation2 + $0x38] sm:$0xff] }
  0x5a   : > { %411 = vst.msk [vmem:[#allocation2 + $0xe8] sm:$0xff] %vm384_vm0, %v362_v45  ;;  %412 = vst.msk [vmem:[#allocation2 + $0xf0] sm:$0xff] %vm384_vm0, %v363_v46  ;;  %v520_v18 = vld [vmem:[#allocation2 + $0x41] sm:$0xff]  ;;  %v521_v19 = vld [vmem:[#allocation2 + $0x49] sm:$0xff]  ;;  %v6292_v21 = vpack.c.bf16 %v6283_v17, %v6281_v16 }
  0x5b   : > { %413 = vst.msk [vmem:[#allocation2 + $0xf8] sm:$0xff] %vm384_vm0, %v364_v48  ;;  %414 = vst.msk [vmem:[#allocation2 + $0x100] sm:$0xff] %vm384_vm0, %v365_v49  ;;  %1570 = vmatpush1.bf16.msra.mxu0 %v5743_v3  ;;  %v6296_v24 = vpack.c.bf16 %v521_v19, %v520_v18  ;;  %v6304_v26 = vld [vmem:[#allocation2 + $0x40] sm:$0xff]  ;;  %v6306_v27 = vld [vmem:[#allocation2 + $0x48] sm:$0xff] }
  0x5c   : > { %415 = vst.msk [vmem:[#allocation2 + $0x108] sm:$0xff] %vm384_vm0, %v366_v50  ;;  %416 = vst.msk [vmem:[#allocation2 + $0x110] sm:$0xff] %vm384_vm0, %v367_v51  ;;  %1571 = vmatprep.subr.bf16.mxu0 %v8983_v1  ;;  %v522_v28 = vld [vmem:[#allocation2 + $0x51] sm:$0xff]  ;;  %v523_v29 = vld [vmem:[#allocation2 + $0x59] sm:$0xff]  ;;  %v6316_v31 = vpack.c.bf16 %v6306_v27, %v6304_v26 }
  0x5d   : > { %417 = vst.msk [vmem:[#allocation2 + $0x118] sm:$0xff] %vm384_vm0, %v368_v57  ;;  %418 = vst.msk [vmem:[#allocation2 + $0x120] sm:$0xff] %vm384_vm0, %v369_v58  ;;  %v5747_v30 = vld [vmem:[%s8978_s1 + $0xb8] sm:$0xff]   ;;  %v5748_v32 = vld [vmem:[%s8978_s1 + $0xc0] sm:$0xff]   ;;  %v6321_v33 = vpack.c.bf16 %v523_v29, %v522_v28 }
  0x5e   : > { %419 = vst.msk [vmem:[#allocation2 + $0x128] sm:$0xff] %vm384_vm0, %v370_v2  ;;  %420 = vst.msk [vmem:[#allocation2 + $0x130] sm:$0xff] %vm384_vm0, %v371_v4  ;;  %v376_v34 = vld [vmem:[%s6126_s9 + $0x140] sm:$0xff]  ;;  %v377_v35 = vld [vmem:[%s6126_s9 + $0x148] sm:$0xff] }
  0x5f   : > { %9192 = vst [vmem:[#allocation4_spill] sm:$0xff] %v6274_v13  ;;  %421 = vst.msk [vmem:[#allocation2 + $0x138] sm:$0xff] %vm384_vm0, %v372_v14  ;;  %1572 = vmatpush1.bf16.msra.mxu0 %v5744_v12  ;;  %v6328_v36 = vld [vmem:[#allocation2 + $0x50] sm:$0xff]  ;;  %v6330_v37 = vld [vmem:[#allocation2 + $0x58] sm:$0xff] }
  0x60   : > { %422 = vst.msk [vmem:[#allocation2 + $0x140] sm:$0xff] %vm384_vm0, %v373_v15  ;;  %1387 = vmatmul.mubr.bf16.gmra.mrb[8].mxu0 %v490_v11  ;;  %1573 = vmatprep.subr.bf16.mxu0 %v8983_v1  ;;  %9193 = vst [vmem:[#allocation5_spill] sm:$0xff] %v6292_v21  ;;  %v524_v38 = vld [vmem:[#allocation2 + $0x61] sm:$0xff]  ;;  %v525_v39 = vld [vmem:[#allocation2 + $0x69] sm:$0xff]  ;;  %v6340_v41 = vpack.c.bf16 %v6330_v37, %v6328_v36 }
  0x61   : > { %1394 = vmatprep.mubr.bf16.mxu0 %v6274_v13  ;;  %9194 = vst [vmem:[#allocation6_spill] sm:$0xff] %v6296_v24  ;;  %423 = vst.msk [vmem:[#allocation2 + $0x148] sm:$0xff] %vm384_vm0, %v374_v22  ;;  %v378_v42 = vld [vmem:[%s6126_s9 + $0x150] sm:$0xff]  ;;  %v379_v43 = vld [vmem:[%s6126_s9 + $0x158] sm:$0xff]  ;;  %v6344_v44 = vpack.c.bf16 %v525_v39, %v524_v38 }
  0x62   : > { %424 = vst.msk [vmem:[#allocation2 + $0x150] sm:$0xff] %vm384_vm0, %v375_v23  ;;  %9195 = vst [vmem:[#allocation7_spill] sm:$0xff] %v6316_v31  ;;  %v5750_v45 = vld [vmem:[%s8978_s1 + $0xd0] sm:$0xff]   ;;  %v6352_v46 = vld [vmem:[#allocation2 + $0x60] sm:$0xff] }
  0x63   : > { %1574 = vmatpush1.bf16.msra.mxu0 %v5745_v20  ;;  %9196 = vst [vmem:[#allocation8_spill] sm:$0xff] %v6321_v33  ;;  %425 = vst.msk [vmem:[#allocation2 + $0x158] sm:$0xff] %vm384_vm0, %v376_v34  ;;  %v6354_v47 = vld [vmem:[#allocation2 + $0x68] sm:$0xff]  ;;  %v526_v48 = vld [vmem:[#allocation2 + $0x71] sm:$0xff] }
  0x64   : > { %1575 = vmatprep.subr.bf16.mxu0 %v8983_v1  ;;  %426 = vst.msk [vmem:[#allocation2 + $0x160] sm:$0xff] %vm384_vm0, %v377_v35  ;;  %9197 = vst [vmem:[#allocation9_spill] sm:$0xff] %v6340_v41  ;;  %v527_v49 = vld [vmem:[#allocation2 + $0x79] sm:$0xff]  ;;  %v6364_v51 = vpack.c.bf16 %v6354_v47, %v6352_v46  ;;  %v6376_v56 = vld [vmem:[#allocation2 + $0x70] sm:$0xff] }
  0x65   : > { %9198 = vst [vmem:[#allocation10_spill] sm:$0xff] %v6344_v44  ;;  %427 = vst.msk [vmem:[#allocation2 + $0x168] sm:$0xff] %vm384_vm0, %v378_v42  ;;  %v5751_v50 = vld [vmem:[%s8978_s1 + $0xd8] sm:$0xff]   ;;  %v6369_v53 = vpack.c.bf16 %v527_v49, %v526_v48  ;;  %v380_v54 = vld [vmem:[%s6126_s9 + $0x160] sm:$0xff] }
  0x66   : > { %428 = vst.msk [vmem:[#allocation2 + $0x170] sm:$0xff] %vm384_vm0, %v379_v43  ;;  %9199 = vst [vmem:[#allocation11_spill] sm:$0xff] %v6364_v51  ;;  %v6378_v57 = vld [vmem:[#allocation2 + $0x78] sm:$0xff]  ;;  %v528_v58 = vld [vmem:[#allocation2 + $0x81] sm:$0xff] }
  0x67   : > { %1576 = vmatpush1.bf16.msra.mxu0 %v5746_v25  ;;  %9200 = vst [vmem:[#allocation12_spill] sm:$0xff] %v6369_v53  ;;  %429 = vst.msk [vmem:[#allocation2 + $0x178] sm:$0xff] %vm384_vm0, %v380_v54  ;;  %v529_v60 = vld [vmem:[#allocation2 + $0x89] sm:$0xff]  ;;  %v6388_v62 = vpack.c.bf16 %v6378_v57, %v6376_v56  ;;  %v6396_v2 = vld [vmem:[#allocation2 + $0x80] sm:$0xff] }
  0x68   : > { %1395 = vmatmul.mubr.bf16.gmra.mrb[12].mxu0 %v6292_v21  ;;  %1577 = vmatprep.subr.bf16.mxu0 %v8983_v1  ;;  %430 = vst.msk [vmem:[#allocation2 + $0x180] sm:$0xff] %vm384_vm0, %v381_v55  ;;  %v6390_v63 = vpack.c.bf16 %v529_v60, %v528_v58  ;;  %v5754_v0 = vld [vmem:[%s8978_s1 + $0xf0] sm:$0xff]   ;;  %v6398_v4 = vld [vmem:[#allocation2 + $0x88] sm:$0xff]  ;;  %v531_v6 = vld [vmem:[#allocation2 + $0x99] sm:$0xff] }
  0x69   : > { %1402 = vmatprep.mubr.bf16.mxu0 %v6296_v24  ;;  %9201 = vst [vmem:[#allocation13_spill] sm:$0xff] %v6388_v62  ;;  %v530_v5 = vld [vmem:[#allocation2 + $0x91] sm:$0xff]  ;;  %v6408_v9 = vpack.c.bf16 %v6398_v4, %v6396_v2  ;;  %v532_v14 = vld [vmem:[#allocation2 + $0xa1] sm:$0xff]  ;;  %v533_v15 = vld [vmem:[#allocation2 + $0xa9] sm:$0xff] }
  0x6a   : > { %9202 = vst [vmem:[#allocation14_spill] sm:$0xff] %v6390_v63  ;;  %v5755_v3 = vld [vmem:[%s8978_s1 + $0xf8] sm:$0xff]   ;;  %v6410_v10 = vpack.c.bf16 %v531_v6, %v530_v5  ;;  %v6413_v11 = vld [vmem:[#allocation2 + $0x90] sm:$0xff]  ;;  %v6423_v19 = vpack.c.bf16 %v533_v15, %v532_v14  ;;  %v6425_v20 = vld [vmem:[#allocation2 + $0xa0] sm:$0xff] }
  0x6b   : > { %1578 = vmatpush1.bf16.msra.mxu0 %v5747_v30  ;;  %9203 = vst [vmem:[#allocation15_spill] sm:$0xff] %v6408_v9  ;;  %v6416_v12 = vld [vmem:[#allocation2 + $0x98] sm:$0xff]  ;;  %v6428_v22 = vld [vmem:[#allocation2 + $0xa8] sm:$0xff]  ;;  %v6437_v30 = vld [vmem:[#allocation2 + $0xb0] sm:$0xff] }
  0x6c   : > { %1579 = vmatprep.subr.bf16.mxu0 %v8983_v1  ;;  %9204 = vst [vmem:[#allocation16_spill] sm:$0xff] %v6410_v10  ;;  %v6421_v18 = vpack.c.bf16 %v6416_v12, %v6413_v11  ;;  %9206 = vst [vmem:[#allocation18_spill] sm:$0xff] %v6423_v19  ;;  %v534_v23 = vld [vmem:[#allocation2 + $0xb1] sm:$0xff]  ;;  %v535_v25 = vld [vmem:[#allocation2 + $0xb9] sm:$0xff]  ;;  %v6433_v28 = vpack.c.bf16 %v6428_v22, %v6425_v20 }
  0x6d   : > { %v6435_v29 = vpack.c.bf16 %v535_v25, %v534_v23  ;;  %v536_v34 = vld [vmem:[#allocation2 + $0xc1] sm:$0xff]  ;;  %v537_v35 = vld [vmem:[#allocation2 + $0xc9] sm:$0xff]  ;;  %v6443_v38 = vld [vmem:[#allocation2 + $0x32] sm:$0xff] }
  0x6e   : > { %9205 = vst [vmem:[#allocation17_spill] sm:$0xff] %v6421_v18  ;;  %9207 = vst [vmem:[#allocation19_spill] sm:$0xff] %v6433_v28  ;;  %v6445_v39 = vld [vmem:[#allocation2 + $0x3a] sm:$0xff]  ;;  %v6456_v43 = vpack.c.bf16 %v537_v35, %v536_v34  ;;  %v6460_v48 = vld [vmem:[#allocation2 + $0xc8] sm:$0xff] }
  0x6f   : > { %1580 = vmatpush1.bf16.msra.mxu0 %v5748_v32  ;;  %9208 = vst [vmem:[#allocation20_spill] sm:$0xff] %v6435_v29  ;;  %v6439_v32 = vld [vmem:[#allocation2 + $0xb8] sm:$0xff]  ;;  %v6478_v55 = vld [vmem:[#allocation2 + $0xd0] sm:$0xff]  ;;  %v6482_v60 = vld [vmem:[#allocation2 + $0xe1] sm:$0xff] }
  0x70   : > { %1403 = vmatmul.mubr.bf16.gmra.mrb[16].mxu0 %v6316_v31  ;;  %1581 = vmatprep.subr.bf16.mxu0 %v8983_v1  ;;  %v6453_v42 = vpack.c.bf16 %v6439_v32, %v6437_v30  ;;  %9210 = vst [vmem:[#allocation22_spill] sm:$0xff] %v6456_v43  ;;  %v6463_v49 = vld [vmem:[#allocation2 + $0xd1] sm:$0xff]  ;;  %9214 = vst [vmem:[#allocation26_spill] sm:$0xff] %v6482_v60  ;;  %v6496_v6 = vld [vmem:[#allocation2 + $0xe0] sm:$0xff] }
  0x71   : > { %1410 = vmatprep.mubr.bf16.mxu0 %v6321_v33  ;;  %v6480_v58 = vld [vmem:[#allocation2 + $0xd8] sm:$0xff]  ;;  %v6514_v34 = vld [vmem:[#allocation2 + $0xf0] sm:$0xff] }
  0x72   : > { %9209 = vst [vmem:[#allocation21_spill] sm:$0xff] %v6453_v42  ;;  %v6500_v14 = vld [vmem:[#allocation2 + $0xf1] sm:$0xff]  ;;  %v6502_v15 = vld [vmem:[#allocation2 + $0xf9] sm:$0xff] }
  0x73   : > { %1582 = vmatpush1.bf16.msra.mxu0 %v5749_v40  ;;  %v6449_v40 = vpack.c.bf16 %v6445_v39, %v6443_v38  ;;  %9218 = vst [vmem:[#allocation30_spill] sm:$0xff] %v6500_v14  ;;  %9219 = vst [vmem:[#allocation31_spill] sm:$0xff] %v6502_v15  ;;  %v6510_v25 = vpack.c.bf16 %v6502_v15, %v6500_v14  ;;  %v6516_v35 = vld [vmem:[#allocation2 + $0xf8] sm:$0xff] }
  0x74   : > { %1583 = vmatprep.subr.bf16.mxu0 %v8983_v1  ;;  %v6608_v31 = vld [vmem:[#allocation2 + $0x151] sm:$0xff]  ;;  %v6610_v24 = vld [vmem:[#allocation2 + $0x159] sm:$0xff] }
  0x75   : > { %5088 = vmatprep.mubr.bf16.mxu1 %v6449_v40  ;;  %9221 = vst [vmem:[#allocation33_spill] sm:$0xff] %v6510_v25  ;;  %9242 = vst [vmem:[#allocation54_spill] sm:$0xff] %v6608_v31  ;;  %v6618_v13 = vpack.c.bf16 %v6610_v24, %v6608_v31  ;;  %v6644_v31 = vld [vmem:[#allocation2 + $0x171] sm:$0xff]  ;;  %v6820_v15 = vld [vmem:[#allocation2 + $0x9a] sm:$0xff] }
  0x76   : > { %9243 = vst [vmem:[#allocation55_spill] sm:$0xff] %v6610_v24  ;;  %9250 = vst [vmem:[#allocation62_spill] sm:$0xff] %v6644_v31 }
  0x77   : > { %1584 = vmatpush1.bf16.msra.mxu0 %v5750_v45  ;;  %v6458_v45 = vld [vmem:[#allocation2 + $0xc0] sm:$0xff]  ;;  %9245 = vst [vmem:[#allocation57_spill] sm:$0xff] %v6618_v13 }
  0x78   : > { %1411 = vmatmul.mubr.bf16.gmra.mrb[20].mxu0 %v6340_v41  ;;  %1585 = vmatprep.subr.bf16.mxu0 %v8983_v1 }
  0x79   : > { %1418 = vmatprep.mubr.bf16.mxu0 %v6344_v44  ;;  %v6592_v44 = vld [vmem:[#allocation2 + $0x149] sm:$0xff] }
  0x7a   : > { %9239 = vst [vmem:[#allocation51_spill] sm:$0xff] %v6592_v44 }
  0x7b   : > { %1586 = vmatpush1.bf16.msra.mxu0 %v5751_v50  ;;  %v6465_v50 = vld [vmem:[#allocation2 + $0xd9] sm:$0xff] }
  0x7c   : > { %1587 = vmatprep.subr.bf16.mxu0 %v8983_v1  ;;  %9211 = vst [vmem:[#allocation23_spill] sm:$0xff] %v6465_v50  ;;  %v6474_v54 = vpack.c.bf16 %v6465_v50, %v6463_v49 }
  0x7e   : > { %9213 = vst [vmem:[#allocation25_spill] sm:$0xff] %v6474_v54 }
  0x7f   : > { %1588 = vmatpush1.bf16.msra.mxu0 %v5752_v52  ;;  %v6470_v52 = vpack.c.bf16 %v6460_v48, %v6458_v45 }
  0x80   : > { %1419 = vmatmul.mubr.bf16.gmra.mrb[24].mxu0 %v6364_v51  ;;  %1589 = vmatprep.subr.bf16.mxu0 %v8983_v1  ;;  %v6590_v51 = vld [vmem:[#allocation2 + $0x141] sm:$0xff] }
  0x81   : > { %1426 = vmatprep.mubr.bf16.mxu0 %v6369_v53  ;;  %9212 = vst [vmem:[#allocation24_spill] sm:$0xff] %v6470_v52  ;;  %9238 = vst [vmem:[#allocation50_spill] sm:$0xff] %v6590_v51  ;;  %v6600_v33 = vpack.c.bf16 %v6592_v44, %v6590_v51  ;;  %v6626_v44 = vld [vmem:[#allocation2 + $0x161] sm:$0xff]  ;;  %v6628_v51 = vld [vmem:[#allocation2 + $0x169] sm:$0xff] }
  0x82   : > { %9246 = vst [vmem:[#allocation58_spill] sm:$0xff] %v6626_v44  ;;  %9247 = vst [vmem:[#allocation59_spill] sm:$0xff] %v6628_v51  ;;  %v6636_v24 = vpack.c.bf16 %v6628_v51, %v6626_v44 }
  0x83   : > { %1590 = vmatpush1.bf16.msra.mxu0 %v5753_v61  ;;  %v6484_v61 = vld [vmem:[#allocation2 + $0xe9] sm:$0xff]  ;;  %9241 = vst [vmem:[#allocation53_spill] sm:$0xff] %v6600_v33 }
  0x84   : > { %1591 = vmatprep.subr.bf16.mxu0 %v8983_v1  ;;  %9215 = vst [vmem:[#allocation27_spill] sm:$0xff] %v6484_v61  ;;  %v6492_v5 = vpack.c.bf16 %v6484_v61, %v6482_v60  ;;  %9249 = vst [vmem:[#allocation61_spill] sm:$0xff] %v6636_v24  ;;  %v670_v61 = vpack.c.bf16 %v6478_v55, %v6460_v48  ;;  %v6855_v48 = vld [vmem:[#allocation2 + $0xca] sm:$0xff] }
  0x86   : > { %9217 = vst [vmem:[#allocation29_spill] sm:$0xff] %v6492_v5 }
  0x87   : > { %1592 = vmatpush1.bf16.msra.mxu0 %v5754_v0  ;;  %v6488_v0 = vpack.c.bf16 %v6480_v58, %v6478_v55 }
  0x88   : > { %1427 = vmatmul.mubr.bf16.gmra.mrb[28].mxu0 %v6388_v62  ;;  %1593 = vmatprep.subr.bf16.mxu0 %v8983_v1 }
  0x89   : > { %1434 = vmatprep.mubr.bf16.mxu0 %v6390_v63  ;;  %9216 = vst [vmem:[#allocation28_spill] sm:$0xff] %v6488_v0  ;;  %v6574_v63 = vld [vmem:[#allocation2 + $0x139] sm:$0xff] }
  0x8a   : > { %9235 = vst [vmem:[#allocation47_spill] sm:$0xff] %v6574_v63 }
  0x8b   : > { %1594 = vmatpush1.bf16.msra.mxu0 %v5755_v3  ;;  %v6498_v3 = vld [vmem:[#allocation2 + $0xe8] sm:$0xff] }
  0x8c   : > { %1788 = vmatprep.subr.bf16.mxu0 %v8983_v1  ;;  %v6506_v23 = vpack.c.bf16 %v6498_v3, %v6496_v6  ;;  %v6518_v1 = vld [vmem:[#allocation2 + $0x101] sm:$0xff] }
  0x8d   : > { %9222 = vst [vmem:[#allocation34_spill] sm:$0xff] %v6518_v1 }
  0x8e   : > { %9220 = vst [vmem:[#allocation32_spill] sm:$0xff] %v6506_v23 }
  0x90   : > { %1435 = vmatmul.mubr.bf16.gmra.mrb[32].mxu0 %v6408_v9  ;;  %v6572_v9 = vld [vmem:[#allocation2 + $0x131] sm:$0xff] }
  0x91   : > { %1442 = vmatprep.mubr.bf16.mxu0 %v6410_v10  ;;  %9234 = vst [vmem:[#allocation46_spill] sm:$0xff] %v6572_v9  ;;  %v6582_v53 = vpack.c.bf16 %v6574_v63, %v6572_v9  ;;  %v6646_v9 = vld [vmem:[#allocation2 + $0x179] sm:$0xff] }
  0x92   : > { %9251 = vst [vmem:[#allocation63_spill] sm:$0xff] %v6646_v9  ;;  %v6654_v51 = vpack.c.bf16 %v6646_v9, %v6644_v31  ;;  %v584_v9 = vld [vmem:[#allocation2 + $0x2] sm:$0xff]  ;;  %v585_v31 = vld [vmem:[#allocation2 + $0xa] sm:$0xff] }
  0x93   : > { %9237 = vst [vmem:[#allocation49_spill] sm:$0xff] %v6582_v53 }
  0x94   : > { %9253 = vst [vmem:[#allocation65_spill] sm:$0xff] %v6654_v51 }
  0x98   : > { %1443 = vmatmul.mubr.bf16.gmra.mrb[36].mxu0 %v6421_v18 }
  0x99   : > { %1450 = vmatprep.mubr.bf16.mxu0 %v6423_v19  ;;  %v6556_v19 = vld [vmem:[#allocation2 + $0x129] sm:$0xff] }
  0x9a   : > { %9231 = vst [vmem:[#allocation43_spill] sm:$0xff] %v6556_v19 }
  0xa0   : > { %1451 = vmatmul.mubr.bf16.gmra.mrb[40].mxu0 %v6433_v28  ;;  %v6554_v28 = vld [vmem:[#allocation2 + $0x121] sm:$0xff] }
  0xa1   : > { %1458 = vmatprep.mubr.bf16.mxu0 %v6435_v29  ;;  %9230 = vst [vmem:[#allocation42_spill] sm:$0xff] %v6554_v28  ;;  %v6564_v10 = vpack.c.bf16 %v6556_v19, %v6554_v28  ;;  %v659_v28 = vpack.c.bf16 %v6261_v7, %v6244_v59  ;;  %v5757_v59 = vld [vmem:[%s8978_s1 + $0x108] sm:$0xff]   ;;  %v9255_v7 = vmov 0  }
  0xa3   : > { %9233 = vst [vmem:[#allocation45_spill] sm:$0xff] %v6564_v10 }
  0xa8   : > { %1459 = vmatmul.mubr.bf16.gmra.mrb[44].mxu0 %v6453_v42 }
  0xa9   : > { %1466 = vmatprep.mubr.bf16.mxu0 %v6456_v43  ;;  %v6538_v43 = vld [vmem:[#allocation2 + $0x119] sm:$0xff] }
  0xaa   : > { %9227 = vst [vmem:[#allocation39_spill] sm:$0xff] %v6538_v43 }
  0xb0   : > { %1467 = vmatmul.mubr.bf16.gmra.mrb[48].mxu0 %v6470_v52  ;;  %v6536_v52 = vld [vmem:[#allocation2 + $0x111] sm:$0xff] }
  0xb1   : > { %1474 = vmatprep.mubr.bf16.mxu0 %v6474_v54  ;;  %9226 = vst [vmem:[#allocation38_spill] sm:$0xff] %v6536_v52  ;;  %v6546_v29 = vpack.c.bf16 %v6538_v43, %v6536_v52  ;;  %v632_v43 = vpack.c.bf16 %v585_v31, %v584_v9  ;;  %v586_v52 = vld [vmem:[#allocation2 + $0x12] sm:$0xff]  ;;  %v661_v9 = vpack.c.bf16 %v6304_v26, %v6283_v17 }
  0xb2   : > { %v662_v26 = vpack.c.bf16 %v6328_v36, %v6306_v27  ;;  %v5762_v27 = vld [vmem:[%s8978_s1 + $0x130] sm:$0xff]   ;;  %v6714_v36 = vld [vmem:[#allocation2 + $0x42] sm:$0xff] }
  0xb3   : > { %9229 = vst [vmem:[#allocation41_spill] sm:$0xff] %v6546_v29 }
  0xb8   : > { %1475 = vmatmul.mubr.bf16.gmra.mrb[52].mxu0 %v6488_v0  ;;  %v6524_v0 = vpack.c.bf16 %v6516_v35, %v6514_v34 }
  0xb9   : > { %1482 = vmatprep.mubr.bf16.mxu0 %v6492_v5  ;;  %v6520_v5 = vld [vmem:[#allocation2 + $0x109] sm:$0xff] }
  0xba   : > { %9223 = vst [vmem:[#allocation35_spill] sm:$0xff] %v6520_v5  ;;  %9224 = vst [vmem:[#allocation36_spill] sm:$0xff] %v6524_v0  ;;  %v6528_v54 = vpack.c.bf16 %v6520_v5, %v6518_v1  ;;  %v6674_v5 = vld [vmem:[#allocation2 + $0x1a] sm:$0xff] }
  0xbb   : > { %v633_v31 = vpack.c.bf16 %v6674_v5, %v586_v52  ;;  %v663_v52 = vpack.c.bf16 %v6352_v46, %v6330_v37 }
  0xbc   : > { %9225 = vst [vmem:[#allocation37_spill] sm:$0xff] %v6528_v54 }
  0xc0   : > { %1483 = vmatmul.mubr.bf16.gmra.mrb[56].mxu0 %v6506_v23  ;;  %v6534_v23 = vld [vmem:[#allocation2 + $0x108] sm:$0xff] }
  0xc1   : > { %1490 = vmatprep.mubr.bf16.mxu0 %v6510_v25  ;;  %v6532_v25 = vld [vmem:[#allocation2 + $0x100] sm:$0xff] }
  0xc2   : > { %v6542_v42 = vpack.c.bf16 %v6534_v23, %v6532_v25 }
  0xc4   : > { %9228 = vst [vmem:[#allocation40_spill] sm:$0xff] %v6542_v42 }
  0xc8   : > { %1491 = vmatmul.mubr.bf16.gmra.mrb[60].mxu0 %v6524_v0  ;;  %v6552_v0 = vld [vmem:[#allocation2 + $0x118] sm:$0xff] }
  0xc9   : > { %1498 = vmatprep.mubr.bf16.mxu0 %v6528_v54  ;;  %v6550_v54 = vld [vmem:[#allocation2 + $0x110] sm:$0xff] }
  0xca   : > { %v6560_v18 = vpack.c.bf16 %v6552_v0, %v6550_v54 }
  0xcc   : > { %9232 = vst [vmem:[#allocation44_spill] sm:$0xff] %v6560_v18 }
  0xd0   : > { %1499 = vmatmul.mubr.bf16.gmra.mrb[64].mxu0 %v6542_v42  ;;  %v6570_v42 = vld [vmem:[#allocation2 + $0x128] sm:$0xff] }
  0xd1   : > { %1506 = vmatprep.mubr.bf16.mxu0 %v6546_v29  ;;  %v6568_v29 = vld [vmem:[#allocation2 + $0x120] sm:$0xff] }
  0xd2   : > { %v6578_v62 = vpack.c.bf16 %v6570_v42, %v6568_v29 }
  0xd4   : > { %9236 = vst [vmem:[#allocation48_spill] sm:$0xff] %v6578_v62 }
  0xd8   : > { %1507 = vmatmul.mubr.bf16.gmra.mrb[68].mxu0 %v6560_v18  ;;  %v6588_v18 = vld [vmem:[#allocation2 + $0x138] sm:$0xff] }
  0xd9   : > { %1514 = vmatprep.mubr.bf16.mxu0 %v6564_v10  ;;  %v6586_v10 = vld [vmem:[#allocation2 + $0x130] sm:$0xff] }
  0xda   : > { %v6596_v41 = vpack.c.bf16 %v6588_v18, %v6586_v10 }
  0xdc   : > { %9240 = vst [vmem:[#allocation52_spill] sm:$0xff] %v6596_v41 }
  0xe0   : > { %1515 = vmatmul.mubr.bf16.gmra.mrb[72].mxu0 %v6578_v62  ;;  %v6606_v62 = vld [vmem:[#allocation2 + $0x148] sm:$0xff] }
  0xe1   : > { %1522 = vmatprep.mubr.bf16.mxu0 %v6582_v53  ;;  %v6604_v53 = vld [vmem:[#allocation2 + $0x140] sm:$0xff] }
  0xe2   : > { %v6614_v21 = vpack.c.bf16 %v6606_v62, %v6604_v53 }
  0xe4   : > { %9244 = vst [vmem:[#allocation56_spill] sm:$0xff] %v6614_v21 }
  0xe8   : > { %1523 = vmatmul.mubr.bf16.gmra.mrb[76].mxu0 %v6596_v41  ;;  %v6624_v41 = vld [vmem:[#allocation2 + $0x158] sm:$0xff] }
  0xe9   : > { %1530 = vmatprep.mubr.bf16.mxu0 %v6600_v33  ;;  %v6622_v33 = vld [vmem:[#allocation2 + $0x150] sm:$0xff] }
  0xea   : > { %v6632_v63 = vpack.c.bf16 %v6624_v41, %v6622_v33 }
  0xec   : > { %9248 = vst [vmem:[#allocation60_spill] sm:$0xff] %v6632_v63 }
  0xf0   : > { %1531 = vmatmul.mubr.bf16.gmra.mrb[80].mxu0 %v6614_v21  ;;  %v6642_v21 = vld [vmem:[#allocation2 + $0x168] sm:$0xff] }
  0xf1   : > { %1538 = vmatprep.mubr.bf16.mxu0 %v6618_v13  ;;  %v6640_v13 = vld [vmem:[#allocation2 + $0x160] sm:$0xff] }
  0xf2   : > { %v6650_v19 = vpack.c.bf16 %v6642_v21, %v6640_v13 }
  0xf4   : > { %9252 = vst [vmem:[#allocation64_spill] sm:$0xff] %v6650_v19 }
  0xf8   : > { %1539 = vmatmul.mubr.bf16.gmra.mrb[84].mxu0 %v6632_v63  ;;  %v6660_v63 = vld [vmem:[#allocation2 + $0x178] sm:$0xff] }
  0xf9   : > { %1546 = vmatprep.mubr.bf16.mxu0 %v6636_v24  ;;  %v6658_v24 = vld [vmem:[#allocation2 + $0x170] sm:$0xff] }
  0xfa   : > { %v6664_v44 = vpack.c.bf16 %v6660_v63, %v6658_v24 }
  0xfc   : > { %9254 = vst [vmem:[#allocation66_spill] sm:$0xff] %v6664_v44 }
 0x100   : > { %1547 = vmatmul.mubr.bf16.gmra.mrb[88].mxu0 %v6650_v19  ;;  %v660_v19 = vpack.c.bf16 %v6281_v16, %v6263_v8  ;;  %v5758_v8 = vld [vmem:[%s8978_s1 + $0x110] sm:$0xff]   ;;  %v6687_v16 = vld [vmem:[#allocation2 + $0x22] sm:$0xff] }
 0x101   : > { %1554 = vmatprep.mubr.bf16.mxu0 %v6654_v51  ;;  %v5756_v51 = vld [vmem:[%s8978_s1 + $0x100] sm:$0xff]  }
 0x108   : > { %1555 = vmatmul.mubr.bf16.gmra.mrb[92].mxu0 %v6664_v44  ;;  %v6783_v44 = vld [vmem:[#allocation2 + $0x7a] sm:$0xff] }
 0x109   : > { %1595 = vmatprep.mubr.bf16.mxu0 %v659_v28  ;;  %v5760_v28 = vld [vmem:[%s8978_s1 + $0x120] sm:$0xff]  }
 0x110   : > { %1596 = vmatmul.mubr.bf16.vlgmr.msra.gmra.mrb[0].mxu0 %v632_v43  ;;  %v5761_v43 = vld [vmem:[%s8978_s1 + $0x128] sm:$0xff]  }
 0x111   : > { %1789 = vmatpush1.bf16.msra.mxu0 %v5756_v51  ;;  %1603 = vmatprep.mubr.bf16.mxu0 %v660_v19  ;;  %v6689_v51 = vld [vmem:[#allocation2 + $0x2a] sm:$0xff]  ;;  %v5759_v19 = vld [vmem:[%s8978_s1 + $0x118] sm:$0xff]  }
 0x112   : > { %1790 = vmatprep.subr.bf16.mxu0 %v9255_v7  ;;  %v634_v17 = vpack.c.bf16 %v6689_v51, %v6687_v16 }
 0x115   : > { %1791 = vmatpush1.bf16.msra.mxu0 %v5757_v59  ;;  %v6716_v59 = vld [vmem:[#allocation2 + $0x4a] sm:$0xff] }
 0x116   : > { %1792 = vmatprep.subr.bf16.mxu0 %v9255_v7 }
 0x118   : > { %1604 = vmatmul.mubr.bf16.gmra.mrb[96].mxu0 %v633_v31  ;;  %v5763_v31 = vld [vmem:[%s8978_s1 + $0x138] sm:$0xff]  }
 0x119   : > { %1611 = vmatprep.mubr.bf16.mxu0 %v661_v9  ;;  %1793 = vmatpush1.bf16.msra.mxu0 %v5758_v8  ;;  %v6724_v9 = vpack.c.bf16 %v6716_v59, %v6714_v36 }
 0x11a   : > { %1794 = vmatprep.subr.bf16.mxu0 %v9255_v7 }
 0x11d   : > { %1795 = vmatpush1.bf16.msra.mxu0 %v5759_v19  ;;  %v5764_v19 = vld [vmem:[%s8978_s1 + $0x140] sm:$0xff]  }
 0x11e   : > { %1796 = vmatprep.subr.bf16.mxu0 %v9255_v7 }
 0x120   : > { %1612 = vmatmul.mubr.bf16.gmra.mrb[8].mxu0 %v634_v17 }
 0x121   : > { %1619 = vmatprep.mubr.bf16.mxu0 %v662_v26  ;;  %1797 = vmatpush1.bf16.msra.mxu0 %v5760_v28  ;;  %v6735_v26 = vld [vmem:[#allocation2 + $0x52] sm:$0xff]  ;;  %v6737_v28 = vld [vmem:[#allocation2 + $0x5a] sm:$0xff] }
 0x122   : > { %1798 = vmatprep.subr.bf16.mxu0 %v9255_v7 }
 0x125   : > { %1799 = vmatpush1.bf16.msra.mxu0 %v5761_v43  ;;  %v665_v43 = vpack.c.bf16 %v6396_v2, %v6378_v57 }
 0x126   : > { %1800 = vmatprep.subr.bf16.mxu0 %v9255_v7 }
 0x128   : > { %1620 = vmatmul.mubr.bf16.gmra.mrb[100].mxu0 %v6449_v40  ;;  %v664_v40 = vpack.c.bf16 %v6376_v56, %v6354_v47  ;;  %v5765_v47 = vld [vmem:[%s8978_s1 + $0x148] sm:$0xff]   ;;  %v6745_v56 = vpack.c.bf16 %v6737_v28, %v6735_v26 }
 0x129   : > { %1627 = vmatprep.mubr.bf16.mxu0 %v663_v52  ;;  %1801 = vmatpush1.bf16.msra.mxu0 %v5762_v27  ;;  %v5766_v52 = vld [vmem:[%s8978_s1 + $0x150] sm:$0xff]   ;;  %v6754_v27 = vld [vmem:[#allocation2 + $0x62] sm:$0xff] }
 0x12a   : > { %1802 = vmatprep.subr.bf16.mxu0 %v9255_v7 }
 0x12b   : > { %v1380_v37 = vpop.f32.mrb[4].mxu0 }
 0x12c   : > { %v1382_v46 = vpop.f32.mrb[5].mxu0  ;;  %v5767_v37 = vld [vmem:[%s8978_s1 + $0x158] sm:$0xff]  }
 0x12d   : > { %v6726_v8 = vpop.f32.mrb[6].mxu0  ;;  %1803 = vmatpush1.bf16.msra.mxu0 %v5763_v31  ;;  %v6756_v31 = vld [vmem:[#allocation2 + $0x6a] sm:$0xff] }
 0x12e   : > { %v1385_v17 = vpop.f32.mrb[7].mxu0  ;;  %1804 = vmatprep.subr.bf16.mxu0 %v9255_v7  ;;  %v6766_v46 = vpack.c.bf16 %v6756_v31, %v6754_v27 }
 0x130   : > { %1628 = vmatmul.mubr.bf16.gmra.mrb[16].mxu0 %v6724_v9 }
 0x131   : > { %1635 = vmatprep.mubr.bf16.mxu0 %v664_v40  ;;  %1805 = vmatpush1.bf16.msra.mxu0 %v5764_v19  ;;  %v382_v40 = vld [vmem:[%s6126_s9 + $0x170] sm:$0xff]  ;;  %v383_v19 = vld [vmem:[%s6126_s9 + $0x178] sm:$0xff] }
 0x132   : > { %1806 = vmatprep.subr.bf16.mxu0 %v9255_v7  ;;  %431 = vst.msk [vmem:[#allocation2 + $0x188] sm:$0xff] %vm384_vm0, %v382_v40  ;;  %432 = vst.msk [vmem:[#allocation2 + $0x190] sm:$0xff] %vm384_vm0, %v383_v19  ;;  %v5770_v40 = vld [vmem:[%s8978_s1 + $0x170] sm:$0xff]   ;;  %v6800_v19 = vld [vmem:[#allocation2 + $0x82] sm:$0xff] }
 0x135   : > { %1807 = vmatpush1.bf16.msra.mxu0 %v5765_v47  ;;  %v666_v47 = vpack.c.bf16 %v6413_v11, %v6398_v4  ;;  %v5769_v4 = vld [vmem:[%s8978_s1 + $0x168] sm:$0xff]  }
 0x136   : > { %1808 = vmatprep.subr.bf16.mxu0 %v9255_v7 }
 0x138   : > { %1636 = vmatmul.mubr.bf16.gmra.mrb[104].mxu0 %v6745_v56 }
 0x139   : > { %1643 = vmatprep.mubr.bf16.mxu0 %v665_v43  ;;  %1809 = vmatpush1.bf16.msra.mxu0 %v5766_v52  ;;  %v5768_v43 = vld [vmem:[%s8978_s1 + $0x160] sm:$0xff]  }
 0x13a   : > { %1810 = vmatprep.subr.bf16.mxu0 %v9255_v7 }
 0x13b   : > { %v6762_v57 = vpop.f32.mrb[12].mxu0 }
 0x13c   : > { %v1398_v2 = vpop.f32.mrb[13].mxu0 }
 0x13d   : > { %v6770_v17 = vpop.f32.mrb[14].mxu0  ;;  %1811 = vmatpush1.bf16.msra.mxu0 %v5767_v37  ;;  %v6781_v2 = vld [vmem:[#allocation2 + $0x72] sm:$0xff]  ;;  %v667_v37 = vpack.c.bf16 %v6425_v20, %v6416_v12 }
 0x13e   : > { %v1401_v52 = vpop.f32.mrb[15].mxu0  ;;  %1812 = vmatprep.subr.bf16.mxu0 %v9255_v7  ;;  %v6791_v11 = vpack.c.bf16 %v6783_v44, %v6781_v2 }
 0x140   : > { %1644 = vmatmul.mubr.bf16.gmra.mrb[24].mxu0 %v6766_v46 }
 0x141   : > { %1651 = vmatprep.mubr.bf16.mxu0 %v666_v47  ;;  %1813 = vmatpush1.bf16.msra.mxu0 %v5768_v43  ;;  %v6802_v47 = vld [vmem:[#allocation2 + $0x8a] sm:$0xff]  ;;  %v5771_v43 = vld [vmem:[%s8978_s1 + $0x178] sm:$0xff]  }
 0x142   : > { %1814 = vmatprep.subr.bf16.mxu0 %v9255_v7  ;;  %v6812_v52 = vpack.c.bf16 %v6802_v47, %v6800_v19 }
 0x145   : > { %1815 = vmatpush1.bf16.msra.mxu0 %v5769_v4 }
 0x146   : > { %1816 = vmatprep.subr.bf16.mxu0 %v9255_v7 }
 0x148   : > { %1652 = vmatmul.mubr.bf16.gmra.mrb[108].mxu0 %v6791_v11 }
 0x149   : > { %1659 = vmatprep.mubr.bf16.mxu0 %v667_v37  ;;  %1817 = vmatpush1.bf16.msra.mxu0 %v5770_v40  ;;  %v668_v37 = vpack.c.bf16 %v6437_v30, %v6428_v22  ;;  %v6818_v40 = vld [vmem:[#allocation2 + $0x92] sm:$0xff]  ;;  %v6831_v22 = vld [vmem:[#allocation2 + $0xaa] sm:$0xff] }
 0x14a   : > { %1818 = vmatprep.subr.bf16.mxu0 %v9255_v7 }
 0x14b   : > { %v6808_v12 = vpop.f32.mrb[20].mxu0 }
 0x14c   : > { %v1414_v20 = vpop.f32.mrb[21].mxu0 }
 0x14d   : > { %v1415_v4 = vpop.f32.mrb[22].mxu0  ;;  %1819 = vmatpush1.bf16.msra.mxu0 %v5771_v43  ;;  %v6824_v20 = vpack.c.bf16 %v6820_v15, %v6818_v40 }
 0x14e   : > { %v1417_v1 = vpop.f32.mrb[23].mxu0  ;;  %2013 = vmatprep.subr.bf16.mxu0 %v9255_v7  ;;  %v669_v4 = vpack.c.bf16 %v6458_v45, %v6439_v32  ;;  %v6842_v32 = vld [vmem:[#allocation2 + $0xb2] sm:$0xff]  ;;  %v6844_v45 = vld [vmem:[#allocation2 + $0xba] sm:$0xff] }
 0x14f   : > { %v6829_v1 = vld [vmem:[#allocation2 + $0xa2] sm:$0xff] }
 0x150   : > { %1660 = vmatmul.mubr.bf16.gmra.mrb[32].mxu0 %v6812_v52 }
 0x151   : > { %1667 = vmatprep.mubr.bf16.mxu0 %v668_v37  ;;  %v6835_v37 = vpack.c.bf16 %v6831_v22, %v6829_v1 }
 0x153   : > { %9256 = vst [vmem:[#allocation67_spill] sm:$0xff] %v6835_v37 }
 0x158   : > { %1668 = vmatmul.mubr.bf16.gmra.mrb[112].mxu0 %v6824_v20 }
 0x159   : > { %1675 = vmatprep.mubr.bf16.mxu0 %v669_v4  ;;  %v6848_v4 = vpack.c.bf16 %v6844_v45, %v6842_v32 }
 0x15b   : > { %v1428_v30 = vpop.f32.mrb[28].mxu0  ;;  %9257 = vst [vmem:[#allocation68_spill] sm:$0xff] %v6848_v4 }
 0x15c   : > { %v1430_v43 = vpop.f32.mrb[29].mxu0  ;;  %v671_v30 = vpack.c.bf16 %v6496_v6, %v6480_v58  ;;  %v6868_v6 = vld [vmem:[#allocation2 + $0xd2] sm:$0xff] }
 0x15d   : > { %v6837_v14 = vpop.f32.mrb[30].mxu0  ;;  %v6853_v43 = vld [vmem:[#allocation2 + $0xc2] sm:$0xff] }
 0x15e   : > { %v1433_v60 = vpop.f32.mrb[31].mxu0 }
 0x160   : > { %1676 = vmatmul.mubr.bf16.gmra.mrb[40].mxu0 %v6835_v37  ;;  %v672_v37 = vpack.c.bf16 %v6514_v34, %v6498_v3  ;;  %v6881_v3 = vld [vmem:[#allocation2 + $0xea] sm:$0xff] }
 0x161   : > { %1683 = vmatprep.mubr.bf16.mxu0 %v670_v61  ;;  %v6861_v61 = vpack.c.bf16 %v6855_v48, %v6853_v43 }
 0x163   : > { %9259 = vst [vmem:[#allocation70_spill] sm:$0xff] %v6861_v61 }
 0x168   : > { %1684 = vmatmul.mubr.bf16.gmra.mrb[116].mxu0 %v6848_v4  ;;  %v674_v4 = vpack.c.bf16 %v6550_v54, %v6534_v23  ;;  %v6905_v54 = vld [vmem:[#allocation2 + $0x10a] sm:$0xff] }
 0x169   : > { %1691 = vmatprep.mubr.bf16.mxu0 %v671_v30  ;;  %v6870_v30 = vld [vmem:[#allocation2 + $0xda] sm:$0xff] }
 0x16a   : > { %9261 = vst [vmem:[#allocation72_spill] sm:$0xff] %v6870_v30 }
 0x16b   : > { %v6857_v55 = vpop.f32.mrb[36].mxu0 }
 0x16c   : > { %9258 = vst [vmem:[#allocation69_spill] sm:$0xff] %v6857_v55  ;;  %v1446_v60 = vpop.f32.mrb[37].mxu0  ;;  %v673_v55 = vpack.c.bf16 %v6532_v25, %v6516_v35  ;;  %v6892_v25 = vld [vmem:[#allocation2 + $0xf2] sm:$0xff]  ;;  %v6894_v35 = vld [vmem:[#allocation2 + $0xfa] sm:$0xff] }
 0x16d   : > { %v6863_v50 = vpop.f32.mrb[38].mxu0  ;;  %v6874_v60 = vpack.c.bf16 %v6870_v30, %v6868_v6  ;;  %9264 = vst [vmem:[#allocation75_spill] sm:$0xff] %v6894_v35 }
 0x16e   : > { %9260 = vst [vmem:[#allocation71_spill] sm:$0xff] %v6863_v50  ;;  %v1449_v58 = vpop.f32.mrb[39].mxu0  ;;  %v6879_v50 = vld [vmem:[#allocation2 + $0xe2] sm:$0xff] }
 0x16f   : > { %v6887_v58 = vpack.c.bf16 %v6881_v3, %v6879_v50 }
 0x170   : > { %1692 = vmatmul.mubr.bf16.gmra.mrb[48].mxu0 %v6861_v61 }
 0x171   : > { %1699 = vmatprep.mubr.bf16.mxu0 %v672_v37  ;;  %9263 = vst [vmem:[#allocation74_spill] sm:$0xff] %v6887_v58 }
 0x178   : > { %1700 = vmatmul.mubr.bf16.gmra.mrb[120].mxu0 %v6874_v60 }
 0x179   : > { %1707 = vmatprep.mubr.bf16.mxu0 %v673_v55  ;;  %v6898_v55 = vpack.c.bf16 %v6894_v35, %v6892_v25 }
 0x17b   : > { %v6883_v34 = vpop.f32.mrb[44].mxu0 }
 0x17c   : > { %9262 = vst [vmem:[#allocation73_spill] sm:$0xff] %v6883_v34  ;;  %v1462_v37 = vpop.f32.mrb[45].mxu0 }
 0x17d   : > { %v1463_v61 = vpop.f32.mrb[46].mxu0  ;;  %v675_v37 = vpack.c.bf16 %v6568_v29, %v6552_v0  ;;  %v6916_v29 = vld [vmem:[#allocation2 + $0x112] sm:$0xff]  ;;  %v6918_v0 = vld [vmem:[#allocation2 + $0x11a] sm:$0xff] }
 0x17e   : > { %v1465_v30 = vpop.f32.mrb[47].mxu0  ;;  %v6903_v61 = vld [vmem:[#allocation2 + $0x102] sm:$0xff]  ;;  %9266 = vst [vmem:[#allocation77_spill] sm:$0xff] %v6918_v0 }
 0x17f   : > { %v6909_v30 = vpack.c.bf16 %v6905_v54, %v6903_v61 }
 0x180   : > { %1708 = vmatmul.mubr.bf16.gmra.mrb[56].mxu0 %v6887_v58  ;;  %v676_v58 = vpack.c.bf16 %v6586_v10, %v6570_v42  ;;  %v6929_v10 = vld [vmem:[#allocation2 + $0x12a] sm:$0xff] }
 0x181   : > { %1715 = vmatprep.mubr.bf16.mxu0 %v674_v4  ;;  %9267 = vst [vmem:[#allocation78_spill] sm:$0xff] %v6929_v10 }
 0x188   : > { %1716 = vmatmul.mubr.bf16.gmra.mrb[124].mxu0 %v6898_v55 }
 0x189   : > { %1723 = vmatprep.mubr.bf16.mxu0 %v675_v37  ;;  %v6922_v37 = vpack.c.bf16 %v6918_v0, %v6916_v29  ;;  %v678_v0 = vpack.c.bf16 %v6622_v33, %v6606_v62  ;;  %v6955_v33 = vld [vmem:[#allocation2 + $0x14a] sm:$0xff] }
 0x18a   : > { %9273 = vst [vmem:[#allocation84_spill] sm:$0xff] %v6955_v33 }
 0x18b   : > { %v1476_v23 = vpop.f32.mrb[52].mxu0 }
 0x18c   : > { %v1478_v4 = vpop.f32.mrb[53].mxu0  ;;  %v677_v23 = vpack.c.bf16 %v6604_v53, %v6588_v18  ;;  %v6942_v18 = vld [vmem:[#allocation2 + $0x132] sm:$0xff] }
 0x18d   : > { %v6911_v34 = vpop.f32.mrb[54].mxu0  ;;  %v6927_v4 = vld [vmem:[#allocation2 + $0x122] sm:$0xff]  ;;  %9270 = vst [vmem:[#allocation81_spill] sm:$0xff] %v6942_v18 }
 0x18e   : > { %9265 = vst [vmem:[#allocation76_spill] sm:$0xff] %v6911_v34  ;;  %v1481_v35 = vpop.f32.mrb[55].mxu0 }
 0x18f   : > { %v6935_v35 = vpack.c.bf16 %v6929_v10, %v6927_v4 }
 0x190   : > { %1724 = vmatmul.mubr.bf16.gmra.mrb[64].mxu0 %v6909_v30 }
 0x191   : > { %1731 = vmatprep.mubr.bf16.mxu0 %v676_v58 }
 0x198   : > { %1732 = vmatmul.mubr.bf16.gmra.mrb[128].mxu0 %v6922_v37 }
 0x199   : > { %1739 = vmatprep.mubr.bf16.mxu0 %v677_v23  ;;  %v6944_v23 = vld [vmem:[#allocation2 + $0x13a] sm:$0xff] }
 0x19a   : > { %9271 = vst [vmem:[#allocation82_spill] sm:$0xff] %v6944_v23 }
 0x19b   : > { %v6931_v42 = vpop.f32.mrb[60].mxu0 }
 0x19c   : > { %9268 = vst [vmem:[#allocation79_spill] sm:$0xff] %v6931_v42  ;;  %v1494_v58 = vpop.f32.mrb[61].mxu0  ;;  %v679_v42 = vpack.c.bf16 %v6640_v13, %v6624_v41  ;;  %v6966_v13 = vld [vmem:[#allocation2 + $0x152] sm:$0xff]  ;;  %v6968_v41 = vld [vmem:[#allocation2 + $0x15a] sm:$0xff] }
 0x19d   : > { %v6937_v34 = vpop.f32.mrb[62].mxu0  ;;  %v6948_v58 = vpack.c.bf16 %v6944_v23, %v6942_v18  ;;  %v680_v23 = vpack.c.bf16 %v6658_v24, %v6642_v21  ;;  %9276 = vst [vmem:[#allocation87_spill] sm:$0xff] %v6966_v13  ;;  %9277 = vst [vmem:[#allocation88_spill] sm:$0xff] %v6968_v41  ;;  %v6978_v21 = vld [vmem:[#allocation2 + $0x16a] sm:$0xff] }
 0x19e   : > { %9269 = vst [vmem:[#allocation80_spill] sm:$0xff] %v6937_v34  ;;  %v1497_v53 = vpop.f32.mrb[63].mxu0  ;;  %v6953_v34 = vld [vmem:[#allocation2 + $0x142] sm:$0xff]  ;;  %9278 = vst [vmem:[#allocation89_spill] sm:$0xff] %v6978_v21 }
 0x19f   : > { %9272 = vst [vmem:[#allocation83_spill] sm:$0xff] %v6953_v34  ;;  %v6961_v53 = vpack.c.bf16 %v6955_v33, %v6953_v34  ;;  %v657_v24 = vld [vmem:[#allocation2 + $0x188] sm:$0xff] }
 0x1a0   : > { %1740 = vmatmul.mubr.bf16.gmra.mrb[72].mxu0 %v6935_v35 }
 0x1a1   : > { %1747 = vmatprep.mubr.bf16.mxu0 %v678_v0  ;;  %9275 = vst [vmem:[#allocation86_spill] sm:$0xff] %v6961_v53 }
 0x1a8   : > { %1748 = vmatmul.mubr.bf16.gmra.mrb[132].mxu0 %v6948_v58 }
 0x1a9   : > { %1755 = vmatprep.mubr.bf16.mxu0 %v679_v42  ;;  %v656_v42 = vld [vmem:[#allocation2 + $0x180] sm:$0xff] }
 0x1ab   : > { %v6957_v62 = vpop.f32.mrb[68].mxu0 }
 0x1ac   : > { %9274 = vst [vmem:[#allocation85_spill] sm:$0xff] %v6957_v62  ;;  %v1510_v0 = vpop.f32.mrb[69].mxu0  ;;  %v681_v62 = vpack.c.bf16 %v656_v42, %v6660_v63  ;;  %v6987_v63 = vld [vmem:[#allocation2 + $0x172] sm:$0xff] }
 0x1ad   : > { %v1511_v10 = vpop.f32.mrb[70].mxu0  ;;  %v6972_v0 = vpack.c.bf16 %v6968_v41, %v6966_v13  ;;  %9280 = vst [vmem:[#allocation91_spill] sm:$0xff] %v6987_v63 }
 0x1ae   : > { %v1513_v18 = vpop.f32.mrb[71].mxu0  ;;  %v6976_v10 = vld [vmem:[#allocation2 + $0x162] sm:$0xff] }
 0x1af   : > { %v658_v18 = vld [vmem:[#allocation2 + $0x190] sm:$0xff]  ;;  %v6982_v34 = vpack.c.bf16 %v6978_v21, %v6976_v10  ;;  %v5772_v21 = vld [vmem:[%s8978_s1 + $0x180] sm:$0xff]  }
 0x1b0   : > { %1756 = vmatmul.mubr.bf16.gmra.mrb[80].mxu0 %v6961_v53  ;;  %v682_v41 = vpack.c.bf16 %v658_v18, %v657_v24  ;;  %v5868_v24 = vld [vmem:[#allocation2 + $0x19] sm:$0xff]  ;;  %v5869_v18 = vld [vmem:[#allocation2 + $0x21] sm:$0xff] }
 0x1b1   : > { %1763 = vmatprep.mubr.bf16.mxu0 %v680_v23 }
 0x1b8   : > { %1764 = vmatmul.mubr.bf16.gmra.mrb[136].mxu0 %v6972_v0 }
 0x1b9   : > { %1771 = vmatprep.mubr.bf16.mxu0 %v681_v62  ;;  %v6989_v62 = vld [vmem:[#allocation2 + $0x17a] sm:$0xff] }
 0x1ba   : > { %9281 = vst [vmem:[#allocation92_spill] sm:$0xff] %v6989_v62  ;;  %v6993_v42 = vpack.c.bf16 %v6989_v62, %v6987_v63  ;;  %v714_v62 = vpack.c.bf16 %v6443_v38, %v6689_v51  ;;  %v5774_v38 = vld [vmem:[%s8978_s1 + $0x190] sm:$0xff]   ;;  %v5775_v51 = vld [vmem:[%s8978_s1 + $0x198] sm:$0xff]  }
 0x1bb   : > { %v1524_v23 = vpop.f32.mrb[76].mxu0 }
 0x1bc   : > { %v1526_v33 = vpop.f32.mrb[77].mxu0 }
 0x1bd   : > { %v6984_v53 = vpop.f32.mrb[78].mxu0  ;;  %v713_v33 = vpack.c.bf16 %v6687_v16, %v6674_v5  ;;  %v5773_v5 = vld [vmem:[%s8978_s1 + $0x188] sm:$0xff]  }
 0x1be   : > { %9279 = vst [vmem:[#allocation90_spill] sm:$0xff] %v6984_v53  ;;  %v1529_v13 = vpop.f32.mrb[79].mxu0  ;;  %v5870_v16 = vld [vmem:[#allocation2 + $0x29] sm:$0xff] }
 0x1c0   : > { %1772 = vmatmul.mubr.bf16.gmra.mrb[88].mxu0 %v6982_v34 }
 0x1c1   : > { %1779 = vmatprep.mubr.bf16.mxu0 %v682_v41  ;;  %v686_v41 = vpack.c.bf16 %v5869_v18, %v5868_v24  ;;  %v715_v24 = vpack.c.bf16 %v6714_v36, %v6445_v39  ;;  %v5873_v39 = vld [vmem:[#allocation2 + $0x41] sm:$0xff] }
 0x1c8   : > { %1780 = vmatmul.mubr.bf16.gmra.mrb[140].mxu0 %v6993_v42 }
 0x1c9   : > { %1820 = vmatprep.mubr.bf16.mxu0 %v713_v33  ;;  %v5871_v33 = vld [vmem:[#allocation2 + $0x31] sm:$0xff] }
 0x1cb   : > { %v6998_v23 = vpop.f32.mrb[84].mxu0 }
 0x1cc   : > { %v1542_v13 = vpop.f32.mrb[85].mxu0 }
 0x1cd   : > { %v7000_v53 = vpop.f32.mrb[86].mxu0  ;;  %v687_v13 = vpack.c.bf16 %v5871_v33, %v5870_v16  ;;  %v5777_v33 = vld [vmem:[%s8978_s1 + $0x1a8] sm:$0xff]  }
 0x1ce   : > { %v1545_v63 = vpop.f32.mrb[87].mxu0 }
 0x1d0   : > { %1821 = vmatmul.mubr.bf16.vlgmr.msra.gmra.mrb[0].mxu0 %v686_v41  ;;  %v716_v41 = vpack.c.bf16 %v6735_v26, %v6716_v59  ;;  %v717_v26 = vpack.c.bf16 %v6754_v27, %v6737_v28 }
 0x1d1   : > { %2014 = vmatpush1.bf16.msra.mxu0 %v5772_v21  ;;  %1828 = vmatprep.mubr.bf16.mxu0 %v714_v62  ;;  %v5872_v62 = vld [vmem:[#allocation2 + $0x39] sm:$0xff] }
 0x1d2   : > { %2015 = vmatprep.subr.bf16.mxu0 %v9255_v7  ;;  %v688_v36 = vpack.c.bf16 %v5873_v39, %v5872_v62  ;;  %v5876_v39 = vld [vmem:[#allocation2 + $0x59] sm:$0xff] }
 0x1d5   : > { %2016 = vmatpush1.bf16.msra.mxu0 %v5773_v5  ;;  %v5776_v5 = vld [vmem:[%s8978_s1 + $0x1a0] sm:$0xff]  }
 0x1d6   : > { %2017 = vmatprep.subr.bf16.mxu0 %v9255_v7 }
 0x1d8   : > { %1829 = vmatmul.mubr.bf16.gmra.mrb[144].mxu0 %v687_v13  ;;  %v5874_v13 = vld [vmem:[#allocation2 + $0x49] sm:$0xff] }
 0x1d9   : > { %1836 = vmatprep.mubr.bf16.mxu0 %v715_v24  ;;  %2018 = vmatpush1.bf16.msra.mxu0 %v5774_v38  ;;  %v5875_v24 = vld [vmem:[#allocation2 + $0x51] sm:$0xff] }
 0x1da   : > { %2019 = vmatprep.subr.bf16.mxu0 %v9255_v7  ;;  %v689_v59 = vpack.c.bf16 %v5875_v24, %v5874_v13  ;;  %v5778_v38 = vld [vmem:[%s8978_s1 + $0x1b0] sm:$0xff]  }
 0x1db   : > { %v7021_v21 = vpop.f32.mrb[92].mxu0 }
 0x1dc   : > { %v1558_v63 = vpop.f32.mrb[93].mxu0 }
 0x1dd   : > { %v1559_v18 = vpop.f32.mrb[94].mxu0  ;;  %2020 = vmatpush1.bf16.msra.mxu0 %v5775_v51  ;;  %v7042_v51 = vld [vmem:[%s8980_s3] ss:$0 sm:$0xff]  ;;  %v5779_v63 = vld [vmem:[%s8978_s1 + $0x1b8] sm:$0xff]  }
 0x1de   : > { %v1561_v16 = vpop.f32.mrb[95].mxu0  ;;  %2021 = vmatprep.subr.bf16.mxu0 %v9255_v7  ;;  %v1384_v62 = vadd.f32 %v7042_v51, %v6726_v8  ;;  %v5787_v8 = vld [vmem:[%s8978_s1 + $0x208] sm:$0xff]  }
 0x1df   : > { %v718_v16 = vpack.c.bf16 %v6781_v2, %v6756_v31  ;;  %v5781_v31 = vld [vmem:[%s8978_s1 + $0x1c8] sm:$0xff]   ;;  %v5788_v2 = vld [vmem:[%s8978_s1 + $0x210] sm:$0xff]  }
 0x1e0   : > { %1837 = vmatmul.mubr.bf16.gmra.mrb[8].mxu0 %v688_v36  ;;  %v5877_v36 = vld [vmem:[#allocation2 + $0x61] sm:$0xff] }
 0x1e1   : > { %1844 = vmatprep.mubr.bf16.mxu0 %v716_v41  ;;  %2022 = vmatpush1.bf16.msra.mxu0 %v5776_v5  ;;  %v690_v18 = vpack.c.bf16 %v5877_v36, %v5876_v39  ;;  %v5786_v41 = vld [vmem:[%s8978_s1 + $0x200] sm:$0xff]  }
 0x1e2   : > { %2023 = vmatprep.subr.bf16.mxu0 %v9255_v7  ;;  %5072 = vmatprep.subr.bf16.mxu1 %v5786_v41 }
 0x1e3   : > { %5073 = vmatpush3.bf16.msra.mxu1 %v5786_v41  ;;  %v5880_v41 = vld [vmem:[#allocation2 + $0x79] sm:$0xff] }
 0x1e4   : > { %5074 = vmatprep.subr.bf16.mxu1 %v5787_v8 }
 0x1e5   : > { %2024 = vmatpush1.bf16.msra.mxu0 %v5777_v33  ;;  %v5780_v33 = vld [vmem:[%s8978_s1 + $0x1c0] sm:$0xff]  }
 0x1e6   : > { %2025 = vmatprep.subr.bf16.mxu0 %v9255_v7 }
 0x1e7   : > { %5075 = vmatpush3.bf16.msra.mxu1 %v5787_v8  ;;  %v5784_v8 = vld [vmem:[%s8978_s1 + $0x1e0] sm:$0xff]  }
 0x1e8   : > { %1845 = vmatmul.mubr.bf16.gmra.mrb[148].mxu0 %v689_v59  ;;  %v5878_v59 = vld [vmem:[#allocation2 + $0x69] sm:$0xff]  ;;  %5076 = vmatprep.subr.bf16.mxu1 %v5788_v2 }
 0x1e9   : > { %1852 = vmatprep.mubr.bf16.mxu0 %v717_v26  ;;  %2026 = vmatpush1.bf16.msra.mxu0 %v5778_v38  ;;  %v5879_v26 = vld [vmem:[#allocation2 + $0x71] sm:$0xff] }
 0x1ea   : > { %2027 = vmatprep.subr.bf16.mxu0 %v9255_v7  ;;  %v691_v38 = vpack.c.bf16 %v5879_v26, %v5878_v59  ;;  %v5882_v59 = vld [vmem:[#allocation2 + $0x89] sm:$0xff]  ;;  %v5883_v26 = vld [vmem:[#allocation2 + $0x91] sm:$0xff] }
 0x1eb   : > { %v1605_v28 = vpop.f32.mrb[96].mxu0  ;;  %5077 = vmatpush3.bf16.msra.mxu1 %v5788_v2 }
 0x1ec   : > { %v1607_v27 = vpop.f32.mrb[97].mxu0  ;;  %v5782_v28 = vld [vmem:[%s8978_s1 + $0x1d0] sm:$0xff]  }
 0x1ed   : > { %v1608_v5 = vpop.f32.mrb[98].mxu0  ;;  %2028 = vmatpush1.bf16.msra.mxu0 %v5779_v63  ;;  %v719_v63 = vpack.c.bf16 %v6800_v19, %v6783_v44  ;;  %v5790_v27 = vld [vmem:[%s8978_s1 + $0x218] sm:$0xff]   ;;  %v1397_v44 = vadd.f32 %v7042_v51, %v6762_v57  ;;  %v720_v57 = vpack.c.bf16 %v6818_v40, %v6802_v47  ;;  %v5785_v47 = vld [vmem:[%s8978_s1 + $0x1e8] sm:$0xff]   ;;  %v5794_v40 = vld [vmem:[%s8978_s1 + $0x230] sm:$0xff]  }
 0x1ee   : > { %v7058_v13 = vadd.f32 %v1608_v5, %v1384_v62  ;;  %v1610_v24 = vpop.f32.mrb[99].mxu0  ;;  %2029 = vmatprep.subr.bf16.mxu0 %v9255_v7  ;;  %v5783_v62 = vld [vmem:[%s8978_s1 + $0x1d8] sm:$0xff]   ;;  %5078 = vmatprep.subr.bf16.mxu1 %v5790_v27  ;;  %v5881_v5 = vld [vmem:[#allocation2 + $0x81] sm:$0xff] }
 0x1ef   : > { %5079 = vmatpush3.bf16.msra.mxu1 %v5790_v27  ;;  %v5795_v27 = vld [vmem:[%s8978_s1 + $0x238] sm:$0xff]  }
 0x1f0   : > { %1853 = vmatmul.mubr.bf16.gmra.mrb[16].mxu0 %v690_v18  ;;  %v1400_v18 = vadd.f32 %v7042_v51, %v6770_v17  ;;  %v5792_v17 = vld [vmem:[%s8978_s1 + $0x228] sm:$0xff]  }
 0x1f1   : > { %1860 = vmatprep.mubr.bf16.mxu0 %v718_v16  ;;  %2030 = vmatpush1.bf16.msra.mxu0 %v5780_v33  ;;  %v692_v16 = vpack.c.bf16 %v5881_v5, %v5880_v41  ;;  %v5791_v33 = vld [vmem:[%s8978_s1 + $0x220] sm:$0xff]  }
 0x1f2   : > { %2031 = vmatprep.subr.bf16.mxu0 %v9255_v7  ;;  %5080 = vmatprep.subr.bf16.mxu1 %v5791_v33 }
 0x1f3   : > { %5081 = vmatpush3.bf16.msra.mxu1 %v5791_v33 }
 0x1f4   : > { %5082 = vmatprep.subr.bf16.mxu1 %v5792_v17 }
 0x1f5   : > { %2032 = vmatpush1.bf16.msra.mxu0 %v5781_v31 }
 0x1f6   : > { %2033 = vmatprep.subr.bf16.mxu0 %v9255_v7 }
 0x1f7   : > { %5083 = vmatpush3.bf16.msra.mxu1 %v5792_v17 }
 0x1f8   : > { %1861 = vmatmul.mubr.bf16.gmra.mrb[152].mxu0 %v691_v38  ;;  %v693_v38 = vpack.c.bf16 %v5883_v26, %v5882_v59  ;;  %5084 = vmatprep.subr.bf16.mxu1 %v5794_v40  ;;  %v9283_v26 = vld [vmem:[#allocation67_spill] sm:$0xff] }
 0x1f9   : > { %1868 = vmatprep.mubr.bf16.mxu0 %v719_v63  ;;  %2034 = vmatpush1.bf16.msra.mxu0 %v5782_v28  ;;  %v721_v63 = vpack.c.bf16 %v6829_v1, %v6820_v15  ;;  %v5789_v28 = vld [vmem:[%s8978_s1 + $0x1f0] sm:$0xff]   ;;  %v1413_v15 = vadd.f32 %v7042_v51, %v6808_v12 }
 0x1fa   : > { %2035 = vmatprep.subr.bf16.mxu0 %v9255_v7  ;;  %v5886_v12 = vld [vmem:[#allocation2 + $0xa9] sm:$0xff] }
 0x1fb   : > { %v1621_v19 = vpop.f32.mrb[100].mxu0  ;;  %5085 = vmatpush3.bf16.msra.mxu1 %v5794_v40  ;;  %v724_v40 = vpack.c.bf16 %v6868_v6, %v6855_v48  ;;  %v9285_v48 = vld [vmem:[#allocation69_spill] sm:$0xff] }
 0x1fc   : > { %v7086_v39 = vadd.f32 %v1621_v19, %v1397_v44  ;;  %v1623_v36 = vpop.f32.mrb[101].mxu0  ;;  %5086 = vmatprep.subr.bf16.mxu1 %v5795_v27  ;;  %v1445_v6 = vadd.f32 %v7042_v51, %v9285_v48 }
 0x1fd   : > { %v1624_v24 = vpop.f32.mrb[102].mxu0  ;;  %2036 = vmatpush1.bf16.msra.mxu0 %v5783_v62  ;;  %v5793_v62 = vld [vmem:[%s8978_s1 + $0x1f8] sm:$0xff]  }
 0x1fe   : > { %v7098_v31 = vadd.f32 %v1624_v24, %v1400_v18  ;;  %v1626_v2 = vpop.f32.mrb[103].mxu0  ;;  %2037 = vmatprep.subr.bf16.mxu0 %v9255_v7  ;;  %v5884_v36 = vld [vmem:[#allocation2 + $0x99] sm:$0xff]  ;;  %v5885_v18 = vld [vmem:[#allocation2 + $0xa1] sm:$0xff]  ;;  %v5887_v24 = vld [vmem:[#allocation2 + $0xb1] sm:$0xff] }
 0x1ff   : > { %5087 = vmatpush3.bf16.msra.mxu1 %v5795_v27  ;;  %v694_v41 = vpack.c.bf16 %v5885_v18, %v5884_v36  ;;  %v5889_v2 = vld [vmem:[#allocation2 + $0xc1] sm:$0xff] }
 0x200   : > { %1869 = vmatmul.mubr.bf16.gmra.mrb[24].mxu0 %v692_v16  ;;  %3505 = vmatprep.subr.bf16.mxu1 %v9255_v7  ;;  %v722_v16 = vpack.c.bf16 %v6842_v32, %v6831_v22  ;;  %v9289_v18 = vld [vmem:[#allocation70_spill] sm:$0xff] }
 0x201   : > { %1876 = vmatprep.mubr.bf16.mxu0 %v720_v57  ;;  %2038 = vmatpush1.bf16.msra.mxu0 %v5784_v8  ;;  %v695_v57 = vpack.c.bf16 %v5887_v24, %v5886_v12  ;;  %v723_v8 = vpack.c.bf16 %v6853_v43, %v6844_v45  ;;  %v9293_v24 = vld [vmem:[#allocation74_spill] sm:$0xff] }
 0x202   : > { %2039 = vmatprep.subr.bf16.mxu0 %v9255_v7  ;;  %5089 = vmatmul.mubr.bf16.vlgmr.msra.gmra.mrb[0].mxu1 %v6724_v9  ;;  %v1432_v9 = vadd.f32 %v7042_v51, %v6837_v14  ;;  %v9282_v14 = vld [vmem:[#allocation72_spill] sm:$0xff] }
 0x203   : > { %5092 = vmatprep.mubr.bf16.mxu1 %v6745_v56  ;;  %v5888_v56 = vld [vmem:[#allocation2 + $0xb9] sm:$0xff]  ;;  %v725_v43 = vpack.c.bf16 %v6879_v50, %v9282_v14 }
 0x204   : > { %v696_v17 = vpack.c.bf16 %v5889_v2, %v5888_v56 }
 0x205   : > { %2040 = vmatpush1.bf16.msra.mxu0 %v5785_v47 }
 0x206   : > { %2041 = vmatprep.subr.bf16.mxu0 %v9255_v7 }
 0x208   : > { %1877 = vmatmul.mubr.bf16.gmra.mrb[156].mxu0 %v693_v38  ;;  %v9284_v38 = vld [vmem:[#allocation68_spill] sm:$0xff] }
 0x209   : > { %1884 = vmatprep.mubr.bf16.mxu0 %v721_v63  ;;  %2042 = vmatpush1.bf16.msra.mxu0 %v5789_v28  ;;  %v9286_v28 = vld [vmem:[#allocation71_spill] sm:$0xff] }
 0x20a   : > { %2043 = vmatprep.subr.bf16.mxu0 %v9255_v7  ;;  %5093 = vmatmul.mubr.bf16.gmra.mrb[4].mxu1 %v6766_v46  ;;  %v5890_v46 = vld [vmem:[#allocation2 + $0xc9] sm:$0xff]  ;;  %v1448_v27 = vadd.f32 %v7042_v51, %v9286_v28  ;;  %v9308_v28 = vld [vmem:[#allocation82_spill] sm:$0xff] }
 0x20b   : > { %v1637_v1 = vpop.f32.mrb[104].mxu0  ;;  %5096 = vmatprep.mubr.bf16.mxu1 %v6791_v11  ;;  %v697_v11 = vpack.c.bf16 %v6463_v49, %v5890_v46  ;;  %v9287_v49 = vld [vmem:[#allocation23_spill] sm:$0xff] }
 0x20c   : > { %v7126_v44 = vadd.f32 %v1637_v1, %v1413_v15  ;;  %v1639_v19 = vpop.f32.mrb[105].mxu0  ;;  %v726_v1 = vpack.c.bf16 %v6892_v25, %v6881_v3  ;;  %v9294_v3 = vld [vmem:[#allocation73_spill] sm:$0xff] }
 0x20d   : > { %v1640_v5 = vpop.f32.mrb[106].mxu0  ;;  %2044 = vmatpush1.bf16.msra.mxu0 %v5793_v62  ;;  %v9288_v62 = vld [vmem:[#allocation26_spill] sm:$0xff]  ;;  %v1461_v25 = vadd.f32 %v7042_v51, %v9294_v3 }
 0x20e   : > { %v1642_v33 = vpop.f32.mrb[107].mxu0  ;;  %v698_v15 = vpack.c.bf16 %v9288_v62, %v9287_v49  ;;  %v9291_v5 = vld [vmem:[#allocation30_spill] sm:$0xff]  ;;  %v9310_v62 = vld [vmem:[#allocation79_spill] sm:$0xff] }
 0x20f   : > { %v9292_v33 = vld [vmem:[#allocation75_spill] sm:$0xff] }
 0x210   : > { %1885 = vmatmul.mubr.bf16.gmra.mrb[32].mxu0 %v694_v41  ;;  %v9290_v41 = vld [vmem:[#allocation27_spill] sm:$0xff]  ;;  %v727_v12 = vpack.c.bf16 %v6903_v61, %v9292_v33  ;;  %v728_v61 = vpack.c.bf16 %v6916_v29, %v6905_v54  ;;  %v9300_v29 = vld [vmem:[#allocation76_spill] sm:$0xff] }
 0x211   : > { %1892 = vmatprep.mubr.bf16.mxu0 %v722_v16  ;;  %v699_v16 = vpack.c.bf16 %v9291_v5, %v9290_v41  ;;  %v9312_v41 = vld [vmem:[#allocation47_spill] sm:$0xff]  ;;  %v9313_v5 = vld [vmem:[#allocation50_spill] sm:$0xff] }
 0x212   : > { %5097 = vmatmul.mubr.bf16.gmra.mrb[8].mxu1 %v6812_v52 }
 0x213   : > { %5100 = vmatprep.mubr.bf16.mxu1 %v6824_v20 }
 0x218   : > { %1893 = vmatmul.mubr.bf16.gmra.mrb[160].mxu0 %v695_v57 }
 0x219   : > { %1900 = vmatprep.mubr.bf16.mxu0 %v723_v8 }
 0x21a   : > { %5101 = vmatmul.mubr.bf16.gmra.mrb[12].mxu1 %v9283_v26  ;;  %v9303_v26 = vld [vmem:[#allocation78_spill] sm:$0xff] }
 0x21b   : > { %v1653_v22 = vpop.f32.mrb[108].mxu0  ;;  %5104 = vmatprep.mubr.bf16.mxu1 %v9284_v38  ;;  %v9304_v38 = vld [vmem:[#allocation81_spill] sm:$0xff] }
 0x21c   : > { %v1655_v32 = vpop.f32.mrb[109].mxu0  ;;  %v9295_v22 = vld [vmem:[#allocation31_spill] sm:$0xff]  ;;  %v730_v48 = vpack.c.bf16 %v9304_v38, %v9303_v26 }
 0x21d   : > { %v1656_v47 = vpop.f32.mrb[110].mxu0  ;;  %v9296_v32 = vld [vmem:[#allocation34_spill] sm:$0xff] }
 0x21e   : > { %v7141_v59 = vadd.f32 %v1656_v47, %v1432_v9  ;;  %v1658_v45 = vpop.f32.mrb[111].mxu0  ;;  %v700_v9 = vpack.c.bf16 %v9296_v32, %v9295_v22  ;;  %v9318_v22 = vld [vmem:[#allocation88_spill] sm:$0xff]  ;;  %v7232_v38 = vld [vmem:[#allocation2 + $0x181] sm:$0xff] }
 0x21f   : > { %v733_v32 = vpack.c.bf16 %v6976_v10, %v9318_v22  ;;  %v7226_v10 = vld [vmem:[#allocation2 + $0x182] sm:$0xff] }
 0x220   : > { %1901 = vmatmul.mubr.bf16.gmra.mrb[40].mxu0 %v696_v17  ;;  %v9298_v17 = vld [vmem:[#allocation38_spill] sm:$0xff] }
 0x221   : > { %1908 = vmatprep.mubr.bf16.mxu0 %v724_v40  ;;  %v9299_v40 = vld [vmem:[#allocation77_spill] sm:$0xff]  ;;  %v9331_v22 = vld [vmem:[#allocation6_spill] sm:$0xff] }
 0x222   : > { %5105 = vmatmul.mubr.bf16.gmra.mrb[16].mxu1 %v9289_v18  ;;  %v729_v45 = vpack.c.bf16 %v6927_v4, %v9299_v40 }
 0x223   : > { %5108 = vmatprep.mubr.bf16.mxu1 %v6874_v60 }
 0x228   : > { %1909 = vmatmul.mubr.bf16.gmra.mrb[164].mxu0 %v697_v11  ;;  %v9302_v11 = vld [vmem:[#allocation42_spill] sm:$0xff] }
 0x229   : > { %1916 = vmatprep.mubr.bf16.mxu0 %v725_v43 }
 0x22a   : > { %5109 = vmatmul.mubr.bf16.gmra.mrb[20].mxu1 %v9293_v24 }
 0x22b   : > { %v1669_v52 = vpop.f32.mrb[112].mxu0  ;;  %5112 = vmatprep.mubr.bf16.mxu1 %v6898_v55  ;;  %v9297_v55 = vld [vmem:[#allocation35_spill] sm:$0xff] }
 0x22c   : > { %v7152_v63 = vadd.f32 %v1669_v52, %v1445_v6  ;;  %v1671_v20 = vpop.f32.mrb[113].mxu0  ;;  %v701_v47 = vpack.c.bf16 %v9298_v17, %v9297_v55  ;;  %v9307_v52 = vld [vmem:[#allocation46_spill] sm:$0xff]  ;;  %v9320_v17 = vld [vmem:[#allocation55_spill] sm:$0xff] }
 0x22d   : > { %v1672_v50 = vpop.f32.mrb[114].mxu0 }
 0x22e   : > { %v7160_v19 = vadd.f32 %v1672_v50, %v1448_v27  ;;  %v1674_v36 = vpop.f32.mrb[115].mxu0  ;;  %v9309_v27 = vld [vmem:[#allocation83_spill] sm:$0xff] }
 0x22f   : > { %v731_v49 = vpack.c.bf16 %v9309_v27, %v9308_v28  ;;  %v9328_v28 = vld [vmem:[#allocation63_spill] sm:$0xff] }
 0x230   : > { %1917 = vmatmul.mubr.bf16.gmra.mrb[48].mxu0 %v698_v15  ;;  %v1493_v15 = vadd.f32 %v7042_v51, %v9310_v62  ;;  %v708_v27 = vpack.c.bf16 %v7232_v38, %v9328_v28  ;;  %v9339_v28 = vld [vmem:[#allocation14_spill] sm:$0xff] }
 0x231   : > { %1924 = vmatprep.mubr.bf16.mxu0 %v726_v1  ;;  %v9311_v1 = vld [vmem:[#allocation80_spill] sm:$0xff] }
 0x232   : > { %5113 = vmatmul.mubr.bf16.gmra.mrb[24].mxu1 %v6909_v30  ;;  %v1480_v30 = vadd.f32 %v7042_v51, %v9300_v29  ;;  %v9323_v29 = vld [vmem:[#allocation91_spill] sm:$0xff] }
 0x233   : > { %5116 = vmatprep.mubr.bf16.mxu1 %v6922_v37  ;;  %v9301_v37 = vld [vmem:[#allocation39_spill] sm:$0xff] }
 0x234   : > { %v702_v14 = vpack.c.bf16 %v9302_v11, %v9301_v37  ;;  %v9324_v37 = vld [vmem:[#allocation59_spill] sm:$0xff]  ;;  %v9325_v11 = vld [vmem:[#allocation62_spill] sm:$0xff] }
 0x238   : > { %1925 = vmatmul.mubr.bf16.gmra.mrb[168].mxu0 %v699_v16  ;;  %v704_v16 = vpack.c.bf16 %v9313_v5, %v9312_v41  ;;  %v9329_v41 = vld [vmem:[#allocation4_spill] sm:$0xff]  ;;  %v1541_v5 = vadd.f32 %v7042_v51, %v6998_v23  ;;  %v5797_v23 = vld [vmem:[%s8979_s2 + $0x8] sm:$0xff]  }
 0x239   : > { %1932 = vmatprep.mubr.bf16.mxu0 %v727_v12  ;;  %v9314_v12 = vld [vmem:[#allocation84_spill] sm:$0xff] }
 0x23a   : > { %5117 = vmatmul.mubr.bf16.gmra.mrb[28].mxu1 %v6935_v35  ;;  %v9305_v35 = vld [vmem:[#allocation86_spill] sm:$0xff] }
 0x23b   : > { %v1685_v57 = vpop.f32.mrb[116].mxu0  ;;  %5120 = vmatprep.mubr.bf16.mxu1 %v6948_v58  ;;  %v9306_v58 = vld [vmem:[#allocation43_spill] sm:$0xff] }
 0x23c   : > { %v7172_v8 = vadd.f32 %v1685_v57, %v1461_v25  ;;  %v1687_v60 = vpop.f32.mrb[117].mxu0  ;;  %v703_v20 = vpack.c.bf16 %v9307_v52, %v9306_v58  ;;  %v9316_v25 = vld [vmem:[#allocation51_spill] sm:$0xff]  ;;  %v9317_v57 = vld [vmem:[#allocation54_spill] sm:$0xff] }
 0x23d   : > { %v1688_v56 = vpop.f32.mrb[118].mxu0  ;;  %v705_v60 = vpack.c.bf16 %v9317_v57, %v9316_v25  ;;  %v9327_v58 = vld [vmem:[#allocation90_spill] sm:$0xff] }
 0x23e   : > { %v1690_v2 = vpop.f32.mrb[119].mxu0  ;;  %v1528_v52 = vadd.f32 %v7042_v51, %v9327_v58  ;;  %v5796_v57 = vld [vmem:[%s8979_s2] sm:$0xff]  }
 0x23f   : > { %3506 = vmatpush1.bf16.msra.mxu1 %v5796_v57  ;;  %v9342_v57 = vld [vmem:[#allocation17_spill] sm:$0xff] }
 0x240   : > { %1933 = vmatmul.mubr.bf16.gmra.mrb[56].mxu0 %v700_v9  ;;  %v9319_v9 = vld [vmem:[#allocation85_spill] sm:$0xff]  ;;  %3507 = vmatprep.subr.bf16.mxu1 %v9255_v7 }
 0x241   : > { %1940 = vmatprep.mubr.bf16.mxu0 %v728_v61  ;;  %v1509_v56 = vadd.f32 %v7042_v51, %v9319_v9  ;;  %v9333_v9 = vld [vmem:[#allocation8_spill] sm:$0xff] }
 0x242   : > { %5121 = vmatmul.mubr.bf16.gmra.mrb[32].mxu1 %v9305_v35 }
 0x243   : > { %5124 = vmatprep.mubr.bf16.mxu1 %v6972_v0  ;;  %v1496_v0 = vadd.f32 %v7042_v51, %v9311_v1  ;;  %v7243_v1 = vld [vmem:[#allocation2 + $0x189] sm:$0xff]  ;;  %3508 = vmatpush1.bf16.msra.mxu1 %v5797_v23 }
 0x244   : > { %3509 = vmatprep.subr.bf16.mxu1 %v9255_v7  ;;  %v9345_v23 = vld [vmem:[#allocation20_spill] sm:$0xff] }
 0x248   : > { %1941 = vmatmul.mubr.bf16.gmra.mrb[172].mxu0 %v701_v47  ;;  %v9321_v47 = vld [vmem:[#allocation58_spill] sm:$0xff] }
 0x249   : > { %1948 = vmatprep.mubr.bf16.mxu0 %v729_v45  ;;  %v706_v40 = vpack.c.bf16 %v9321_v47, %v9320_v17 }
 0x24a   : > { %5125 = vmatmul.mubr.bf16.gmra.mrb[36].mxu1 %v6982_v34  ;;  %v9315_v34 = vld [vmem:[#allocation87_spill] sm:$0xff] }
 0x24b   : > { %v1701_v54 = vpop.f32.mrb[120].mxu0  ;;  %5128 = vmatprep.mubr.bf16.mxu1 %v6993_v42  ;;  %v732_v24 = vpack.c.bf16 %v9315_v34, %v9314_v12 }
 0x24c   : > { %v1703_v46 = vpop.f32.mrb[121].mxu0  ;;  %v9322_v54 = vld [vmem:[#allocation89_spill] sm:$0xff] }
 0x24d   : > { %v1704_v43 = vpop.f32.mrb[122].mxu0 }
 0x24e   : > { %v7192_v6 = vadd.f32 %v1704_v43, %v1480_v30  ;;  %v1706_v4 = vpop.f32.mrb[123].mxu0  ;;  %v734_v30 = vpack.c.bf16 %v9323_v29, %v9322_v54  ;;  %v9326_v43 = vld [vmem:[#allocation92_spill] sm:$0xff]  ;;  %v5799_v54 = vld [vmem:[%s8979_s2 + $0x18] sm:$0xff]   ;;  %v9335_v29 = vld [vmem:[#allocation10_spill] sm:$0xff] }
 0x24f   : > { %v735_v26 = vpack.c.bf16 %v7226_v10, %v9326_v43  ;;  %v7234_v4 = vld [vmem:[#allocation2 + $0x192] sm:$0xff] }
 0x250   : > { %1949 = vmatmul.mubr.bf16.gmra.mrb[64].mxu0 %v702_v14  ;;  %v707_v14 = vpack.c.bf16 %v9325_v11, %v9324_v37 }
 0x251   : > { %1956 = vmatprep.mubr.bf16.mxu0 %v730_v48  ;;  %v711_v48 = vld [vmem:[#allocation2 + $0x18a] sm:$0xff] }
 0x252   : > { %v736_v62 = vpack.c.bf16 %v7234_v4, %v711_v48  ;;  %v752_v43 = vpack.c.bf16 %v711_v48, %v7226_v10  ;;  %v9340_v10 = vld [vmem:[#allocation15_spill] sm:$0xff]  ;;  %v9341_v48 = vld [vmem:[#allocation16_spill] sm:$0xff] }
 0x254   : > { %5129 = vmatmul.mubr.bf16.gmra.mrb[40].mxu1 %v752_v43  ;;  %v9351_v43 = vld [vmem:[#allocation29_spill] sm:$0xff] }
 0x258   : > { %1957 = vmatmul.mubr.bf16.gmra.mrb[176].mxu0 %v703_v20 }
 0x259   : > { %1964 = vmatprep.mubr.bf16.mxu0 %v731_v49 }
 0x25b   : > { %v1717_v50 = vpop.f32.mrb[124].mxu0 }
 0x25c   : > { %v7206_v36 = vadd.f32 %v1717_v50, %v1493_v15  ;;  %v1719_v18 = vpop.f32.mrb[125].mxu0 }
 0x25d   : > { %v1720_v33 = vpop.f32.mrb[126].mxu0 }
 0x25e   : > { %v7212_v42 = vadd.f32 %v1720_v33, %v1496_v0  ;;  %v1722_v3 = vpop.f32.mrb[127].mxu0  ;;  %v7245_v0 = vld [vmem:[#allocation2 + $0x191] sm:$0xff]  ;;  %v1544_v33 = vadd.f32 %v7042_v51, %v7000_v53  ;;  %v9332_v53 = vld [vmem:[#allocation7_spill] sm:$0xff] }
 0x25f   : > { %v709_v18 = vpack.c.bf16 %v7245_v0, %v7243_v1 }
 0x260   : > { %1965 = vmatmul.mubr.bf16.gmra.mrb[72].mxu0 %v704_v16 }
 0x261   : > { %1972 = vmatprep.mubr.bf16.mxu0 %v732_v24 }
 0x268   : > { %1973 = vmatmul.mubr.bf16.gmra.mrb[180].mxu0 %v705_v60  ;;  %v9330_v60 = vld [vmem:[#allocation5_spill] sm:$0xff] }
 0x269   : > { %1980 = vmatprep.mubr.bf16.mxu0 %v733_v32  ;;  %v5798_v32 = vld [vmem:[%s8979_s2 + $0x10] sm:$0xff]  }
 0x26a   : > { %3510 = vmatpush1.bf16.msra.mxu1 %v5798_v32 }
 0x26b   : > { %v1733_v61 = vpop.f32.mrb[128].mxu0  ;;  %3511 = vmatprep.subr.bf16.mxu1 %v9255_v7 }
 0x26c   : > { %v7220_v2 = vadd.f32 %v1733_v61, %v1509_v56  ;;  %v1735_v55 = vpop.f32.mrb[129].mxu0  ;;  %v1557_v56 = vadd.f32 %v7042_v51, %v7021_v21  ;;  %v5800_v21 = vld [vmem:[%s8979_s2 + $0x20] sm:$0xff]  }
 0x26d   : > { %v1736_v45 = vpop.f32.mrb[130].mxu0 }
 0x26e   : > { %v1738_v46 = vpop.f32.mrb[131].mxu0  ;;  %v9334_v45 = vld [vmem:[#allocation9_spill] sm:$0xff]  ;;  %3512 = vmatpush1.bf16.msra.mxu1 %v5799_v54 }
 0x26f   : > { %3513 = vmatprep.subr.bf16.mxu1 %v9255_v7  ;;  %v9337_v46 = vld [vmem:[#allocation12_spill] sm:$0xff] }
 0x270   : > { %1981 = vmatmul.mubr.bf16.gmra.mrb[80].mxu0 %v706_v40 }
 0x271   : > { %1988 = vmatprep.mubr.bf16.mxu0 %v734_v30  ;;  %v9336_v30 = vld [vmem:[#allocation11_spill] sm:$0xff] }
 0x272   : > { %3514 = vmatpush1.bf16.msra.mxu1 %v5800_v21  ;;  %v5809_v21 = vld [vmem:[%s8979_s2 + $0x68] sm:$0xff]  }
 0x273   : > { %3515 = vmatprep.subr.bf16.mxu1 %v9255_v7 }
 0x278   : > { %1989 = vmatmul.mubr.bf16.gmra.mrb[184].mxu0 %v707_v14  ;;  %v5801_v14 = vld [vmem:[%s8979_s2 + $0x28] sm:$0xff]  }
 0x279   : > { %1996 = vmatprep.mubr.bf16.mxu0 %v735_v26  ;;  %3516 = vmatpush1.bf16.msra.mxu1 %v5801_v14  ;;  %v9350_v14 = vld [vmem:[#allocation28_spill] sm:$0xff] }
 0x27a   : > { %3517 = vmatprep.subr.bf16.mxu1 %v9255_v7 }
 0x27b   : > { %v1749_v35 = vpop.f32.mrb[132].mxu0 }
 0x27c   : > { %v1751_v20 = vpop.f32.mrb[133].mxu0 }
 0x27d   : > { %v1752_v49 = vpop.f32.mrb[134].mxu0  ;;  %v5802_v20 = vld [vmem:[%s8979_s2 + $0x30] sm:$0xff]  }
 0x27e   : > { %v7241_v15 = vadd.f32 %v1752_v49, %v1528_v52  ;;  %v1754_v50 = vpop.f32.mrb[135].mxu0  ;;  %v9338_v52 = vld [vmem:[#allocation13_spill] sm:$0xff]  ;;  %3518 = vmatpush1.bf16.msra.mxu1 %v5802_v20 }
 0x27f   : > { %3519 = vmatprep.subr.bf16.mxu1 %v9255_v7  ;;  %v5811_v20 = vld [vmem:[%s8979_s2 + $0x78] sm:$0xff]  }
 0x280   : > { %1997 = vmatmul.mubr.bf16.gmra.mrb[88].mxu0 %v708_v27 }
 0x281   : > { %2004 = vmatprep.mubr.bf16.mxu0 %v736_v62 }
 0x288   : > { %2005 = vmatmul.mubr.bf16.gmra.mrb[188].mxu0 %v709_v18  ;;  %v749_v18 = vld [vmem:[#allocation2 + $0x19a] sm:$0xff] }
 0x289   : > { %2045 = vmatprep.mubr.bf16.mxu0 %v9329_v41 }
 0x28b   : > { %v1765_v16 = vpop.f32.mrb[136].mxu0 }
 0x28c   : > { %v7254_v12 = vadd.f32 %v1765_v16, %v1541_v5  ;;  %v1767_v34 = vpop.f32.mrb[137].mxu0  ;;  %v5804_v16 = vld [vmem:[%s8979_s2 + $0x40] sm:$0xff]  }
 0x28d   : > { %v1768_v24 = vpop.f32.mrb[138].mxu0  ;;  %v750_v34 = vld [vmem:[#allocation2 + $0x1a2] sm:$0xff] }
 0x28e   : > { %v7256_v3 = vadd.f32 %v1768_v24, %v1544_v33  ;;  %v1770_v25 = vpop.f32.mrb[139].mxu0  ;;  %v753_v33 = vpack.c.bf16 %v749_v18, %v7234_v4  ;;  %v751_v24 = vld [vmem:[#allocation2 + $0x1aa] sm:$0xff] }
 0x28f   : > { %v754_v25 = vpack.c.bf16 %v751_v24, %v750_v34  ;;  %v5806_v4 = vld [vmem:[%s8979_s2 + $0x50] sm:$0xff]  }
 0x290   : > { %2046 = vmatmul.mubr.bf16.vlgmr.msra.gmra.mrb[0].mxu0 %v9330_v60  ;;  %v9343_v60 = vld [vmem:[#allocation18_spill] sm:$0xff]  ;;  %5132 = vmatprep.mubr.bf16.mxu1 %v753_v33 }
 0x291   : > { %2053 = vmatprep.mubr.bf16.mxu0 %v9331_v22  ;;  %5133 = vmatmul.mubr.bf16.gmra.mrb[44].mxu1 %v754_v25  ;;  %v5813_v33 = vld [vmem:[%s8979_s2 + $0x200] sm:$0xff]  }
 0x292   : > { %5136 = vmatprep.subr.bf16.mxu0 %v5813_v33 }
 0x293   : > { %5137 = vmatpush3.bf16.msra.mxu0 %v5813_v33 }
 0x298   : > { %2054 = vmatmul.mubr.bf16.gmra.mrb[192].mxu0 %v9332_v53 }
 0x299   : > { %2061 = vmatprep.mubr.bf16.mxu0 %v9333_v9 }
 0x29b   : > { %v1781_v61 = vpop.f32.mrb[140].mxu0 }
 0x29c   : > { %v7276_v55 = vadd.f32 %v1781_v61, %v1557_v56  ;;  %v1783_v17 = vpop.f32.mrb[141].mxu0  ;;  %v5807_v61 = vld [vmem:[%s8979_s2 + $0x58] sm:$0xff]  }
 0x29d   : > { %v1784_v47 = vpop.f32.mrb[142].mxu0  ;;  %v9346_v17 = vld [vmem:[#allocation21_spill] sm:$0xff] }
 0x29e   : > { %v1786_v40 = vpop.f32.mrb[143].mxu0  ;;  %v5808_v47 = vld [vmem:[%s8979_s2 + $0x60] sm:$0xff]  }
 0x29f   : > { %v9347_v40 = vld [vmem:[#allocation22_spill] sm:$0xff] }
 0x2a0   : > { %2062 = vmatmul.mubr.bf16.gmra.mrb[8].mxu0 %v9334_v45  ;;  %v9349_v45 = vld [vmem:[#allocation25_spill] sm:$0xff] }
 0x2a1   : > { %2069 = vmatprep.mubr.bf16.mxu0 %v9335_v29 }
 0x2a8   : > { %2070 = vmatmul.mubr.bf16.gmra.mrb[196].mxu0 %v9336_v30 }
 0x2a9   : > { %2077 = vmatprep.mubr.bf16.mxu0 %v9337_v46 }
 0x2ab   : > { %v1830_v37 = vpop.f32.mrb[144].mxu0 }
 0x2ac   : > { %v1832_v11 = vpop.f32.mrb[145].mxu0 }
 0x2ad   : > { %v1833_v26 = vpop.f32.mrb[146].mxu0  ;;  %v5810_v11 = vld [vmem:[%s8979_s2 + $0x70] sm:$0xff]  }
 0x2ae   : > { %v7295_v35 = vadd.f32 %v1833_v26, %v7058_v13  ;;  %v1835_v58 = vpop.f32.mrb[147].mxu0  ;;  %v5803_v13 = vld [vmem:[%s8979_s2 + $0x38] sm:$0xff]  }
 0x2af   : > { %3520 = vmatpush1.bf16.msra.mxu1 %v5803_v13  ;;  %v9352_v13 = vld [vmem:[#allocation32_spill] sm:$0xff] }
 0x2b0   : > { %2078 = vmatmul.mubr.bf16.gmra.mrb[16].mxu0 %v9338_v52  ;;  %3521 = vmatprep.subr.bf16.mxu1 %v9255_v7 }
 0x2b1   : > { %2085 = vmatprep.mubr.bf16.mxu0 %v9339_v28  ;;  %v2679_v28 = vld [vmem:[#allocation3 + $0x1] sm:$0xff] }
 0x2b3   : > { %3522 = vmatpush1.bf16.msra.mxu1 %v5804_v16 }
 0x2b4   : > { %3523 = vmatprep.subr.bf16.mxu1 %v9255_v7 }
 0x2b8   : > { %2086 = vmatmul.mubr.bf16.gmra.mrb[200].mxu0 %v9340_v10  ;;  %v2680_v10 = vld [vmem:[#allocation3 + $0x9] sm:$0xff] }
 0x2b9   : > { %2093 = vmatprep.mubr.bf16.mxu0 %v9341_v48  ;;  %v2727_v48 = vpack.c.bf16 %v2680_v10, %v2679_v28  ;;  %v5822_v28 = vld [vmem:[%s8979_s2 + $0x238] sm:$0xff]  }
 0x2bb   : > { %v1846_v27 = vpop.f32.mrb[148].mxu0  ;;  %3537 = vmatprep.mubr.bf16.mxu1 %v2727_v48 }
 0x2bc   : > { %v7311_v49 = vadd.f32 %v1846_v27, %v7086_v39  ;;  %v1848_v62 = vpop.f32.mrb[149].mxu0  ;;  %v5805_v39 = vld [vmem:[%s8979_s2 + $0x48] sm:$0xff]   ;;  %v9353_v27 = vld [vmem:[#allocation33_spill] sm:$0xff] }
 0x2bd   : > { %v1849_v50 = vpop.f32.mrb[150].mxu0  ;;  %3524 = vmatpush1.bf16.msra.mxu1 %v5805_v39  ;;  %v7372_v62 = vld [vmem:[#allocation2] sm:$0xff]  ;;  %v5814_v39 = vld [vmem:[%s8979_s2 + $0x208] sm:$0xff]  }
 0x2be   : > { %v7314_v41 = vadd.f32 %v1849_v50, %v7098_v31  ;;  %v1851_v5 = vpop.f32.mrb[151].mxu0  ;;  %3525 = vmatprep.subr.bf16.mxu1 %v9255_v7  ;;  %v9344_v31 = vld [vmem:[#allocation19_spill] sm:$0xff]  ;;  %v7376_v50 = vpack.c.bf16 %v7372_v62, %v7372_v62  ;;  %5138 = vmatprep.subr.bf16.mxu0 %v5814_v39 }
 0x2bf   : > { %5139 = vmatpush3.bf16.msra.mxu0 %v5814_v39 }
 0x2c0   : > { %2094 = vmatmul.mubr.bf16.gmra.mrb[24].mxu0 %v9342_v57  ;;  %v9354_v57 = vld [vmem:[#allocation36_spill] sm:$0xff] }
 0x2c1   : > { %2101 = vmatprep.mubr.bf16.mxu0 %v9343_v60  ;;  %3526 = vmatpush1.bf16.msra.mxu1 %v5806_v4 }
 0x2c2   : > { %3527 = vmatprep.subr.bf16.mxu1 %v9255_v7 }
 0x2c5   : > { %3528 = vmatpush1.bf16.msra.mxu1 %v5807_v61  ;;  %v5816_v61 = vld [vmem:[%s8979_s2 + $0x88] sm:$0xff]  }
 0x2c6   : > { %3529 = vmatprep.subr.bf16.mxu1 %v9255_v7 }
 0x2c8   : > { %2102 = vmatmul.mubr.bf16.gmra.mrb[204].mxu0 %v9344_v31 }
 0x2c9   : > { %2109 = vmatprep.mubr.bf16.mxu0 %v9345_v23  ;;  %3530 = vmatpush1.bf16.msra.mxu1 %v5808_v47 }
 0x2ca   : > { %3531 = vmatprep.subr.bf16.mxu1 %v9255_v7 }
 0x2cb   : > { %v1862_v22 = vpop.f32.mrb[152].mxu0 }
 0x2cc   : > { %v7334_v53 = vadd.f32 %v1862_v22, %v7126_v44  ;;  %v1864_v32 = vpop.f32.mrb[153].mxu0  ;;  %v9348_v44 = vld [vmem:[#allocation24_spill] sm:$0xff] }
 0x2cd   : > { %v1865_v9 = vpop.f32.mrb[154].mxu0  ;;  %3532 = vmatpush1.bf16.msra.mxu1 %v5809_v21  ;;  %v5815_v22 = vld [vmem:[%s8979_s2 + $0x210] sm:$0xff]   ;;  %v5819_v21 = vld [vmem:[%s8979_s2 + $0x228] sm:$0xff]  }
 0x2ce   : > { %v1867_v56 = vpop.f32.mrb[155].mxu0  ;;  %3533 = vmatprep.subr.bf16.mxu1 %v9255_v7  ;;  %5140 = vmatprep.subr.bf16.mxu0 %v5815_v22  ;;  %v9356_v32 = vld [vmem:[#allocation40_spill] sm:$0xff]  ;;  %v5817_v9 = vld [vmem:[%s8979_s2 + $0x218] sm:$0xff]  }
 0x2cf   : > { %5141 = vmatpush3.bf16.msra.mxu0 %v5815_v22  ;;  %v9357_v56 = vld [vmem:[#allocation41_spill] sm:$0xff] }
 0x2d0   : > { %2110 = vmatmul.mubr.bf16.gmra.mrb[32].mxu0 %v9346_v17  ;;  %5142 = vmatprep.subr.bf16.mxu0 %v5817_v9 }
 0x2d1   : > { %2117 = vmatprep.mubr.bf16.mxu0 %v9347_v40  ;;  %3534 = vmatpush1.bf16.msra.mxu1 %v5810_v11 }
 0x2d2   : > { %3535 = vmatprep.subr.bf16.mxu1 %v9255_v7 }
 0x2d3   : > { %5143 = vmatpush3.bf16.msra.mxu0 %v5817_v9 }
 0x2d5   : > { %v5090_v26 = vpop.f32.mrb[0].mxu1  ;;  %3536 = vmatpush1.bf16.msra.mxu1 %v5811_v20  ;;  %v9360_v20 = vld [vmem:[#allocation48_spill] sm:$0xff] }
 0x2d6   : > { %v7360_v58 = vpop.f32.mrb[1].mxu1  ;;  %3730 = vmatprep.subr.bf16.mxu1 %v9255_v7 }
 0x2d7   : > { %v7362_v52 = vpop.f32.mrb[2].mxu1 }
 0x2d8   : > { %2118 = vmatmul.mubr.bf16.gmra.mrb[208].mxu0 %v9348_v44  ;;  %3538 = vmatmul.mubr.bf16.vlgmr.msra.gmra.mrb[48].mxu1 %v7376_v50  ;;  %v5818_v44 = vld [vmem:[%s8979_s2 + $0x220] sm:$0xff]  }
 0x2d9   : > { %2125 = vmatprep.mubr.bf16.mxu0 %v9349_v45  ;;  %5144 = vmatprep.subr.bf16.mxu0 %v5818_v44 }
 0x2da   : > { %5145 = vmatpush3.bf16.msra.mxu0 %v5818_v44  ;;  %v9367_v44 = vld [vmem:[#allocation61_spill] sm:$0xff] }
 0x2db   : > { %v1878_v54 = vpop.f32.mrb[156].mxu0  ;;  %5146 = vmatprep.subr.bf16.mxu0 %v5819_v21 }
 0x2dc   : > { %v1880_v29 = vpop.f32.mrb[157].mxu0 }
 0x2dd   : > { %v1881_v30 = vpop.f32.mrb[158].mxu0  ;;  %v9358_v29 = vld [vmem:[#allocation44_spill] sm:$0xff] }
 0x2de   : > { %v7352_v46 = vadd.f32 %v1881_v30, %v7141_v59  ;;  %v1883_v37 = vpop.f32.mrb[159].mxu0  ;;  %v7365_v59 = vpop.f32.mrb[3].mxu1  ;;  %5147 = vmatpush3.bf16.msra.mxu0 %v5819_v21 }
 0x2df   : > { %v7394_v60 = vpop.f32.mrb[4].mxu1  ;;  %v5821_v37 = vld [vmem:[%s8979_s2 + $0x230] sm:$0xff]  }
 0x2e0   : > { %2126 = vmatmul.mubr.bf16.gmra.mrb[40].mxu0 %v9350_v14  ;;  %v7396_v31 = vpop.f32.mrb[5].mxu1  ;;  %5148 = vmatprep.subr.bf16.mxu0 %v5821_v37 }
 0x2e1   : > { %2133 = vmatprep.mubr.bf16.mxu0 %v9351_v43  ;;  %v7398_v4 = vpop.f32.mrb[6].mxu1  ;;  %v5820_v43 = vld [vmem:[%s8979_s2 + $0x90] sm:$0xff]  }
 0x2e2   : > { %v2291_v23 = vpop.f32.mrb[7].mxu1  ;;  %5149 = vmatpush3.bf16.msra.mxu0 %v5821_v37  ;;  %v5825_v37 = vld [vmem:[%s8979_s2 + $0xa8] sm:$0xff]  }
 0x2e3   : > { %5150 = vmatprep.subr.bf16.mxu0 %v5822_v28  ;;  %v9365_v23 = vld [vmem:[#allocation57_spill] sm:$0xff] }
 0x2e5   : > { %v7427_v30 = vpop.f32.mrb[8].mxu1 }
 0x2e6   : > { %v2304_v11 = vpop.f32.mrb[9].mxu1  ;;  %5151 = vmatpush3.bf16.msra.mxu0 %v5822_v28  ;;  %v746_v28 = vpack.c.bf16 %v7243_v1, %v7232_v38  ;;  %v5826_v38 = vld [vmem:[%s8979_s2 + $0xb0] sm:$0xff]  }
 0x2e7   : > { %v5099_v14 = vpop.f32.mrb[10].mxu1 }
 0x2e8   : > { %2134 = vmatmul.mubr.bf16.gmra.mrb[212].mxu0 %v9352_v13  ;;  %v7435_v26 = vpop.f32.mrb[11].mxu1  ;;  %v9361_v13 = vld [vmem:[#allocation49_spill] sm:$0xff] }
 0x2e9   : > { %2141 = vmatprep.mubr.bf16.mxu0 %v9353_v27 }
 0x2eb   : > { %v1894_v18 = vpop.f32.mrb[160].mxu0 }
 0x2ec   : > { %v7381_v5 = vadd.f32 %v1894_v18, %v7152_v63  ;;  %v1896_v16 = vpop.f32.mrb[161].mxu0  ;;  %v9355_v63 = vld [vmem:[#allocation37_spill] sm:$0xff] }
 0x2ed   : > { %v1897_v34 = vpop.f32.mrb[162].mxu0  ;;  %v5102_v10 = vpop.f32.mrb[12].mxu1 }
 0x2ee   : > { %v7387_v24 = vadd.f32 %v1897_v34, %v7160_v19  ;;  %v1899_v25 = vpop.f32.mrb[163].mxu0  ;;  %v5812_v19 = vld [vmem:[%s8979_s2 + $0x80] sm:$0xff]   ;;  %v9362_v34 = vld [vmem:[#allocation52_spill] sm:$0xff]  ;;  %v7451_v39 = vpop.f32.mrb[13].mxu1 }
 0x2ef   : > { %3731 = vmatpush1.bf16.msra.mxu1 %v5812_v19  ;;  %v9363_v25 = vld [vmem:[#allocation53_spill] sm:$0xff] }
 0x2f0   : > { %2142 = vmatmul.mubr.bf16.gmra.mrb[48].mxu0 %v9354_v57  ;;  %3732 = vmatprep.subr.bf16.mxu1 %v9255_v7  ;;  %v5823_v57 = vld [vmem:[%s8979_s2 + $0x98] sm:$0xff]  }
 0x2f1   : > { %2149 = vmatprep.mubr.bf16.mxu0 %v9355_v63  ;;  %v7453_v63 = vpop.f32.mrb[14].mxu1 }
 0x2f2   : > { %v7455_v19 = vpop.f32.mrb[15].mxu1 }
 0x2f3   : > { %3733 = vmatpush1.bf16.msra.mxu1 %v5816_v61 }
 0x2f4   : > { %3734 = vmatprep.subr.bf16.mxu1 %v9255_v7 }
 0x2f7   : > { %3735 = vmatpush1.bf16.msra.mxu1 %v5820_v43 }
 0x2f8   : > { %2150 = vmatmul.mubr.bf16.gmra.mrb[216].mxu0 %v9356_v32  ;;  %3736 = vmatprep.subr.bf16.mxu1 %v9255_v7 }
 0x2f9   : > { %2157 = vmatprep.mubr.bf16.mxu0 %v9357_v56 }
 0x2fb   : > { %v1910_v17 = vpop.f32.mrb[164].mxu0  ;;  %3737 = vmatpush1.bf16.msra.mxu1 %v5823_v57 }
 0x2fc   : > { %v7416_v47 = vadd.f32 %v1910_v17, %v7172_v8  ;;  %v1912_v40 = vpop.f32.mrb[165].mxu0  ;;  %v9359_v8 = vld [vmem:[#allocation45_spill] sm:$0xff]  ;;  %3738 = vmatprep.subr.bf16.mxu1 %v9255_v7 }
 0x2fd   : > { %v1913_v45 = vpop.f32.mrb[166].mxu0  ;;  %v9366_v40 = vld [vmem:[#allocation60_spill] sm:$0xff] }
 0x2fe   : > { %v1915_v54 = vpop.f32.mrb[167].mxu0  ;;  %v7468_v45 = vpop.f32.mrb[16].mxu1 }
 0x2ff   : > { %v7470_v54 = vpop.f32.mrb[17].mxu1 }
 0x300   : > { %2158 = vmatmul.mubr.bf16.gmra.mrb[56].mxu0 %v9358_v29  ;;  %v5824_v29 = vld [vmem:[%s8979_s2 + $0xa0] sm:$0xff]  }
 0x301   : > { %2165 = vmatprep.mubr.bf16.mxu0 %v9359_v8  ;;  %3739 = vmatpush1.bf16.msra.mxu1 %v5824_v29  ;;  %v9369_v8 = vld [vmem:[#allocation65_spill] sm:$0xff] }
 0x302   : > { %3740 = vmatprep.subr.bf16.mxu1 %v9255_v7 }
 0x305   : > { %3741 = vmatpush1.bf16.msra.mxu1 %v5825_v37 }
 0x306   : > { %3742 = vmatprep.subr.bf16.mxu1 %v9255_v7 }
 0x308   : > { %2166 = vmatmul.mubr.bf16.gmra.mrb[220].mxu0 %v9360_v20 }
 0x309   : > { %2173 = vmatprep.mubr.bf16.mxu0 %v9361_v13  ;;  %v9370_v13 = vld [vmem:[#allocation66_spill] sm:$0xff]  ;;  %3743 = vmatpush1.bf16.msra.mxu1 %v5826_v38 }
 0x30a   : > { %3744 = vmatprep.subr.bf16.mxu1 %v9255_v7 }
 0x30b   : > { %v1926_v48 = vpop.f32.mrb[168].mxu0 }
 0x30c   : > { %v1928_v27 = vpop.f32.mrb[169].mxu0  ;;  %v743_v48 = vld [vmem:[#allocation2 + $0x199] sm:$0xff] }
 0x30d   : > { %v1929_v18 = vpop.f32.mrb[170].mxu0  ;;  %v5892_v27 = vld [vmem:[#allocation2 + $0x180] sm:$0xff] }
 0x30e   : > { %v7444_v16 = vadd.f32 %v1929_v18, %v7192_v6  ;;  %v1931_v33 = vpop.f32.mrb[171].mxu0  ;;  %v9364_v6 = vld [vmem:[#allocation56_spill] sm:$0xff]  ;;  %v5893_v18 = vld [vmem:[#allocation2 + $0x188] sm:$0xff] }
 0x30f   : > { %v740_v33 = vpack.c.bf16 %v5893_v18, %v5892_v27  ;;  %v5828_v18 = vld [vmem:[%s8979_s2 + $0xc0] sm:$0xff]  }
 0x310   : > { %2174 = vmatmul.mubr.bf16.gmra.mrb[64].mxu0 %v9362_v34 }
 0x311   : > { %2181 = vmatprep.mubr.bf16.mxu0 %v9363_v25 }
 0x318   : > { %2182 = vmatmul.mubr.bf16.gmra.mrb[224].mxu0 %v9364_v6 }
 0x319   : > { %2189 = vmatprep.mubr.bf16.mxu0 %v9365_v23  ;;  %v744_v23 = vld [vmem:[#allocation2 + $0x1a1] sm:$0xff] }
 0x31b   : > { %v1942_v22 = vpop.f32.mrb[172].mxu0 }
 0x31c   : > { %v7461_v32 = vadd.f32 %v1942_v22, %v7206_v36  ;;  %v1944_v9 = vpop.f32.mrb[173].mxu0  ;;  %v7475_v36 = vpop.f32.mrb[18].mxu1  ;;  %v745_v22 = vld [vmem:[#allocation2 + $0x1a9] sm:$0xff] }
 0x31d   : > { %v1945_v56 = vpop.f32.mrb[174].mxu0  ;;  %v2339_v21 = vpop.f32.mrb[19].mxu1 }
 0x31e   : > { %v7464_v61 = vadd.f32 %v1945_v56, %v7212_v42  ;;  %v1947_v17 = vpop.f32.mrb[175].mxu0  ;;  %v9368_v42 = vld [vmem:[#allocation64_spill] sm:$0xff]  ;;  %v7490_v34 = vpop.f32.mrb[20].mxu1 }
 0x31f   : > { %v2352_v25 = vpop.f32.mrb[21].mxu1  ;;  %v5894_v17 = vld [vmem:[#allocation2 + $0x190] sm:$0xff] }
 0x320   : > { %2190 = vmatmul.mubr.bf16.gmra.mrb[72].mxu0 %v9366_v40  ;;  %v5111_v57 = vpop.f32.mrb[22].mxu1 }
 0x321   : > { %2197 = vmatprep.mubr.bf16.mxu0 %v9367_v44  ;;  %v7496_v1 = vpop.f32.mrb[23].mxu1  ;;  %v748_v44 = vpack.c.bf16 %v745_v22, %v744_v23 }
 0x322   : > { %v5114_v6 = vpop.f32.mrb[24].mxu1 }
 0x328   : > { %2198 = vmatmul.mubr.bf16.gmra.mrb[228].mxu0 %v9368_v42  ;;  %v5827_v42 = vld [vmem:[%s8979_s2 + $0xb8] sm:$0xff]  }
 0x329   : > { %2205 = vmatprep.mubr.bf16.mxu0 %v9369_v8  ;;  %v7506_v8 = vpop.f32.mrb[25].mxu1  ;;  %3745 = vmatpush1.bf16.msra.mxu1 %v5827_v42  ;;  %v2681_v42 = vld [vmem:[#allocation3 + $0x11] sm:$0xff] }
 0x32a   : > { %v7508_v37 = vpop.f32.mrb[26].mxu1  ;;  %3746 = vmatprep.subr.bf16.mxu1 %v9255_v7 }
 0x32b   : > { %v1958_v11 = vpop.f32.mrb[176].mxu0 }
 0x32c   : > { %v7484_v14 = vadd.f32 %v1958_v11, %v7220_v2  ;;  %v1960_v43 = vpop.f32.mrb[177].mxu0  ;;  %v747_v2 = vpack.c.bf16 %v743_v48, %v7245_v0  ;;  %v741_v0 = vpack.c.bf16 %v7372_v62, %v5894_v17  ;;  %v7510_v11 = vpop.f32.mrb[27].mxu1 }
 0x32d   : > { %v1961_v20 = vpop.f32.mrb[178].mxu0  ;;  %v7520_v48 = vpop.f32.mrb[28].mxu1  ;;  %3747 = vmatpush1.bf16.msra.mxu1 %v5828_v18 }
 0x32e   : > { %v1963_v10 = vpop.f32.mrb[179].mxu0  ;;  %v7522_v27 = vpop.f32.mrb[29].mxu1  ;;  %3748 = vmatprep.subr.bf16.mxu1 %v9255_v7 }
 0x330   : > { %2206 = vmatmul.mubr.bf16.gmra.mrb[80].mxu0 %v9370_v13 }
 0x331   : > { %2213 = vmatprep.mubr.bf16.mxu0 %v746_v28 }
 0x338   : > { %2214 = vmatmul.mubr.bf16.gmra.mrb[232].mxu0 %v740_v33  ;;  %v7527_v33 = vpop.f32.mrb[30].mxu1 }
 0x339   : > { %2221 = vmatprep.mubr.bf16.mxu0 %v747_v2 }
 0x33b   : > { %v1974_v9 = vpop.f32.mrb[180].mxu0 }
 0x33c   : > { %v1976_v56 = vpop.f32.mrb[181].mxu0 }
 0x33d   : > { %v1977_v40 = vpop.f32.mrb[182].mxu0 }
 0x33e   : > { %v7501_v29 = vadd.f32 %v1977_v40, %v7241_v15  ;;  %v1979_v21 = vpop.f32.mrb[183].mxu0 }
 0x340   : > { %2222 = vmatmul.mubr.bf16.gmra.mrb[88].mxu0 %v741_v0 }
 0x341   : > { %2229 = vmatprep.mubr.bf16.mxu0 %v748_v44 }
 0x348   : > { %2230 = vmatmul.mubr.bf16.gmra.mrb[236].mxu0 %v7376_v50  ;;  %v2387_v50 = vpop.f32.mrb[31].mxu1 }
 0x349   : > { %v7538_v9 = vpop.f32.mrb[32].mxu1 }
 0x34a   : > { %v2400_v17 = vpop.f32.mrb[33].mxu1 }
 0x34b   : > { %v1990_v15 = vpop.f32.mrb[184].mxu0  ;;  %v5123_v21 = vpop.f32.mrb[34].mxu1 }
 0x34c   : > { %v7515_v43 = vadd.f32 %v1990_v15, %v7254_v12  ;;  %v1992_v20 = vpop.f32.mrb[185].mxu0  ;;  %v5829_v12 = vld [vmem:[%s8979_s2 + $0xc8] sm:$0xff]   ;;  %v7550_v15 = vpop.f32.mrb[35].mxu1 }
 0x34d   : > { %v1993_v28 = vpop.f32.mrb[186].mxu0  ;;  %3749 = vmatpush1.bf16.msra.mxu1 %v5829_v12 }
 0x34e   : > { %v7518_v10 = vadd.f32 %v1993_v28, %v7256_v3  ;;  %v1995_v13 = vpop.f32.mrb[187].mxu0  ;;  %3750 = vmatprep.subr.bf16.mxu1 %v9255_v7  ;;  %v5126_v28 = vpop.f32.mrb[36].mxu1 }
 0x35b   : > { %v2006_v3 = vpop.f32.mrb[188].mxu0 }
 0x35c   : > { %v7534_v2 = vadd.f32 %v2006_v3, %v7276_v55  ;;  %v2008_v25 = vpop.f32.mrb[189].mxu0  ;;  %v7544_v55 = vld [vmem:[%s8980_s3] ss:$0 sm:$0xff] }
 0x35d   : > { %v2009_v57 = vpop.f32.mrb[190].mxu0 }
 0x35e   : > { %v2011_v38 = vpop.f32.mrb[191].mxu0 }
 0x363   : > { %v2047_v6 = vpop.f32.mrb[0].mxu0 }
 0x364   : > { %v5216_v23 = vadd.f32 %v7042_v51, %v2047_v6  ;;  %v2049_v22 = vpop.f32.mrb[1].mxu0  ;;  %v5830_v51 = vld [vmem:[%s8979_s2 + $0xd0] sm:$0xff]  }
 0x365   : > { %v2050_v56 = vpop.f32.mrb[2].mxu0  ;;  %3751 = vmatpush1.bf16.msra.mxu1 %v5830_v51 }
 0x366   : > { %v2273_v0 = vadd.f32 %v5216_v23, %v7360_v58  ;;  %v5217_v40 = vadd.f32 %v7544_v55, %v2050_v56  ;;  %v2052_v44 = vpop.f32.mrb[3].mxu0  ;;  %3752 = vmatprep.subr.bf16.mxu1 %v9255_v7  ;;  %v5831_v56 = vld [vmem:[%s8979_s2 + $0xd8] sm:$0xff]  }
 0x368   : > { %v7552_v20 = vmax.f32 %v2273_v0, 0.0  ;;  %v2276_v58 = vadd.f32 %v5217_v40, %v7365_v59 }
 0x369   : > { %3753 = vmatpush1.bf16.msra.mxu1 %v5831_v56 }
 0x36a   : > { %9371 = vst [vmem:[#allocation72_spill] sm:$0xff] %v7552_v20  ;;  %2559 = vst [vmem:[#allocation3 + $0x19] sm:$0xff] %v7552_v20  ;;  %v7557_v13 = vmax.f32 %v2276_v58, 0.0  ;;  %v2728_v18 = vpack.c.bf16 %v7552_v20, %v2681_v42  ;;  %3754 = vmatprep.subr.bf16.mxu1 %v9255_v7 }
 0x36b   : > { %v2055_v50 = vpop.f32.mrb[192].mxu0 }
 0x36c   : > { %9372 = vst [vmem:[#allocation67_spill] sm:$0xff] %v7557_v13  ;;  %2560 = vst [vmem:[#allocation3 + $0x21] sm:$0xff] %v7557_v13  ;;  %v2057_v12 = vpop.f32.mrb[193].mxu0  ;;  %3545 = vmatprep.mubr.bf16.mxu1 %v2728_v18  ;;  %v2729_v0 = vpack.c.bf16 %v7372_v62, %v7557_v13 }
 0x36d   : > { %v2058_v25 = vpop.f32.mrb[194].mxu0 }
 0x36e   : > { %v2059_v59 = vadd.f32 %v2058_v25, %v7295_v35  ;;  %v2060_v57 = vpop.f32.mrb[195].mxu0  ;;  %v7576_v35 = vpop.f32.mrb[37].mxu1 }
 0x36f   : > { %v7581_v51 = vpop.f32.mrb[38].mxu1 }
 0x370   : > { %v2284_v38 = vadd.f32 %v7362_v52, %v2059_v59  ;;  %v7587_v18 = vpop.f32.mrb[39].mxu1 }
 0x371   : > { %v7565_v6 = vld [vmem:[#allocation3 + $0x18] sm:$0xff] }
 0x372   : > { %v2466_v23 = vmax.f32 %v2284_v38, 0.0  ;;  %v2656_v22 = vpack.c.bf16 %v7565_v6, %v7372_v62 }
 0x373   : > { %v2063_v17 = vpop.f32.mrb[8].mxu0  ;;  %v7574_v40 = vld [vmem:[#allocation3 + $0x20] sm:$0xff]  ;;  %v7593_v59 = vld [vmem:[#allocation3 + $0x28] sm:$0xff] }
 0x374   : > { %v7578_v44 = vld [vmem:[#allocation3 + $0x1a] sm:$0xff]  ;;  %2562 = vst [vmem:[#allocation3 + $0x31] sm:$0xff] %v2466_v23  ;;  %v5218_v52 = vadd.f32 %v7544_v55, %v2063_v17  ;;  %v2065_v21 = vpop.f32.mrb[9].mxu0  ;;  %3546 = vmatmul.mubr.bf16.gmra.mrb[52].mxu1 %v2656_v22  ;;  %v7585_v58 = vld [vmem:[#allocation3 + $0x22] sm:$0xff]  ;;  %v2657_v38 = vpack.c.bf16 %v7593_v59, %v7574_v40 }
 0x375   : > { %9373 = vst [vmem:[#allocation68_spill] sm:$0xff] %v7578_v44  ;;  %9374 = vst [vmem:[#allocation69_spill] sm:$0xff] %v7585_v58  ;;  %v2066_v28 = vpop.f32.mrb[10].mxu0  ;;  %3553 = vmatprep.mubr.bf16.mxu1 %v2729_v0 }
 0x376   : > { %v2289_v12 = vadd.f32 %v5218_v52, %v7396_v31  ;;  %v2068_v25 = vpop.f32.mrb[11].mxu0  ;;  %v5832_v31 = vld [vmem:[%s8979_s2 + $0xe0] sm:$0xff]  }
 0x377   : > { %3755 = vmatpush1.bf16.msra.mxu1 %v5832_v31 }
 0x378   : > { %v2467_v57 = vmax.f32 %v2289_v12, 0.0  ;;  %3756 = vmatprep.subr.bf16.mxu1 %v9255_v7 }
 0x37a   : > { %2563 = vst [vmem:[#allocation3 + $0x39] sm:$0xff] %v2467_v57  ;;  %v7597_v22 = vpack.c.bf16 %v2467_v57, %v2466_v23 }
 0x37b   : > { %v2071_v56 = vpop.f32.mrb[196].mxu0  ;;  %v7599_v17 = vld [vmem:[#allocation3 + $0x30] sm:$0xff] }
 0x37c   : > { %9375 = vst [vmem:[#allocation71_spill] sm:$0xff] %v7597_v22  ;;  %v2072_v0 = vadd.f32 %v2071_v56, %v7311_v49  ;;  %v2073_v21 = vpop.f32.mrb[197].mxu0  ;;  %3554 = vmatmul.mubr.bf16.gmra.mrb[56].mxu1 %v2657_v38 }
 0x37d   : > { %v2074_v52 = vpop.f32.mrb[198].mxu0  ;;  %3561 = vmatprep.mubr.bf16.mxu1 %v7597_v22  ;;  %v7633_v21 = vpop.f32.mrb[40].mxu1 }
 0x37e   : > { %v2297_v28 = vadd.f32 %v7394_v60, %v2072_v0  ;;  %v2075_v12 = vadd.f32 %v2074_v52, %v7314_v41  ;;  %v2076_v25 = vpop.f32.mrb[199].mxu0  ;;  %v7635_v52 = vld [vmem:[#allocation3 + $0x2a] sm:$0xff] }
 0x380   : > { %v7607_v23 = vmax.f32 %v2297_v28, 0.0  ;;  %v2300_v57 = vadd.f32 %v7398_v4, %v2075_v12  ;;  %v7637_v12 = vpop.f32.mrb[41].mxu1 }
 0x381   : > { %v7610_v3 = vld [vmem:[#allocation3 + $0x32] sm:$0xff]  ;;  %v7612_v49 = vld [vmem:[#allocation3 + $0x3a] sm:$0xff] }
 0x382   : > { %9376 = vst [vmem:[#allocation23_spill] sm:$0xff] %v7607_v23  ;;  %9377 = vst [vmem:[#allocation26_spill] sm:$0xff] %v7610_v3  ;;  %v7614_v38 = vld [vmem:[#allocation3 + $0x38] sm:$0xff]  ;;  %v7617_v56 = vmax.f32 %v2300_v57, 0.0  ;;  %v7621_v60 = vpack.c.bf16 %v7612_v49, %v7610_v3  ;;  %v7629_v4 = vpack.c.bf16 %v7607_v23, %v7372_v62  ;;  %v7631_v0 = vld [vmem:[#allocation3 + $0x40] sm:$0xff] }
 0x383   : > { %9378 = vst [vmem:[#allocation70_spill] sm:$0xff] %v7612_v49  ;;  %2565 = vst [vmem:[#allocation3 + $0x49] sm:$0xff] %v7607_v23  ;;  %v7625_v41 = vpack.c.bf16 %v7614_v38, %v7599_v17  ;;  %v2079_v28 = vpop.f32.mrb[16].mxu0 }
 0x384   : > { %9379 = vst [vmem:[#allocation27_spill] sm:$0xff] %v7617_v56  ;;  %9381 = vst [vmem:[#allocation75_spill] sm:$0xff] %v7629_v4  ;;  %v2081_v50 = vpop.f32.mrb[17].mxu0  ;;  %5152 = vmatprep.mubr.bf16.mxu0 %v7621_v60  ;;  %v7649_v28 = vpop.f32.mrb[42].mxu1 }
 0x385   : > { %9380 = vst [vmem:[#allocation30_spill] sm:$0xff] %v7625_v41  ;;  %2566 = vst [vmem:[#allocation3 + $0x51] sm:$0xff] %v7617_v56  ;;  %3562 = vmatmul.mubr.bf16.gmra.mrb[60].mxu1 %v7625_v41  ;;  %v2082_v25 = vpop.f32.mrb[18].mxu0  ;;  %v2435_v57 = vpop.f32.mrb[43].mxu1 }
 0x386   : > { %3569 = vmatprep.mubr.bf16.mxu1 %v7629_v4  ;;  %v5219_v22 = vadd.f32 %v7544_v55, %v2082_v25  ;;  %v2084_v50 = vpop.f32.mrb[19].mxu0  ;;  %v5833_v57 = vld [vmem:[%s8979_s2 + $0xe8] sm:$0xff]  }
 0x387   : > { %3757 = vmatpush1.bf16.msra.mxu1 %v5833_v57 }
 0x388   : > { %v2308_v41 = vadd.f32 %v5219_v22, %v7435_v26  ;;  %v7672_v26 = vpack.c.bf16 %v7372_v62, %v7617_v56  ;;  %3758 = vmatprep.subr.bf16.mxu1 %v9255_v7 }
 0x38a   : > { %v7657_v3 = vld [vmem:[#allocation3 + $0x48] sm:$0xff]  ;;  %v2472_v13 = vmax.f32 %v2308_v41, 0.0  ;;  %9384 = vst [vmem:[#allocation31_spill] sm:$0xff] %v7672_v26 }
 0x38b   : > { %v7659_v20 = vld [vmem:[#allocation3 + $0x42] sm:$0xff]  ;;  %v7663_v42 = vpack.c.bf16 %v7657_v3, %v7631_v0  ;;  %v2087_v25 = vpop.f32.mrb[200].mxu0 }
 0x38c   : > { %9382 = vst [vmem:[#allocation74_spill] sm:$0xff] %v7659_v20  ;;  %v7674_v22 = vld [vmem:[#allocation3 + $0x4a] sm:$0xff]  ;;  %2568 = vst [vmem:[#allocation3 + $0x61] sm:$0xff] %v2472_v13  ;;  %v2088_v41 = vadd.f32 %v2087_v25, %v7334_v53  ;;  %v2089_v4 = vpop.f32.mrb[201].mxu0  ;;  %v7684_v31 = vld [vmem:[#allocation3 + $0x52] sm:$0xff] }
 0x38d   : > { %9383 = vst [vmem:[#allocation73_spill] sm:$0xff] %v7663_v42  ;;  %9385 = vst [vmem:[#allocation34_spill] sm:$0xff] %v7674_v22  ;;  %v7676_v50 = vld [vmem:[#allocation3 + $0x50] sm:$0xff]  ;;  %3570 = vmatmul.mubr.bf16.gmra.mrb[64].mxu1 %v7663_v42  ;;  %v7682_v23 = vpack.c.bf16 %v7674_v22, %v7659_v20  ;;  %v2090_v49 = vpop.f32.mrb[202].mxu0  ;;  %v7694_v25 = vld [vmem:[#allocation3 + $0x58] sm:$0xff] }
 0x38e   : > { %9387 = vst [vmem:[#allocation38_spill] sm:$0xff] %v7684_v31  ;;  %3577 = vmatprep.mubr.bf16.mxu1 %v7672_v26  ;;  %v2313_v53 = vadd.f32 %v7427_v30, %v2088_v41  ;;  %v2092_v4 = vpop.f32.mrb[203].mxu0  ;;  %9388 = vst [vmem:[#allocation77_spill] sm:$0xff] %v7694_v25  ;;  %v7698_v49 = vpack.c.bf16 %v7694_v25, %v7676_v50 }
 0x38f   : > { %9386 = vst [vmem:[#allocation35_spill] sm:$0xff] %v7682_v23  ;;  %5153 = vmatmul.mubr.bf16.vlgmr.msra.gmra.mrb[240].mxu0 %v7682_v23 }
 0x390   : > { %v2473_v42 = vmax.f32 %v2313_v53, 0.0  ;;  %9389 = vst [vmem:[#allocation76_spill] sm:$0xff] %v7698_v49 }
 0x392   : > { %2569 = vst [vmem:[#allocation3 + $0x69] sm:$0xff] %v2473_v42  ;;  %v7700_v56 = vpack.c.bf16 %v2473_v42, %v2472_v13  ;;  %v7715_v13 = vpop.f32.mrb[44].mxu1 }
 0x393   : > { %v2095_v57 = vpop.f32.mrb[24].mxu0  ;;  %v7702_v26 = vld [vmem:[#allocation3 + $0x5a] sm:$0xff] }
 0x394   : > { %9390 = vst [vmem:[#allocation39_spill] sm:$0xff] %v7700_v56  ;;  %9391 = vst [vmem:[#allocation42_spill] sm:$0xff] %v7702_v26  ;;  %v7704_v44 = vld [vmem:[#allocation3 + $0x60] sm:$0xff]  ;;  %v5220_v30 = vadd.f32 %v7544_v55, %v2095_v57  ;;  %v2097_v41 = vpop.f32.mrb[25].mxu0  ;;  %v7710_v53 = vpack.c.bf16 %v7702_v26, %v7684_v31 }
 0x395   : > { %9392 = vst [vmem:[#allocation78_spill] sm:$0xff] %v7704_v44  ;;  %3578 = vmatmul.mubr.bf16.gmra.mrb[68].mxu1 %v7698_v49  ;;  %v2098_v22 = vpop.f32.mrb[26].mxu0  ;;  %v2448_v41 = vpop.f32.mrb[45].mxu1  ;;  %v5834_v49 = vld [vmem:[%s8979_s2 + $0xf0] sm:$0xff]  }
 0x396   : > { %9393 = vst [vmem:[#allocation81_spill] sm:$0xff] %v7710_v53  ;;  %3585 = vmatprep.mubr.bf16.mxu1 %v7700_v56  ;;  %v2321_v42 = vadd.f32 %v5220_v30, %v7451_v39  ;;  %v5221_v20 = vadd.f32 %v7544_v55, %v2098_v22  ;;  %v2100_v57 = vpop.f32.mrb[27].mxu0  ;;  %5156 = vmatprep.mubr.bf16.mxu0 %v7710_v53  ;;  %v5135_v31 = vpop.f32.mrb[46].mxu1  ;;  %v5835_v53 = vld [vmem:[%s8979_s2 + $0xf8] sm:$0xff]  }
 0x397   : > { %3759 = vmatpush1.bf16.msra.mxu1 %v5834_v49  ;;  %v7726_v56 = vpop.f32.mrb[47].mxu1 }
 0x398   : > { %v7723_v58 = vmax.f32 %v2321_v42, 0.0  ;;  %v2324_v4 = vadd.f32 %v5221_v20, %v7455_v19  ;;  %3760 = vmatprep.subr.bf16.mxu1 %v9255_v7 }
 0x399   : > { %v7728_v23 = vld [vmem:[#allocation3 + $0x62] sm:$0xff]  ;;  %v7730_v39 = vld [vmem:[#allocation3 + $0x6a] sm:$0xff] }
 0x39a   : > { %9394 = vst [vmem:[#allocation86_spill] sm:$0xff] %v7723_v58  ;;  %9395 = vst [vmem:[#allocation43_spill] sm:$0xff] %v7728_v23  ;;  %v7732_v22 = vld [vmem:[#allocation3 + $0x68] sm:$0xff]  ;;  %v7736_v30 = vmax.f32 %v2324_v4, 0.0  ;;  %v7740_v31 = vpack.c.bf16 %v7730_v39, %v7728_v23  ;;  %v7748_v20 = vpack.c.bf16 %v7723_v58, %v7372_v62  ;;  %v7750_v49 = vld [vmem:[#allocation3 + $0x70] sm:$0xff] }
 0x39b   : > { %9396 = vst [vmem:[#allocation46_spill] sm:$0xff] %v7730_v39  ;;  %9397 = vst [vmem:[#allocation82_spill] sm:$0xff] %v7732_v22  ;;  %v7744_v19 = vpack.c.bf16 %v7732_v22, %v7704_v44  ;;  %v2103_v42 = vpop.f32.mrb[204].mxu0  ;;  %3761 = vmatpush1.bf16.msra.mxu1 %v5835_v53 }
 0x39c   : > { %2571 = vst [vmem:[#allocation3 + $0x79] sm:$0xff] %v7723_v58  ;;  %9398 = vst [vmem:[#allocation83_spill] sm:$0xff] %v7736_v30  ;;  %v2105_v41 = vpop.f32.mrb[205].mxu0  ;;  %5157 = vmatmul.mubr.bf16.gmra.mrb[244].mxu0 %v7740_v31  ;;  %3955 = vmatprep.subr.bf16.mxu1 %v9255_v7 }
 0x39d   : > { %9399 = vst [vmem:[#allocation79_spill] sm:$0xff] %v7744_v19  ;;  %9400 = vst [vmem:[#allocation80_spill] sm:$0xff] %v7748_v20  ;;  %3586 = vmatmul.mubr.bf16.gmra.mrb[72].mxu1 %v7744_v19  ;;  %v2106_v25 = vpop.f32.mrb[206].mxu0 }
 0x39e   : > { %2572 = vst [vmem:[#allocation3 + $0x81] sm:$0xff] %v7736_v30  ;;  %3593 = vmatprep.mubr.bf16.mxu1 %v7748_v20  ;;  %v2107_v42 = vadd.f32 %v2106_v25, %v7352_v46  ;;  %v2108_v44 = vpop.f32.mrb[207].mxu0 }
 0x3a0   : > { %v2332_v57 = vadd.f32 %v7453_v63, %v2107_v42  ;;  %v7779_v63 = vpack.c.bf16 %v7372_v62, %v7736_v30 }
 0x3a2   : > { %v2478_v41 = vmax.f32 %v2332_v57, 0.0  ;;  %9403 = vst [vmem:[#allocation84_spill] sm:$0xff] %v7779_v63 }
 0x3a3   : > { %v7764_v22 = vld [vmem:[#allocation3 + $0x78] sm:$0xff]  ;;  %v2111_v46 = vpop.f32.mrb[32].mxu0 }
 0x3a4   : > { %v7766_v4 = vld [vmem:[#allocation3 + $0x72] sm:$0xff]  ;;  %v7770_v26 = vpack.c.bf16 %v7764_v22, %v7750_v49  ;;  %2574 = vst [vmem:[#allocation3 + $0x91] sm:$0xff] %v2478_v41  ;;  %v5222_v57 = vadd.f32 %v7544_v55, %v2111_v46  ;;  %v2113_v42 = vpop.f32.mrb[33].mxu0 }
 0x3a5   : > { %9401 = vst [vmem:[#allocation47_spill] sm:$0xff] %v7766_v4  ;;  %v7781_v44 = vld [vmem:[#allocation3 + $0x7a] sm:$0xff]  ;;  %v7791_v20 = vld [vmem:[#allocation3 + $0x82] sm:$0xff]  ;;  %v2114_v30 = vpop.f32.mrb[34].mxu0 }
 0x3a6   : > { %9402 = vst [vmem:[#allocation50_spill] sm:$0xff] %v7770_v26  ;;  %9404 = vst [vmem:[#allocation87_spill] sm:$0xff] %v7781_v44  ;;  %v7783_v25 = vld [vmem:[#allocation3 + $0x80] sm:$0xff]  ;;  %3594 = vmatmul.mubr.bf16.gmra.mrb[76].mxu1 %v7770_v26  ;;  %v7789_v19 = vpack.c.bf16 %v7781_v44, %v7766_v4  ;;  %v2337_v46 = vadd.f32 %v5222_v57, %v7470_v54  ;;  %v2116_v42 = vpop.f32.mrb[35].mxu0  ;;  %v7801_v26 = vld [vmem:[#allocation3 + $0x88] sm:$0xff] }
 0x3a7   : > { %9405 = vst [vmem:[#allocation51_spill] sm:$0xff] %v7791_v20  ;;  %3601 = vmatprep.mubr.bf16.mxu1 %v7779_v63  ;;  %v7805_v30 = vpack.c.bf16 %v7801_v26, %v7783_v25 }
 0x3a8   : > { %5160 = vmatprep.mubr.bf16.mxu0 %v7789_v19  ;;  %v2479_v4 = vmax.f32 %v2337_v46, 0.0 }
 0x3a9   : > { %9406 = vst [vmem:[#allocation54_spill] sm:$0xff] %v7805_v30 }
 0x3aa   : > { %2575 = vst [vmem:[#allocation3 + $0x99] sm:$0xff] %v2479_v4  ;;  %v7807_v58 = vpack.c.bf16 %v2479_v4, %v2478_v41 }
 0x3ab   : > { %v2119_v53 = vpop.f32.mrb[208].mxu0  ;;  %v7809_v63 = vld [vmem:[#allocation3 + $0x8a] sm:$0xff] }
 0x3ac   : > { %9407 = vst [vmem:[#allocation88_spill] sm:$0xff] %v7807_v58  ;;  %9408 = vst [vmem:[#allocation85_spill] sm:$0xff] %v7809_v63  ;;  %v7811_v39 = vld [vmem:[#allocation3 + $0x90] sm:$0xff]  ;;  %v2120_v54 = vadd.f32 %v2119_v53, %v7381_v5  ;;  %v2121_v57 = vpop.f32.mrb[209].mxu0  ;;  %v7817_v46 = vpack.c.bf16 %v7809_v63, %v7791_v20 }
 0x3ad   : > { %v2122_v44 = vpop.f32.mrb[210].mxu0 }
 0x3ae   : > { %3602 = vmatmul.mubr.bf16.gmra.mrb[80].mxu1 %v7805_v30  ;;  %9409 = vst [vmem:[#allocation55_spill] sm:$0xff] %v7817_v46  ;;  %v2345_v4 = vadd.f32 %v7468_v45, %v2120_v54  ;;  %v2123_v41 = vadd.f32 %v2122_v44, %v7387_v24  ;;  %v2124_v23 = vpop.f32.mrb[211].mxu0  ;;  %5161 = vmatmul.mubr.bf16.gmra.mrb[248].mxu0 %v7817_v46 }
 0x3af   : > { %3609 = vmatprep.mubr.bf16.mxu1 %v7807_v58 }
 0x3b0   : > { %v7825_v5 = vmax.f32 %v2345_v4, 0.0  ;;  %v2348_v53 = vadd.f32 %v7475_v36, %v2123_v41 }
 0x3b1   : > { %v7828_v57 = vld [vmem:[#allocation3 + $0x92] sm:$0xff]  ;;  %v7830_v30 = vld [vmem:[#allocation3 + $0x9a] sm:$0xff] }
 0x3b2   : > { %9410 = vst [vmem:[#allocation58_spill] sm:$0xff] %v7825_v5  ;;  %9411 = vst [vmem:[#allocation89_spill] sm:$0xff] %v7828_v57  ;;  %v7832_v20 = vld [vmem:[#allocation3 + $0x98] sm:$0xff]  ;;  %v7835_v42 = vmax.f32 %v2348_v53, 0.0  ;;  %v7839_v24 = vpack.c.bf16 %v7830_v30, %v7828_v57  ;;  %v7847_v36 = vpack.c.bf16 %v7825_v5, %v7372_v62  ;;  %v7849_v23 = vld [vmem:[#allocation3 + $0xa0] sm:$0xff] }
 0x3b3   : > { %9412 = vst [vmem:[#allocation91_spill] sm:$0xff] %v7830_v30  ;;  %9413 = vst [vmem:[#allocation59_spill] sm:$0xff] %v7832_v20  ;;  %v7843_v45 = vpack.c.bf16 %v7832_v20, %v7811_v39  ;;  %v2127_v44 = vpop.f32.mrb[40].mxu0 }
 0x3b4   : > { %2577 = vst [vmem:[#allocation3 + $0xa9] sm:$0xff] %v7825_v5  ;;  %9414 = vst [vmem:[#allocation62_spill] sm:$0xff] %v7835_v42  ;;  %v2129_v41 = vpop.f32.mrb[41].mxu0  ;;  %5164 = vmatprep.mubr.bf16.mxu0 %v7839_v24 }
 0x3b5   : > { %9415 = vst [vmem:[#allocation92_spill] sm:$0xff] %v7843_v45  ;;  %9416 = vst [vmem:[#allocation90_spill] sm:$0xff] %v7847_v36  ;;  %v2130_v58 = vpop.f32.mrb[42].mxu0 }
 0x3b6   : > { %2578 = vst [vmem:[#allocation3 + $0xb1] sm:$0xff] %v7835_v42  ;;  %3610 = vmatmul.mubr.bf16.gmra.mrb[84].mxu1 %v7843_v45  ;;  %v5223_v44 = vadd.f32 %v7544_v55, %v2130_v58  ;;  %v2132_v46 = vpop.f32.mrb[43].mxu0  ;;  %v7877_v58 = vpack.c.bf16 %v7372_v62, %v7835_v42 }
 0x3b7   : > { %3617 = vmatprep.mubr.bf16.mxu1 %v7847_v36 }
 0x3b8   : > { %v2356_v54 = vadd.f32 %v5223_v44, %v7496_v1  ;;  %9420 = vst [vmem:[#allocation6_spill] sm:$0xff] %v7877_v58 }
 0x3ba   : > { %v7867_v41 = vmax.f32 %v2356_v54, 0.0 }
 0x3bb   : > { %v7863_v20 = vld [vmem:[#allocation3 + $0xa8] sm:$0xff]  ;;  %v2135_v5 = vpop.f32.mrb[212].mxu0 }
 0x3bc   : > { %v7865_v4 = vld [vmem:[#allocation3 + $0xa2] sm:$0xff]  ;;  %9418 = vst [vmem:[#allocation4_spill] sm:$0xff] %v7867_v41  ;;  %v7871_v45 = vpack.c.bf16 %v7863_v20, %v7849_v23  ;;  %2580 = vst [vmem:[#allocation3 + $0xc1] sm:$0xff] %v7867_v41  ;;  %v2136_v54 = vadd.f32 %v2135_v5, %v7416_v47  ;;  %v2137_v44 = vpop.f32.mrb[213].mxu0 }
 0x3bd   : > { %9417 = vst [vmem:[#allocation63_spill] sm:$0xff] %v7865_v4  ;;  %v7879_v46 = vld [vmem:[#allocation3 + $0xaa] sm:$0xff]  ;;  %v7890_v53 = vld [vmem:[#allocation3 + $0xb2] sm:$0xff]  ;;  %v2138_v30 = vpop.f32.mrb[214].mxu0 }
 0x3be   : > { %9419 = vst [vmem:[#allocation5_spill] sm:$0xff] %v7871_v45  ;;  %9421 = vst [vmem:[#allocation7_spill] sm:$0xff] %v7879_v46  ;;  %v7881_v1 = vld [vmem:[#allocation3 + $0xb0] sm:$0xff]  ;;  %3618 = vmatmul.mubr.bf16.gmra.mrb[88].mxu1 %v7871_v45  ;;  %v7888_v36 = vpack.c.bf16 %v7879_v46, %v7865_v4  ;;  %v2361_v47 = vadd.f32 %v7490_v34, %v2136_v54  ;;  %v2140_v5 = vpop.f32.mrb[215].mxu0  ;;  %v7899_v44 = vld [vmem:[#allocation3 + $0xb8] sm:$0xff] }
 0x3bf   : > { %9423 = vst [vmem:[#allocation9_spill] sm:$0xff] %v7890_v53  ;;  %3625 = vmatprep.mubr.bf16.mxu1 %v7877_v58  ;;  %9424 = vst [vmem:[#allocation10_spill] sm:$0xff] %v7899_v44  ;;  %v7906_v42 = vpack.c.bf16 %v7899_v44, %v7881_v1 }
 0x3c0   : > { %9422 = vst [vmem:[#allocation8_spill] sm:$0xff] %v7888_v36  ;;  %5165 = vmatmul.mubr.bf16.gmra.mrb[252].mxu0 %v7888_v36  ;;  %v7901_v45 = vmax.f32 %v2361_v47, 0.0 }
 0x3c1   : > { %9426 = vst [vmem:[#allocation12_spill] sm:$0xff] %v7906_v42 }
 0x3c2   : > { %9425 = vst [vmem:[#allocation11_spill] sm:$0xff] %v7901_v45  ;;  %2581 = vst [vmem:[#allocation3 + $0xc9] sm:$0xff] %v7901_v45  ;;  %v7910_v30 = vpack.c.bf16 %v7901_v45, %v7867_v41 }
 0x3c3   : > { %v2143_v63 = vpop.f32.mrb[48].mxu0  ;;  %v7912_v58 = vld [vmem:[#allocation3 + $0xba] sm:$0xff] }
 0x3c4   : > { %9427 = vst [vmem:[#allocation13_spill] sm:$0xff] %v7910_v30  ;;  %9428 = vst [vmem:[#allocation14_spill] sm:$0xff] %v7912_v58  ;;  %v7914_v34 = vld [vmem:[#allocation3 + $0xc0] sm:$0xff]  ;;  %v5224_v54 = vadd.f32 %v7544_v55, %v2143_v63  ;;  %v2145_v5 = vpop.f32.mrb[49].mxu0  ;;  %v7920_v47 = vpack.c.bf16 %v7912_v58, %v7890_v53 }
 0x3c5   : > { %v2146_v4 = vpop.f32.mrb[50].mxu0 }
 0x3c6   : > { %3626 = vmatmul.mubr.bf16.gmra.mrb[92].mxu1 %v7906_v42  ;;  %9429 = vst [vmem:[#allocation15_spill] sm:$0xff] %v7920_v47  ;;  %v2369_v45 = vadd.f32 %v5224_v54, %v7506_v8  ;;  %v5225_v41 = vadd.f32 %v7544_v55, %v2146_v4  ;;  %v2148_v57 = vpop.f32.mrb[51].mxu0  ;;  %5168 = vmatprep.mubr.bf16.mxu0 %v7920_v47 }
 0x3c7   : > { %3633 = vmatprep.mubr.bf16.mxu1 %v7910_v30 }
 0x3c8   : > { %v7928_v63 = vmax.f32 %v2369_v45, 0.0  ;;  %v2372_v5 = vadd.f32 %v5225_v41, %v7510_v11 }
 0x3c9   : > { %v7931_v42 = vld [vmem:[#allocation3 + $0xc2] sm:$0xff]  ;;  %v7933_v53 = vld [vmem:[#allocation3 + $0xca] sm:$0xff] }
 0x3ca   : > { %9430 = vst [vmem:[#allocation16_spill] sm:$0xff] %v7928_v63  ;;  %9431 = vst [vmem:[#allocation17_spill] sm:$0xff] %v7931_v42  ;;  %v7935_v36 = vld [vmem:[#allocation3 + $0xc8] sm:$0xff]  ;;  %v7938_v46 = vmax.f32 %v2372_v5, 0.0  ;;  %v7942_v8 = vpack.c.bf16 %v7933_v53, %v7931_v42  ;;  %v7950_v11 = vpack.c.bf16 %v7928_v63, %v7372_v62  ;;  %v7952_v45 = vld [vmem:[#allocation3 + $0xd0] sm:$0xff] }
 0x3cb   : > { %9432 = vst [vmem:[#allocation18_spill] sm:$0xff] %v7933_v53  ;;  %9433 = vst [vmem:[#allocation19_spill] sm:$0xff] %v7935_v36  ;;  %v7946_v57 = vpack.c.bf16 %v7935_v36, %v7914_v34  ;;  %v2151_v4 = vpop.f32.mrb[216].mxu0 }
 0x3cc   : > { %2583 = vst [vmem:[#allocation3 + $0xd9] sm:$0xff] %v7928_v63  ;;  %9434 = vst [vmem:[#allocation20_spill] sm:$0xff] %v7938_v46  ;;  %v2153_v5 = vpop.f32.mrb[217].mxu0  ;;  %5169 = vmatmul.mubr.bf16.gmra.mrb[4].mxu0 %v7942_v8 }
 0x3cd   : > { %9435 = vst [vmem:[#allocation21_spill] sm:$0xff] %v7946_v57  ;;  %9436 = vst [vmem:[#allocation22_spill] sm:$0xff] %v7950_v11  ;;  %v2154_v47 = vpop.f32.mrb[218].mxu0 }
 0x3ce   : > { %2584 = vst [vmem:[#allocation3 + $0xe1] sm:$0xff] %v7938_v46  ;;  %3634 = vmatmul.mubr.bf16.gmra.mrb[96].mxu1 %v7946_v57  ;;  %v2155_v4 = vadd.f32 %v2154_v47, %v7444_v16  ;;  %v2156_v44 = vpop.f32.mrb[219].mxu0  ;;  %v7980_v16 = vpack.c.bf16 %v7372_v62, %v7938_v46 }
 0x3cf   : > { %3641 = vmatprep.mubr.bf16.mxu1 %v7950_v11 }
 0x3d0   : > { %v2380_v41 = vadd.f32 %v7508_v37, %v2155_v4  ;;  %9440 = vst [vmem:[#allocation29_spill] sm:$0xff] %v7980_v16 }
 0x3d2   : > { %v7970_v5 = vmax.f32 %v2380_v41, 0.0 }
 0x3d3   : > { %v7966_v36 = vld [vmem:[#allocation3 + $0xd8] sm:$0xff]  ;;  %v2159_v63 = vpop.f32.mrb[56].mxu0 }
 0x3d4   : > { %v7968_v54 = vld [vmem:[#allocation3 + $0xd2] sm:$0xff]  ;;  %9438 = vst [vmem:[#allocation25_spill] sm:$0xff] %v7970_v5  ;;  %v7974_v57 = vpack.c.bf16 %v7966_v36, %v7952_v45  ;;  %2586 = vst [vmem:[#allocation3 + $0xf1] sm:$0xff] %v7970_v5  ;;  %v5226_v47 = vadd.f32 %v7544_v55, %v2159_v63  ;;  %v2161_v41 = vpop.f32.mrb[57].mxu0 }
 0x3d5   : > { %9437 = vst [vmem:[#allocation24_spill] sm:$0xff] %v7968_v54  ;;  %v7982_v44 = vld [vmem:[#allocation3 + $0xda] sm:$0xff]  ;;  %v7993_v30 = vld [vmem:[#allocation3 + $0xe2] sm:$0xff]  ;;  %v2162_v11 = vpop.f32.mrb[58].mxu0 }
 0x3d6   : > { %9439 = vst [vmem:[#allocation28_spill] sm:$0xff] %v7974_v57  ;;  %9441 = vst [vmem:[#allocation32_spill] sm:$0xff] %v7982_v44  ;;  %v7984_v37 = vld [vmem:[#allocation3 + $0xe0] sm:$0xff]  ;;  %3642 = vmatmul.mubr.bf16.gmra.mrb[100].mxu1 %v7974_v57  ;;  %v7991_v4 = vpack.c.bf16 %v7982_v44, %v7968_v54  ;;  %v2385_v63 = vadd.f32 %v5226_v47, %v7522_v27  ;;  %v2164_v41 = vpop.f32.mrb[59].mxu0  ;;  %v8002_v57 = vld [vmem:[#allocation3 + $0xe8] sm:$0xff] }
 0x3d7   : > { %9442 = vst [vmem:[#allocation33_spill] sm:$0xff] %v7993_v30  ;;  %3649 = vmatprep.mubr.bf16.mxu1 %v7980_v16  ;;  %v8009_v62 = vpack.c.bf16 %v8002_v57, %v7984_v37 }
 0x3d8   : > { %5172 = vmatprep.mubr.bf16.mxu0 %v7991_v4  ;;  %v8004_v53 = vmax.f32 %v2385_v63, 0.0 }
 0x3d9   : > { %9444 = vst [vmem:[#allocation37_spill] sm:$0xff] %v8009_v62 }
 0x3da   : > { %9443 = vst [vmem:[#allocation36_spill] sm:$0xff] %v8004_v53  ;;  %2587 = vst [vmem:[#allocation3 + $0xf9] sm:$0xff] %v8004_v53  ;;  %v8013_v11 = vpack.c.bf16 %v8004_v53, %v7970_v5 }
 0x3db   : > { %v2167_v46 = vpop.f32.mrb[220].mxu0  ;;  %v8015_v16 = vld [vmem:[#allocation3 + $0xea] sm:$0xff] }
 0x3dc   : > { %9445 = vst [vmem:[#allocation40_spill] sm:$0xff] %v8013_v11  ;;  %9446 = vst [vmem:[#allocation41_spill] sm:$0xff] %v8015_v16  ;;  %v8017_v27 = vld [vmem:[#allocation3 + $0xf0] sm:$0xff]  ;;  %v2168_v47 = vadd.f32 %v2167_v46, %v7461_v32  ;;  %v2169_v41 = vpop.f32.mrb[221].mxu0  ;;  %v8023_v63 = vpack.c.bf16 %v8015_v16, %v7993_v30 }
 0x3dd   : > { %v2170_v54 = vpop.f32.mrb[222].mxu0 }
 0x3de   : > { %3650 = vmatmul.mubr.bf16.gmra.mrb[104].mxu1 %v8009_v62  ;;  %9447 = vst [vmem:[#allocation44_spill] sm:$0xff] %v8023_v63  ;;  %v2393_v53 = vadd.f32 %v7520_v48, %v2168_v47  ;;  %v2171_v5 = vadd.f32 %v2170_v54, %v7464_v61  ;;  %v2172_v58 = vpop.f32.mrb[223].mxu0  ;;  %5173 = vmatmul.mubr.bf16.gmra.mrb[12].mxu0 %v8023_v63 }
 0x3df   : > { %3657 = vmatprep.mubr.bf16.mxu1 %v8013_v11 }
 0x3e0   : > { %v8031_v32 = vmax.f32 %v2393_v53, 0.0  ;;  %v2396_v46 = vadd.f32 %v7527_v33, %v2171_v5  ;;  %v8051_v53 = vld [vmem:[#allocation2] sm:$0xff] }
 0x3e1   : > { %v8034_v41 = vld [vmem:[#allocation3 + $0xf2] sm:$0xff]  ;;  %v8036_v62 = vld [vmem:[#allocation3 + $0xfa] sm:$0xff] }
 0x3e2   : > { %9448 = vst [vmem:[#allocation45_spill] sm:$0xff] %v8031_v32  ;;  %9449 = vst [vmem:[#allocation48_spill] sm:$0xff] %v8034_v41  ;;  %v8038_v30 = vld [vmem:[#allocation3 + $0xf8] sm:$0xff]  ;;  %v8041_v44 = vmax.f32 %v2396_v46, 0.0  ;;  %v8045_v61 = vpack.c.bf16 %v8036_v62, %v8034_v41  ;;  %v8055_v33 = vpack.c.bf16 %v8031_v32, %v8051_v53  ;;  %v8057_v58 = vld [vmem:[#allocation3 + $0x100] sm:$0xff] }
 0x3e3   : > { %9450 = vst [vmem:[#allocation49_spill] sm:$0xff] %v8036_v62  ;;  %9451 = vst [vmem:[#allocation52_spill] sm:$0xff] %v8038_v30  ;;  %v8049_v48 = vpack.c.bf16 %v8038_v30, %v8017_v27  ;;  %v2175_v54 = vpop.f32.mrb[64].mxu0 }
 0x3e4   : > { %2589 = vst [vmem:[#allocation3 + $0x109] sm:$0xff] %v8031_v32  ;;  %9452 = vst [vmem:[#allocation53_spill] sm:$0xff] %v8041_v44  ;;  %v2177_v46 = vpop.f32.mrb[65].mxu0  ;;  %5176 = vmatprep.mubr.bf16.mxu0 %v8045_v61 }
 0x3e5   : > { %9453 = vst [vmem:[#allocation56_spill] sm:$0xff] %v8049_v48  ;;  %9454 = vst [vmem:[#allocation57_spill] sm:$0xff] %v8055_v33  ;;  %v2178_v42 = vpop.f32.mrb[66].mxu0 }
 0x3e6   : > { %2590 = vst [vmem:[#allocation3 + $0x111] sm:$0xff] %v8041_v44  ;;  %3658 = vmatmul.mubr.bf16.gmra.mrb[108].mxu1 %v8049_v48  ;;  %v5227_v54 = vadd.f32 %v7544_v55, %v2178_v42  ;;  %v2180_v63 = vpop.f32.mrb[67].mxu0  ;;  %v8085_v42 = vpack.c.bf16 %v8051_v53, %v8041_v44 }
 0x3e7   : > { %3665 = vmatprep.mubr.bf16.mxu1 %v8055_v33 }
 0x3e8   : > { %v2404_v5 = vadd.f32 %v5227_v54, %v7550_v15  ;;  %9458 = vst [vmem:[#allocation65_spill] sm:$0xff] %v8085_v42 }
 0x3ea   : > { %v8075_v46 = vmax.f32 %v2404_v5, 0.0 }
 0x3eb   : > { %v8071_v30 = vld [vmem:[#allocation3 + $0x108] sm:$0xff]  ;;  %v2183_v32 = vpop.f32.mrb[224].mxu0 }
 0x3ec   : > { %v8073_v47 = vld [vmem:[#allocation3 + $0x102] sm:$0xff]  ;;  %9456 = vst [vmem:[#allocation61_spill] sm:$0xff] %v8075_v46  ;;  %v8079_v48 = vpack.c.bf16 %v8071_v30, %v8057_v58  ;;  %2592 = vst [vmem:[#allocation3 + $0x121] sm:$0xff] %v8075_v46  ;;  %v2184_v5 = vadd.f32 %v2183_v32, %v7484_v14  ;;  %v2185_v54 = vpop.f32.mrb[225].mxu0 }
 0x3ed   : > { %9455 = vst [vmem:[#allocation60_spill] sm:$0xff] %v8073_v47  ;;  %v8087_v63 = vld [vmem:[#allocation3 + $0x10a] sm:$0xff]  ;;  %v8098_v11 = vld [vmem:[#allocation3 + $0x112] sm:$0xff]  ;;  %v2186_v62 = vpop.f32.mrb[226].mxu0 }
 0x3ee   : > { %9457 = vst [vmem:[#allocation64_spill] sm:$0xff] %v8079_v48  ;;  %9459 = vst [vmem:[#allocation66_spill] sm:$0xff] %v8087_v63  ;;  %v8089_v15 = vld [vmem:[#allocation3 + $0x110] sm:$0xff]  ;;  %3666 = vmatmul.mubr.bf16.gmra.mrb[112].mxu1 %v8079_v48  ;;  %v8096_v33 = vpack.c.bf16 %v8087_v63, %v8073_v47  ;;  %v2409_v14 = vadd.f32 %v7538_v9, %v2184_v5  ;;  %v2188_v32 = vpop.f32.mrb[227].mxu0  ;;  %v8107_v54 = vld [vmem:[#allocation3 + $0x118] sm:$0xff] }
 0x3ef   : > { %9461 = vst [vmem:[#allocation94_spill] sm:$0xff] %v8098_v11  ;;  %3673 = vmatprep.mubr.bf16.mxu1 %v8085_v42  ;;  %9462 = vst [vmem:[#allocation95_spill] sm:$0xff] %v8107_v54  ;;  %v8114_v44 = vpack.c.bf16 %v8107_v54, %v8089_v15 }
 0x3f0   : > { %9460 = vst [vmem:[#allocation93_spill] sm:$0xff] %v8096_v33  ;;  %5177 = vmatmul.mubr.bf16.gmra.mrb[20].mxu0 %v8096_v33  ;;  %v8109_v48 = vmax.f32 %v2409_v14, 0.0 }
 0x3f1   : > { %9464 = vst [vmem:[#allocation97_spill] sm:$0xff] %v8114_v44 }
 0x3f2   : > { %9463 = vst [vmem:[#allocation96_spill] sm:$0xff] %v8109_v48  ;;  %2593 = vst [vmem:[#allocation3 + $0x129] sm:$0xff] %v8109_v48  ;;  %v8118_v62 = vpack.c.bf16 %v8109_v48, %v8075_v46 }
 0x3f3   : > { %v2191_v16 = vpop.f32.mrb[72].mxu0  ;;  %v8120_v42 = vld [vmem:[#allocation3 + $0x11a] sm:$0xff] }
 0x3f4   : > { %9465 = vst [vmem:[#allocation98_spill] sm:$0xff] %v8118_v62  ;;  %9466 = vst [vmem:[#allocation99_spill] sm:$0xff] %v8120_v42  ;;  %v8122_v9 = vld [vmem:[#allocation3 + $0x120] sm:$0xff]  ;;  %v5228_v5 = vadd.f32 %v7544_v55, %v2191_v16  ;;  %v2193_v32 = vpop.f32.mrb[73].mxu0  ;;  %v8128_v14 = vpack.c.bf16 %v8120_v42, %v8098_v11 }
 0x3f5   : > { %v2194_v47 = vpop.f32.mrb[74].mxu0 }
 0x3f6   : > { %3674 = vmatmul.mubr.bf16.gmra.mrb[116].mxu1 %v8114_v44  ;;  %9467 = vst [vmem:[#allocation100_spill] sm:$0xff] %v8128_v14  ;;  %v2417_v48 = vadd.f32 %v5228_v5, %v7576_v35  ;;  %v5229_v46 = vadd.f32 %v7544_v55, %v2194_v47  ;;  %v2196_v41 = vpop.f32.mrb[75].mxu0  ;;  %5180 = vmatprep.mubr.bf16.mxu0 %v8128_v14 }
 0x3f7   : > { %3681 = vmatprep.mubr.bf16.mxu1 %v8118_v62 }
 0x3f8   : > { %v8136_v16 = vmax.f32 %v2417_v48, 0.0  ;;  %v2420_v32 = vadd.f32 %v5229_v46, %v7587_v18 }
 0x3f9   : > { %v8139_v44 = vld [vmem:[#allocation3 + $0x122] sm:$0xff]  ;;  %v8141_v11 = vld [vmem:[#allocation3 + $0x12a] sm:$0xff] }
 0x3fa   : > { %9468 = vst [vmem:[#allocation101_spill] sm:$0xff] %v8136_v16  ;;  %9469 = vst [vmem:[#allocation102_spill] sm:$0xff] %v8139_v44  ;;  %v8143_v33 = vld [vmem:[#allocation3 + $0x128] sm:$0xff]  ;;  %v8146_v63 = vmax.f32 %v2420_v32, 0.0  ;;  %v8150_v35 = vpack.c.bf16 %v8141_v11, %v8139_v44  ;;  %v8158_v18 = vpack.c.bf16 %v8136_v16, %v8051_v53  ;;  %v8160_v48 = vld [vmem:[#allocation3 + $0x130] sm:$0xff] }
 0x3fb   : > { %9470 = vst [vmem:[#allocation103_spill] sm:$0xff] %v8141_v11  ;;  %9471 = vst [vmem:[#allocation104_spill] sm:$0xff] %v8143_v33  ;;  %v8154_v41 = vpack.c.bf16 %v8143_v33, %v8122_v9  ;;  %v2199_v47 = vpop.f32.mrb[228].mxu0 }
 0x3fc   : > { %2595 = vst [vmem:[#allocation3 + $0x139] sm:$0xff] %v8136_v16  ;;  %9472 = vst [vmem:[#allocation105_spill] sm:$0xff] %v8146_v63  ;;  %v2201_v32 = vpop.f32.mrb[229].mxu0  ;;  %5181 = vmatmul.mubr.bf16.gmra.mrb[28].mxu0 %v8150_v35 }
 0x3fd   : > { %9473 = vst [vmem:[#allocation106_spill] sm:$0xff] %v8154_v41  ;;  %9474 = vst [vmem:[#allocation107_spill] sm:$0xff] %v8158_v18  ;;  %v2202_v14 = vpop.f32.mrb[230].mxu0 }
 0x3fe   : > { %2596 = vst [vmem:[#allocation3 + $0x141] sm:$0xff] %v8146_v63  ;;  %3682 = vmatmul.mubr.bf16.gmra.mrb[120].mxu1 %v8154_v41  ;;  %v2203_v47 = vadd.f32 %v2202_v14, %v7501_v29  ;;  %v2204_v54 = vpop.f32.mrb[231].mxu0  ;;  %v8188_v29 = vpack.c.bf16 %v8051_v53, %v8146_v63 }
 0x3ff   : > { %3689 = vmatprep.mubr.bf16.mxu1 %v8158_v18 }
 0x400   : > { %v2428_v46 = vadd.f32 %v7581_v51, %v2203_v47  ;;  %9478 = vst [vmem:[#allocation111_spill] sm:$0xff] %v8188_v29 }
 0x402   : > { %v8178_v32 = vmax.f32 %v2428_v46, 0.0 }
 0x403   : > { %v8174_v33 = vld [vmem:[#allocation3 + $0x138] sm:$0xff]  ;;  %v2207_v16 = vpop.f32.mrb[80].mxu0 }
 0x404   : > { %v8176_v5 = vld [vmem:[#allocation3 + $0x132] sm:$0xff]  ;;  %9476 = vst [vmem:[#allocation109_spill] sm:$0xff] %v8178_v32  ;;  %v8182_v41 = vpack.c.bf16 %v8174_v33, %v8160_v48  ;;  %2598 = vst [vmem:[#allocation3 + $0x151] sm:$0xff] %v8178_v32  ;;  %v5230_v14 = vadd.f32 %v7544_v55, %v2207_v16  ;;  %v2209_v46 = vpop.f32.mrb[81].mxu0 }
 0x405   : > { %9475 = vst [vmem:[#allocation108_spill] sm:$0xff] %v8176_v5  ;;  %v8190_v54 = vld [vmem:[#allocation3 + $0x13a] sm:$0xff]  ;;  %v8201_v62 = vld [vmem:[#allocation3 + $0x142] sm:$0xff]  ;;  %v2210_v63 = vpop.f32.mrb[82].mxu0 }
 0x406   : > { %9477 = vst [vmem:[#allocation110_spill] sm:$0xff] %v8182_v41  ;;  %9479 = vst [vmem:[#allocation112_spill] sm:$0xff] %v8190_v54  ;;  %v8192_v51 = vld [vmem:[#allocation3 + $0x140] sm:$0xff]  ;;  %3690 = vmatmul.mubr.bf16.gmra.mrb[124].mxu1 %v8182_v41  ;;  %v8199_v47 = vpack.c.bf16 %v8190_v54, %v8176_v5  ;;  %v2433_v16 = vadd.f32 %v5230_v14, %v7637_v12  ;;  %v2212_v46 = vpop.f32.mrb[83].mxu0  ;;  %v8210_v41 = vld [vmem:[#allocation3 + $0x148] sm:$0xff] }
 0x407   : > { %9480 = vst [vmem:[#allocation113_spill] sm:$0xff] %v8201_v62  ;;  %3697 = vmatprep.mubr.bf16.mxu1 %v8188_v29  ;;  %v8217_v18 = vpack.c.bf16 %v8210_v41, %v8192_v51 }
 0x408   : > { %5184 = vmatprep.mubr.bf16.mxu0 %v8199_v47  ;;  %v8212_v5 = vmax.f32 %v2433_v16, 0.0 }
 0x409   : > { %9482 = vst [vmem:[#allocation115_spill] sm:$0xff] %v8217_v18 }
 0x40a   : > { %9481 = vst [vmem:[#allocation114_spill] sm:$0xff] %v8212_v5  ;;  %2599 = vst [vmem:[#allocation3 + $0x159] sm:$0xff] %v8212_v5  ;;  %v8221_v63 = vpack.c.bf16 %v8212_v5, %v8178_v32 }
 0x40b   : > { %v2215_v11 = vpop.f32.mrb[232].mxu0  ;;  %v8223_v29 = vld [vmem:[#allocation3 + $0x14a] sm:$0xff] }
 0x40c   : > { %9483 = vst [vmem:[#allocation116_spill] sm:$0xff] %v8221_v63  ;;  %v8225_v12 = vld [vmem:[#allocation3 + $0x150] sm:$0xff]  ;;  %v2216_v14 = vadd.f32 %v2215_v11, %v7515_v43  ;;  %v2217_v46 = vpop.f32.mrb[233].mxu0  ;;  %v8231_v16 = vpack.c.bf16 %v8223_v29, %v8201_v62 }
 0x40d   : > { %v2218_v42 = vpop.f32.mrb[234].mxu0 }
 0x40e   : > { %3698 = vmatmul.mubr.bf16.gmra.mrb[128].mxu1 %v8217_v18  ;;  %9484 = vst [vmem:[#allocation117_spill] sm:$0xff] %v8231_v16  ;;  %v2441_v5 = vadd.f32 %v7633_v21, %v2216_v14  ;;  %v2219_v32 = vadd.f32 %v2218_v42, %v7518_v10  ;;  %v2220_v44 = vpop.f32.mrb[235].mxu0  ;;  %5185 = vmatmul.mubr.bf16.gmra.mrb[36].mxu0 %v8231_v16 }
 0x40f   : > { %3705 = vmatprep.mubr.bf16.mxu1 %v8221_v63 }
 0x410   : > { %v8239_v43 = vmax.f32 %v2441_v5, 0.0  ;;  %v2444_v11 = vadd.f32 %v7649_v28, %v2219_v32 }
 0x411   : > { %v8242_v46 = vld [vmem:[#allocation3 + $0x152] sm:$0xff]  ;;  %v8244_v18 = vld [vmem:[#allocation3 + $0x15a] sm:$0xff] }
 0x412   : > { %9485 = vst [vmem:[#allocation118_spill] sm:$0xff] %v8239_v43  ;;  %9486 = vst [vmem:[#allocation119_spill] sm:$0xff] %v8244_v18  ;;  %v8246_v62 = vld [vmem:[#allocation3 + $0x158] sm:$0xff]  ;;  %v8249_v54 = vmax.f32 %v2444_v11, 0.0  ;;  %v8253_v10 = vpack.c.bf16 %v8244_v18, %v8242_v46  ;;  %v8261_v28 = vpack.c.bf16 %v8239_v43, %v8051_v53  ;;  %v8263_v44 = vld [vmem:[#allocation3 + $0x160] sm:$0xff] }
 0x413   : > { %9487 = vst [vmem:[#allocation120_spill] sm:$0xff] %v8246_v62  ;;  %2601 = vst [vmem:[#allocation3 + $0x169] sm:$0xff] %v8239_v43  ;;  %v8257_v21 = vpack.c.bf16 %v8246_v62, %v8225_v12  ;;  %v2223_v42 = vpop.f32.mrb[88].mxu0 }
 0x414   : > { %9488 = vst [vmem:[#allocation121_spill] sm:$0xff] %v8249_v54  ;;  %9490 = vst [vmem:[#allocation123_spill] sm:$0xff] %v8261_v28  ;;  %v2225_v14 = vpop.f32.mrb[89].mxu0  ;;  %5188 = vmatprep.mubr.bf16.mxu0 %v8253_v10 }
 0x415   : > { %9489 = vst [vmem:[#allocation122_spill] sm:$0xff] %v8257_v21  ;;  %2602 = vst [vmem:[#allocation3 + $0x171] sm:$0xff] %v8249_v54  ;;  %v2226_v63 = vpop.f32.mrb[90].mxu0 }
 0x416   : > { %3706 = vmatmul.mubr.bf16.gmra.mrb[132].mxu1 %v8257_v21  ;;  %v5231_v42 = vadd.f32 %v7544_v55, %v2226_v63  ;;  %v2228_v16 = vpop.f32.mrb[91].mxu0  ;;  %v8291_v55 = vpack.c.bf16 %v8051_v53, %v8249_v54 }
 0x417   : > { %3713 = vmatprep.mubr.bf16.mxu1 %v8261_v28 }
 0x418   : > { %v2452_v5 = vadd.f32 %v5231_v42, %v7726_v56  ;;  %9493 = vst [vmem:[#allocation126_spill] sm:$0xff] %v8291_v55 }
 0x41a   : > { %v8277_v62 = vld [vmem:[#allocation3 + $0x168] sm:$0xff]  ;;  %v8281_v14 = vmax.f32 %v2452_v5, 0.0 }
 0x41b   : > { %v8279_v32 = vld [vmem:[#allocation3 + $0x162] sm:$0xff]  ;;  %v8285_v21 = vpack.c.bf16 %v8277_v62, %v8263_v44  ;;  %v2231_v43 = vpop.f32.mrb[236].mxu0 }
 0x41c   : > { %9491 = vst [vmem:[#allocation124_spill] sm:$0xff] %v8279_v32  ;;  %v8293_v63 = vld [vmem:[#allocation3 + $0x16a] sm:$0xff]  ;;  %2604 = vst [vmem:[#allocation3 + $0x181] sm:$0xff] %v8281_v14  ;;  %v2232_v16 = vadd.f32 %v2231_v43, %v7534_v2  ;;  %v2233_v42 = vpop.f32.mrb[237].mxu0  ;;  %v8306_v28 = vld [vmem:[#allocation3 + $0x172] sm:$0xff] }
 0x41d   : > { %9492 = vst [vmem:[#allocation125_spill] sm:$0xff] %v8285_v21  ;;  %9494 = vst [vmem:[#allocation127_spill] sm:$0xff] %v8293_v63  ;;  %v8295_v56 = vld [vmem:[#allocation3 + $0x170] sm:$0xff]  ;;  %v8302_v5 = vpack.c.bf16 %v8293_v63, %v8279_v32  ;;  %v2234_v54 = vpop.f32.mrb[238].mxu0 }
 0x41e   : > { %3714 = vmatmul.mubr.bf16.gmra.mrb[136].mxu1 %v8285_v21  ;;  %v2457_v2 = vadd.f32 %v7715_v13, %v2232_v16  ;;  %v2236_v43 = vpop.f32.mrb[239].mxu0  ;;  %v8313_v21 = vld [vmem:[#allocation3 + $0x178] sm:$0xff]  ;;  %v9496_v13 = vpack.c.bf16 %v7574_v40, %v7565_v6  ;;  %v2751_v16 = vld [vmem:[#allocation3 + $0x2] sm:$0xff]  ;;  %v9497_v40 = vpack.c.bf16 %v7599_v17, %v7593_v59  ;;  %v9498_v59 = vpack.c.bf16 %v7631_v0, %v7614_v38  ;;  %v5841_v0 = vld [vmem:[%s8979_s2 + $0x128] sm:$0xff]  }
 0x41f   : > { %3721 = vmatprep.mubr.bf16.mxu1 %v8291_v55  ;;  %5189 = vmatmul.mubr.bf16.gmra.mrb[44].mxu0 %v8302_v5  ;;  %v8320_v42 = vpack.c.bf16 %v8313_v21, %v8295_v56  ;;  %v2752_v43 = vld [vmem:[#allocation3 + $0xa] sm:$0xff]  ;;  %v5839_v17 = vld [vmem:[%s8979_s2 + $0x118] sm:$0xff]   ;;  %v9499_v38 = vpack.c.bf16 %v7676_v50, %v7657_v3 }
 0x420   : > { %v8315_v32 = vmax.f32 %v2457_v2, 0.0  ;;  %v2799_v18 = vpack.c.bf16 %v2752_v43, %v2751_v16  ;;  %v5836_v2 = vld [vmem:[%s8979_s2 + $0x100] sm:$0xff]   ;;  %v2753_v16 = vld [vmem:[#allocation3 + $0x12] sm:$0xff]  ;;  %v5843_v50 = vld [vmem:[%s8979_s2 + $0x138] sm:$0xff]  }
 0x421   : > { %9495 = vst [vmem:[#allocation128_spill] sm:$0xff] %v8320_v42  ;;  %v5838_v43 = vld [vmem:[%s8979_s2 + $0x110] sm:$0xff]  }
 0x422   : > { %2605 = vst [vmem:[#allocation3 + $0x189] sm:$0xff] %v8315_v32 }
 0x423   : > { %v8331_v11 = vld [vmem:[#allocation3 + $0x180] sm:$0xff] }
 0x426   : > { %3722 = vmatmul.mubr.bf16.gmra.mrb[140].mxu1 %v8320_v42  ;;  %v5897_v42 = vld [vmem:[#allocation3 + $0x1a] sm:$0xff] }
 0x427   : > { %3762 = vmatprep.mubr.bf16.mxu1 %v9496_v13  ;;  %v5837_v13 = vld [vmem:[%s8979_s2 + $0x108] sm:$0xff]   ;;  %v2800_v6 = vpack.c.bf16 %v5897_v42, %v2753_v16  ;;  %v5898_v42 = vld [vmem:[#allocation3 + $0x22] sm:$0xff] }
 0x428   : > { %v5844_v16 = vld [vmem:[%s8979_s2 + $0x140] sm:$0xff]  }
 0x429   : > { %v8333_v55 = vld [vmem:[#allocation3 + $0x188] sm:$0xff] }
 0x42a   : > { %v8335_v63 = vld [vmem:[#allocation3 + $0x182] sm:$0xff]  ;;  %v8337_v54 = vld [vmem:[#allocation3 + $0x18a] sm:$0xff] }
 0x42e   : > { %3763 = vmatmul.mubr.bf16.vlgmr.msra.gmra.mrb[48].mxu1 %v2799_v18  ;;  %v5840_v18 = vld [vmem:[%s8979_s2 + $0x120] sm:$0xff]  }
 0x42f   : > { %3770 = vmatprep.mubr.bf16.mxu1 %v9497_v40  ;;  %3956 = vmatpush1.bf16.msra.mxu1 %v5836_v2  ;;  %v2801_v2 = vpack.c.bf16 %v7635_v52, %v5898_v42  ;;  %v9500_v40 = vld [vmem:[#allocation78_spill] sm:$0xff]  ;;  %v9506_v42 = vld [vmem:[#allocation81_spill] sm:$0xff] }
 0x430   : > { %3957 = vmatprep.subr.bf16.mxu1 %v9255_v7 }
 0x433   : > { %3958 = vmatpush1.bf16.msra.mxu1 %v5837_v13  ;;  %v9501_v13 = vld [vmem:[#allocation77_spill] sm:$0xff] }
 0x434   : > { %3959 = vmatprep.subr.bf16.mxu1 %v9255_v7  ;;  %v9502_v3 = vpack.c.bf16 %v9500_v40, %v9501_v13 }
 0x436   : > { %3771 = vmatmul.mubr.bf16.gmra.mrb[52].mxu1 %v2800_v6  ;;  %v5842_v6 = vld [vmem:[%s8979_s2 + $0x130] sm:$0xff]  }
 0x437   : > { %3778 = vmatprep.mubr.bf16.mxu1 %v9498_v59  ;;  %3960 = vmatpush1.bf16.msra.mxu1 %v5838_v43  ;;  %v9503_v43 = vld [vmem:[#allocation35_spill] sm:$0xff] }
 0x438   : > { %3961 = vmatprep.subr.bf16.mxu1 %v9255_v7 }
 0x43b   : > { %3962 = vmatpush1.bf16.msra.mxu1 %v5839_v17  ;;  %v5845_v17 = vld [vmem:[%s8979_s2 + $0x148] sm:$0xff]  }
 0x43c   : > { %3963 = vmatprep.subr.bf16.mxu1 %v9255_v7 }
 0x43e   : > { %3779 = vmatmul.mubr.bf16.gmra.mrb[56].mxu1 %v2801_v2  ;;  %v5847_v2 = vld [vmem:[%s8979_s2 + $0x158] sm:$0xff]  }
 0x43f   : > { %3786 = vmatprep.mubr.bf16.mxu1 %v9499_v38  ;;  %3964 = vmatpush1.bf16.msra.mxu1 %v5840_v18  ;;  %v5846_v18 = vld [vmem:[%s8979_s2 + $0x150] sm:$0xff]   ;;  %v5848_v38 = vld [vmem:[%s8979_s2 + $0x160] sm:$0xff]  }
 0x440   : > { %3965 = vmatprep.subr.bf16.mxu1 %v9255_v7 }
 0x443   : > { %3966 = vmatpush1.bf16.msra.mxu1 %v5841_v0 }
 0x444   : > { %3967 = vmatprep.subr.bf16.mxu1 %v9255_v7 }
 0x446   : > { %3787 = vmatmul.mubr.bf16.gmra.mrb[60].mxu1 %v7621_v60  ;;  %v9504_v60 = vld [vmem:[#allocation82_spill] sm:$0xff] }
 0x447   : > { %3794 = vmatprep.mubr.bf16.mxu1 %v9502_v3  ;;  %3968 = vmatpush1.bf16.msra.mxu1 %v5842_v6  ;;  %v9505_v59 = vpack.c.bf16 %v7750_v49, %v9504_v60  ;;  %v9507_v49 = vpack.c.bf16 %v7783_v25, %v7764_v22  ;;  %v9508_v22 = vpack.c.bf16 %v7811_v39, %v7801_v26  ;;  %v5849_v25 = vld [vmem:[%s8979_s2 + $0x168] sm:$0xff]   ;;  %v5850_v6 = vld [vmem:[%s8979_s2 + $0x170] sm:$0xff]   ;;  %v5851_v3 = vld [vmem:[%s8979_s2 + $0x178] sm:$0xff]  }
 0x448   : > { %3969 = vmatprep.subr.bf16.mxu1 %v9255_v7 }
 0x44b   : > { %3970 = vmatpush1.bf16.msra.mxu1 %v5843_v50  ;;  %v9511_v50 = vld [vmem:[#allocation55_spill] sm:$0xff] }
 0x44c   : > { %3971 = vmatprep.subr.bf16.mxu1 %v9255_v7 }
 0x44e   : > { %3795 = vmatmul.mubr.bf16.gmra.mrb[64].mxu1 %v9503_v43 }
 0x44f   : > { %3802 = vmatprep.mubr.bf16.mxu1 %v9505_v59  ;;  %3972 = vmatpush1.bf16.msra.mxu1 %v5844_v16  ;;  %v9512_v16 = vpack.c.bf16 %v7881_v1, %v7863_v20  ;;  %v9513_v59 = vld [vmem:[#allocation10_spill] sm:$0xff] }
 0x450   : > { %3973 = vmatprep.subr.bf16.mxu1 %v9255_v7 }
 0x453   : > { %3974 = vmatpush1.bf16.msra.mxu1 %v5845_v17  ;;  %v9514_v17 = vpack.c.bf16 %v7914_v34, %v9513_v59  ;;  %v9520_v34 = vpack.c.bf16 %v8017_v27, %v8002_v57  ;;  %v9528_v59 = vld [vmem:[#allocation104_spill] sm:$0xff] }
 0x454   : > { %3975 = vmatprep.subr.bf16.mxu1 %v9255_v7 }
 0x456   : > { %3803 = vmatmul.mubr.bf16.gmra.mrb[68].mxu1 %v9506_v42  ;;  %v9516_v42 = vld [vmem:[#allocation19_spill] sm:$0xff] }
 0x457   : > { %3810 = vmatprep.mubr.bf16.mxu1 %v9507_v49  ;;  %3976 = vmatpush1.bf16.msra.mxu1 %v5846_v18  ;;  %v9515_v18 = vld [vmem:[#allocation8_spill] sm:$0xff]  ;;  %v9517_v20 = vpack.c.bf16 %v7952_v45, %v9516_v42 }
 0x458   : > { %3977 = vmatprep.subr.bf16.mxu1 %v9255_v7 }
 0x45b   : > { %3978 = vmatpush1.bf16.msra.mxu1 %v5847_v2 }
 0x45c   : > { %3979 = vmatprep.subr.bf16.mxu1 %v9255_v7 }
 0x45e   : > { %3811 = vmatmul.mubr.bf16.gmra.mrb[72].mxu1 %v7740_v31  ;;  %v9509_v31 = vld [vmem:[#allocation59_spill] sm:$0xff] }
 0x45f   : > { %3818 = vmatprep.mubr.bf16.mxu1 %v9508_v22  ;;  %3980 = vmatpush1.bf16.msra.mxu1 %v5848_v38  ;;  %v9510_v13 = vpack.c.bf16 %v7849_v23, %v9509_v31  ;;  %v9518_v22 = vld [vmem:[#allocation15_spill] sm:$0xff] }
 0x460   : > { %3981 = vmatprep.subr.bf16.mxu1 %v9255_v7 }
 0x462   : > { %v8421_v0 = vpop.f32.mrb[240].mxu0 }
 0x463   : > { %3982 = vmatpush1.bf16.msra.mxu1 %v5849_v25  ;;  %v8426_v40 = vpop.f32.mrb[241].mxu0 }
 0x464   : > { %3983 = vmatprep.subr.bf16.mxu1 %v9255_v7  ;;  %v8429_v26 = vpop.f32.mrb[242].mxu0 }
 0x465   : > { %v8431_v39 = vpop.f32.mrb[243].mxu0 }
 0x466   : > { %3819 = vmatmul.mubr.bf16.gmra.mrb[76].mxu1 %v7789_v19 }
 0x467   : > { %3826 = vmatprep.mubr.bf16.mxu1 %v9510_v13  ;;  %3984 = vmatpush1.bf16.msra.mxu1 %v5850_v6  ;;  %v9521_v13 = vld [vmem:[#allocation52_spill] sm:$0xff] }
 0x468   : > { %3985 = vmatprep.subr.bf16.mxu1 %v9255_v7 }
 0x46b   : > { %3986 = vmatpush1.bf16.msra.mxu1 %v5851_v3 }
 0x46c   : > { %4180 = vmatprep.subr.bf16.mxu1 %v9255_v7 }
 0x46e   : > { %3827 = vmatmul.mubr.bf16.gmra.mrb[80].mxu1 %v9511_v50 }
 0x46f   : > { %3834 = vmatprep.mubr.bf16.mxu1 %v9512_v16  ;;  %v8446_v19 = vpop.f32.mrb[244].mxu0  ;;  %v9527_v16 = vld [vmem:[#allocation93_spill] sm:$0xff] }
 0x470   : > { %v8448_v23 = vpop.f32.mrb[245].mxu0 }
 0x471   : > { %v8450_v43 = vpop.f32.mrb[246].mxu0 }
 0x472   : > { %v8452_v60 = vpop.f32.mrb[247].mxu0 }
 0x476   : > { %3835 = vmatmul.mubr.bf16.gmra.mrb[84].mxu1 %v7839_v24  ;;  %v9519_v24 = vpack.c.bf16 %v7984_v37, %v7966_v36  ;;  %v9522_v36 = vpack.c.bf16 %v8057_v58, %v9521_v13  ;;  %v9523_v37 = vld [vmem:[#allocation44_spill] sm:$0xff] }
 0x477   : > { %3842 = vmatprep.mubr.bf16.mxu1 %v9514_v17  ;;  %v9533_v13 = vld [vmem:[#allocation120_spill] sm:$0xff] }
 0x47e   : > { %3843 = vmatmul.mubr.bf16.gmra.mrb[88].mxu1 %v9515_v18 }
 0x47f   : > { %3850 = vmatprep.mubr.bf16.mxu1 %v9517_v20  ;;  %v9530_v20 = vld [vmem:[#allocation100_spill] sm:$0xff] }
 0x481   : > { %v8462_v1 = vpop.f32.mrb[248].mxu0 }
 0x482   : > { %v8464_v49 = vpop.f32.mrb[249].mxu0 }
 0x483   : > { %v8466_v2 = vpop.f32.mrb[250].mxu0 }
 0x484   : > { %v8468_v38 = vpop.f32.mrb[251].mxu0 }
 0x486   : > { %3851 = vmatmul.mubr.bf16.gmra.mrb[92].mxu1 %v9518_v22 }
 0x487   : > { %3858 = vmatprep.mubr.bf16.mxu1 %v9519_v24 }
 0x48e   : > { %3859 = vmatmul.mubr.bf16.gmra.mrb[96].mxu1 %v7942_v8  ;;  %v9524_v8 = vpack.c.bf16 %v8089_v15, %v8071_v30  ;;  %v9529_v30 = vpack.c.bf16 %v8160_v48, %v9528_v59  ;;  %v9539_v59 = vld [vmem:[#allocation68_spill] sm:$0xff] }
 0x48f   : > { %3866 = vmatprep.mubr.bf16.mxu1 %v9520_v34 }
 0x493   : > { %v8478_v45 = vpop.f32.mrb[252].mxu0 }
 0x494   : > { %v8480_v25 = vpop.f32.mrb[253].mxu0 }
 0x495   : > { %v8482_v6 = vpop.f32.mrb[254].mxu0 }
 0x496   : > { %v8484_v31 = vpop.f32.mrb[255].mxu0  ;;  %3867 = vmatmul.mubr.bf16.gmra.mrb[100].mxu1 %v7991_v4  ;;  %v9525_v4 = vld [vmem:[#allocation95_spill] sm:$0xff] }
 0x497   : > { %3874 = vmatprep.mubr.bf16.mxu1 %v9522_v36  ;;  %v9526_v58 = vpack.c.bf16 %v8122_v9, %v9525_v4  ;;  %v9532_v9 = vpack.c.bf16 %v8225_v12, %v8210_v41 }
 0x49e   : > { %3875 = vmatmul.mubr.bf16.gmra.mrb[104].mxu1 %v9523_v37 }
 0x49f   : > { %3882 = vmatprep.mubr.bf16.mxu1 %v9524_v8  ;;  %v8494_v57 = vpop.f32.mrb[4].mxu0 }
 0x4a0   : > { %v8496_v27 = vpop.f32.mrb[5].mxu0 }
 0x4a1   : > { %v8498_v3 = vpop.f32.mrb[6].mxu0 }
 0x4a2   : > { %v8500_v50 = vpop.f32.mrb[7].mxu0 }
 0x4a6   : > { %3883 = vmatmul.mubr.bf16.gmra.mrb[108].mxu1 %v8045_v61  ;;  %v9531_v61 = vpack.c.bf16 %v8192_v51, %v8174_v33  ;;  %v9534_v33 = vpack.c.bf16 %v8263_v44, %v9533_v13  ;;  %v9535_v51 = vld [vmem:[#allocation117_spill] sm:$0xff]  ;;  %v8553_v44 = vld [vmem:[#allocation3 + $0x190] sm:$0xff]  ;;  %v9544_v13 = vld [vmem:[#allocation26_spill] sm:$0xff] }
 0x4a7   : > { %3890 = vmatprep.mubr.bf16.mxu1 %v9526_v58 }
 0x4ae   : > { %3891 = vmatmul.mubr.bf16.gmra.mrb[112].mxu1 %v9527_v16  ;;  %v9538_v16 = vld [vmem:[#allocation69_spill] sm:$0xff] }
 0x4af   : > { %3898 = vmatprep.mubr.bf16.mxu1 %v9529_v30  ;;  %v5852_v30 = vld [vmem:[%s8979_s2 + $0x180] sm:$0xff]  }
 0x4b1   : > { %v8510_v15 = vpop.f32.mrb[12].mxu0 }
 0x4b2   : > { %v8512_v17 = vpop.f32.mrb[13].mxu0 }
 0x4b3   : > { %v8514_v18 = vpop.f32.mrb[14].mxu0 }
 0x4b4   : > { %v8516_v42 = vpop.f32.mrb[15].mxu0 }
 0x4b6   : > { %3899 = vmatmul.mubr.bf16.gmra.mrb[116].mxu1 %v9530_v20  ;;  %v9541_v20 = vld [vmem:[#allocation67_spill] sm:$0xff] }
 0x4b7   : > { %3906 = vmatprep.mubr.bf16.mxu1 %v9531_v61  ;;  %v9542_v61 = vld [vmem:[#allocation72_spill] sm:$0xff] }
 0x4be   : > { %3907 = vmatmul.mubr.bf16.gmra.mrb[120].mxu1 %v8150_v35  ;;  %v9536_v35 = vpack.c.bf16 %v8295_v56, %v8277_v62  ;;  %v2849_v62 = vpack.c.bf16 %v8553_v44, %v8333_v55  ;;  %v8558_v56 = vld [vmem:[#allocation3 + $0x17a] sm:$0xff] }
 0x4bf   : > { %3914 = vmatprep.mubr.bf16.mxu1 %v9532_v9  ;;  %v9543_v9 = vpack.c.bf16 %v9541_v20, %v9542_v61  ;;  %v9551_v20 = vld [vmem:[#allocation70_spill] sm:$0xff] }
 0x4c3   : > { %v8526_v48 = vpop.f32.mrb[20].mxu0 }
 0x4c4   : > { %v8528_v22 = vpop.f32.mrb[21].mxu0 }
 0x4c5   : > { %v8530_v24 = vpop.f32.mrb[22].mxu0 }
 0x4c6   : > { %v8532_v34 = vpop.f32.mrb[23].mxu0  ;;  %3915 = vmatmul.mubr.bf16.gmra.mrb[124].mxu1 %v8199_v47  ;;  %v2848_v47 = vpack.c.bf16 %v8331_v11, %v8313_v21  ;;  %v8566_v21 = vpack.c.bf16 %v8558_v56, %v8306_v28 }
 0x4c7   : > { %3922 = vmatprep.mubr.bf16.mxu1 %v9534_v33  ;;  %v9545_v33 = vpack.c.bf16 %v9544_v13, %v7635_v52  ;;  %v5856_v13 = vld [vmem:[%s8979_s2 + $0x1a0] sm:$0xff]  }
 0x4ce   : > { %3923 = vmatmul.mubr.bf16.gmra.mrb[128].mxu1 %v9535_v51  ;;  %v5853_v51 = vld [vmem:[%s8979_s2 + $0x188] sm:$0xff]  }
 0x4cf   : > { %3930 = vmatprep.mubr.bf16.mxu1 %v9536_v35  ;;  %v8542_v41 = vpop.f32.mrb[28].mxu0 }
 0x4d0   : > { %v8544_v12 = vpop.f32.mrb[29].mxu0 }
 0x4d1   : > { %v8546_v36 = vpop.f32.mrb[30].mxu0 }
 0x4d2   : > { %v8548_v37 = vpop.f32.mrb[31].mxu0 }
 0x4d6   : > { %3931 = vmatmul.mubr.bf16.gmra.mrb[132].mxu1 %v8253_v10 }
 0x4d7   : > { %3938 = vmatprep.mubr.bf16.mxu1 %v2848_v47  ;;  %v5854_v47 = vld [vmem:[%s8979_s2 + $0x190] sm:$0xff]  }
 0x4de   : > { %3939 = vmatmul.mubr.bf16.gmra.mrb[136].mxu1 %v8302_v5  ;;  %v9540_v5 = vpack.c.bf16 %v9538_v16, %v9539_v59  ;;  %v5899_v16 = vld [vmem:[#allocation3 + $0x31] sm:$0xff] }
 0x4df   : > { %3946 = vmatprep.mubr.bf16.mxu1 %v2849_v62  ;;  %v2854_v52 = vpack.c.bf16 %v5899_v16, %v8051_v53  ;;  %v9553_v16 = vld [vmem:[#allocation38_spill] sm:$0xff] }
 0x4e1   : > { %v8560_v8 = vpop.f32.mrb[36].mxu0 }
 0x4e2   : > { %v8562_v4 = vpop.f32.mrb[37].mxu0 }
 0x4e3   : > { %v8568_v10 = vpop.f32.mrb[38].mxu0 }
 0x4e4   : > { %9537 = vst [vmem:[#allocation78_spill] sm:$0xff] %v8568_v10  ;;  %v8570_v58 = vpop.f32.mrb[39].mxu0 }
 0x4e6   : > { %3947 = vmatmul.mubr.bf16.gmra.mrb[140].mxu1 %v8566_v21 }
 0x4e7   : > { %3987 = vmatprep.mubr.bf16.mxu1 %v9540_v5 }
 0x4ee   : > { %3988 = vmatmul.mubr.bf16.vlgmr.msra.gmra.mrb[48].mxu1 %v9543_v9  ;;  %v5855_v9 = vld [vmem:[%s8979_s2 + $0x198] sm:$0xff]  }
 0x4ef   : > { %3995 = vmatprep.mubr.bf16.mxu1 %v9545_v33  ;;  %4181 = vmatpush1.bf16.msra.mxu1 %v5852_v30  ;;  %v9550_v30 = vld [vmem:[#allocation74_spill] sm:$0xff]  ;;  %v5900_v33 = vld [vmem:[#allocation3 + $0x39] sm:$0xff] }
 0x4f0   : > { %4182 = vmatprep.subr.bf16.mxu1 %v9255_v7  ;;  %v9552_v61 = vpack.c.bf16 %v9550_v30, %v9551_v20  ;;  %v5857_v30 = vld [vmem:[%s8979_s2 + $0x1a8] sm:$0xff]   ;;  %v5858_v20 = vld [vmem:[%s8979_s2 + $0x1b0] sm:$0xff]  }
 0x4f2   : > { %v8589_v35 = vpop.f32.mrb[44].mxu0 }
 0x4f3   : > { %9546 = vst [vmem:[#allocation77_spill] sm:$0xff] %v8589_v35  ;;  %4183 = vmatpush1.bf16.msra.mxu1 %v5853_v51  ;;  %v8594_v62 = vpop.f32.mrb[45].mxu0  ;;  %v2855_v51 = vpack.c.bf16 %v8051_v53, %v5900_v33 }
 0x4f4   : > { %9547 = vst [vmem:[#allocation35_spill] sm:$0xff] %v8594_v62  ;;  %4184 = vmatprep.subr.bf16.mxu1 %v9255_v7  ;;  %v8598_v59 = vpop.f32.mrb[46].mxu0  ;;  %v9588_v62 = vld [vmem:[#allocation18_spill] sm:$0xff] }
 0x4f5   : > { %9548 = vst [vmem:[#allocation82_spill] sm:$0xff] %v8598_v59  ;;  %v8600_v5 = vpop.f32.mrb[47].mxu0  ;;  %v9583_v59 = vld [vmem:[#allocation17_spill] sm:$0xff] }
 0x4f6   : > { %9549 = vst [vmem:[#allocation81_spill] sm:$0xff] %v8600_v5  ;;  %3996 = vmatmul.mubr.bf16.gmra.mrb[52].mxu1 %v2854_v52  ;;  %v9554_v52 = vld [vmem:[#allocation34_spill] sm:$0xff]  ;;  %v9587_v5 = vld [vmem:[#allocation24_spill] sm:$0xff] }
 0x4f7   : > { %4003 = vmatprep.mubr.bf16.mxu1 %v9552_v61  ;;  %4185 = vmatpush1.bf16.msra.mxu1 %v5854_v47  ;;  %v9555_v47 = vpack.c.bf16 %v9553_v16, %v9554_v52  ;;  %v9556_v61 = vld [vmem:[#allocation27_spill] sm:$0xff]  ;;  %v9560_v16 = vld [vmem:[#allocation42_spill] sm:$0xff]  ;;  %v5859_v52 = vld [vmem:[%s8979_s2 + $0x1b8] sm:$0xff]   ;;  %v9589_v10 = vpack.c.bf16 %v9587_v5, %v9588_v62 }
 0x4f8   : > { %4186 = vmatprep.subr.bf16.mxu1 %v9255_v7  ;;  %v9602_v5 = vld [vmem:[#allocation49_spill] sm:$0xff] }
 0x4fb   : > { %4187 = vmatpush1.bf16.msra.mxu1 %v5855_v9  ;;  %v9557_v9 = vld [vmem:[#allocation23_spill] sm:$0xff] }
 0x4fc   : > { %4188 = vmatprep.subr.bf16.mxu1 %v9255_v7  ;;  %v9558_v33 = vpack.c.bf16 %v9556_v61, %v9557_v9  ;;  %v9562_v9 = vld [vmem:[#allocation47_spill] sm:$0xff] }
 0x4fe   : > { %4004 = vmatmul.mubr.bf16.gmra.mrb[56].mxu1 %v2855_v51  ;;  %v9559_v51 = vld [vmem:[#allocation43_spill] sm:$0xff] }
 0x4ff   : > { %4011 = vmatprep.mubr.bf16.mxu1 %v9555_v47  ;;  %4189 = vmatpush1.bf16.msra.mxu1 %v5856_v13  ;;  %v9561_v13 = vpack.c.bf16 %v9559_v51, %v9560_v16  ;;  %v5860_v47 = vld [vmem:[%s8979_s2 + $0x1c0] sm:$0xff]   ;;  %v5861_v51 = vld [vmem:[%s8979_s2 + $0x1c8] sm:$0xff]   ;;  %v5862_v16 = vld [vmem:[%s8979_s2 + $0x1d0] sm:$0xff]  }
 0x500   : > { %4190 = vmatprep.subr.bf16.mxu1 %v9255_v7 }
 0x503   : > { %4191 = vmatpush1.bf16.msra.mxu1 %v5857_v30  ;;  %v5901_v30 = vld [vmem:[#allocation3 + $0x61] sm:$0xff] }
 0x504   : > { %4192 = vmatprep.subr.bf16.mxu1 %v9255_v7  ;;  %v2857_v61 = vpack.c.bf16 %v5901_v30, %v8051_v53  ;;  %v9565_v30 = vld [vmem:[#allocation51_spill] sm:$0xff] }
 0x506   : > { %4012 = vmatmul.mubr.bf16.gmra.mrb[60].mxu1 %v9558_v33  ;;  %v9563_v33 = vld [vmem:[#allocation46_spill] sm:$0xff] }
 0x507   : > { %4019 = vmatprep.mubr.bf16.mxu1 %v9561_v13  ;;  %4193 = vmatpush1.bf16.msra.mxu1 %v5858_v20  ;;  %v9564_v20 = vpack.c.bf16 %v9562_v9, %v9563_v33  ;;  %v5902_v13 = vld [vmem:[#allocation3 + $0x69] sm:$0xff]  ;;  %v5863_v9 = vld [vmem:[%s8979_s2 + $0x1d8] sm:$0xff]  }
 0x508   : > { %4194 = vmatprep.subr.bf16.mxu1 %v9255_v7  ;;  %v5864_v33 = vld [vmem:[%s8979_s2 + $0x1e0] sm:$0xff]  }
 0x50b   : > { %4195 = vmatpush1.bf16.msra.mxu1 %v5859_v52  ;;  %v2858_v52 = vpack.c.bf16 %v8051_v53, %v5902_v13 }
 0x50c   : > { %4196 = vmatprep.subr.bf16.mxu1 %v9255_v7 }
 0x50e   : > { %4020 = vmatmul.mubr.bf16.gmra.mrb[64].mxu1 %v2857_v61  ;;  %v9566_v61 = vld [vmem:[#allocation87_spill] sm:$0xff] }
 0x50f   : > { %4027 = vmatprep.mubr.bf16.mxu1 %v9564_v20  ;;  %4197 = vmatpush1.bf16.msra.mxu1 %v5860_v47  ;;  %v9567_v47 = vpack.c.bf16 %v9565_v30, %v9566_v61  ;;  %v9568_v20 = vld [vmem:[#allocation83_spill] sm:$0xff]  ;;  %v9572_v30 = vld [vmem:[#allocation85_spill] sm:$0xff] }
 0x510   : > { %4198 = vmatprep.subr.bf16.mxu1 %v9255_v7  ;;  %v5865_v61 = vld [vmem:[%s8979_s2 + $0x1e8] sm:$0xff]  }
 0x513   : > { %4199 = vmatpush1.bf16.msra.mxu1 %v5861_v51  ;;  %v9569_v51 = vld [vmem:[#allocation86_spill] sm:$0xff] }
 0x514   : > { %4200 = vmatprep.subr.bf16.mxu1 %v9255_v7  ;;  %v9570_v13 = vpack.c.bf16 %v9568_v20, %v9569_v51  ;;  %v9574_v51 = vld [vmem:[#allocation63_spill] sm:$0xff] }
 0x516   : > { %4028 = vmatmul.mubr.bf16.gmra.mrb[68].mxu1 %v2858_v52  ;;  %v9571_v52 = vld [vmem:[#allocation89_spill] sm:$0xff] }
 0x517   : > { %4035 = vmatprep.mubr.bf16.mxu1 %v9567_v47  ;;  %4201 = vmatpush1.bf16.msra.mxu1 %v5862_v16  ;;  %v9573_v16 = vpack.c.bf16 %v9571_v52, %v9572_v30  ;;  %v5866_v47 = vld [vmem:[%s8979_s2 + $0x1f0] sm:$0xff]   ;;  %v5867_v52 = vld [vmem:[%s8979_s2 + $0x1f8] sm:$0xff]  }
 0x518   : > { %4202 = vmatprep.subr.bf16.mxu1 %v9255_v7  ;;  %v5904_v30 = vld [vmem:[#allocation3 + $0x99] sm:$0xff] }
 0x51b   : > { %4203 = vmatpush1.bf16.msra.mxu1 %v5863_v9  ;;  %v5903_v9 = vld [vmem:[#allocation3 + $0x91] sm:$0xff] }
 0x51c   : > { %4204 = vmatprep.subr.bf16.mxu1 %v9255_v7  ;;  %v2860_v20 = vpack.c.bf16 %v5903_v9, %v8051_v53  ;;  %v9577_v9 = vld [vmem:[#allocation9_spill] sm:$0xff] }
 0x51e   : > { %4036 = vmatmul.mubr.bf16.gmra.mrb[72].mxu1 %v9570_v13  ;;  %v9575_v13 = vld [vmem:[#allocation91_spill] sm:$0xff] }
 0x51f   : > { %4043 = vmatprep.mubr.bf16.mxu1 %v9573_v16  ;;  %4205 = vmatpush1.bf16.msra.mxu1 %v5864_v33  ;;  %v9576_v33 = vpack.c.bf16 %v9574_v51, %v9575_v13  ;;  %v2861_v16 = vpack.c.bf16 %v8051_v53, %v5904_v30  ;;  %v9581_v13 = vld [vmem:[#allocation58_spill] sm:$0xff]  ;;  %v9586_v30 = vld [vmem:[#allocation4_spill] sm:$0xff] }
 0x520   : > { %4206 = vmatprep.subr.bf16.mxu1 %v9255_v7  ;;  %v2863_v35 = vpack.c.bf16 %v9586_v30, %v8051_v53 }
 0x523   : > { %4207 = vmatpush1.bf16.msra.mxu1 %v5865_v61  ;;  %v5905_v61 = vld [vmem:[%s8979_s2 + $0x200] sm:$0xff]  }
 0x524   : > { %4208 = vmatprep.subr.bf16.mxu1 %v9255_v7 }
 0x526   : > { %4044 = vmatmul.mubr.bf16.gmra.mrb[76].mxu1 %v2860_v20  ;;  %v9578_v20 = vld [vmem:[#allocation7_spill] sm:$0xff] }
 0x527   : > { %4051 = vmatprep.mubr.bf16.mxu1 %v9576_v33  ;;  %4209 = vmatpush1.bf16.msra.mxu1 %v5866_v47  ;;  %v9579_v51 = vpack.c.bf16 %v9577_v9, %v9578_v20  ;;  %v9580_v47 = vld [vmem:[#allocation62_spill] sm:$0xff]  ;;  %v9591_v20 = vld [vmem:[#allocation33_spill] sm:$0xff] }
 0x528   : > { %4210 = vmatprep.subr.bf16.mxu1 %v9255_v7  ;;  %v9582_v33 = vpack.c.bf16 %v9580_v47, %v9581_v13  ;;  %v9584_v7 = vld [vmem:[#allocation14_spill] sm:$0xff]  ;;  %v9594_v13 = vld [vmem:[#allocation20_spill] sm:$0xff] }
 0x52b   : > { %4211 = vmatpush1.bf16.msra.mxu1 %v5867_v52  ;;  %v9585_v52 = vpack.c.bf16 %v9583_v59, %v9584_v7  ;;  %v9597_v7 = vld [vmem:[#allocation48_spill] sm:$0xff] }
 0x52c   : > { %5200 = vmatprep.subr.bf16.mxu1 %v5905_v61 }
 0x52e   : > { %4052 = vmatmul.mubr.bf16.gmra.mrb[80].mxu1 %v2861_v16  ;;  %v9590_v16 = vld [vmem:[#allocation11_spill] sm:$0xff] }
 0x52f   : > { %4059 = vmatprep.mubr.bf16.mxu1 %v9579_v51  ;;  %v2864_v9 = vpack.c.bf16 %v8051_v53, %v9590_v16  ;;  %v9592_v51 = vld [vmem:[#allocation32_spill] sm:$0xff] }
 0x530   : > { %v9593_v47 = vpack.c.bf16 %v9591_v20, %v9592_v51  ;;  %v9605_v51 = vld [vmem:[#allocation94_spill] sm:$0xff] }
 0x536   : > { %4060 = vmatmul.mubr.bf16.gmra.mrb[84].mxu1 %v9582_v33  ;;  %v9595_v33 = vld [vmem:[#allocation16_spill] sm:$0xff] }
 0x537   : > { %4067 = vmatprep.mubr.bf16.mxu1 %v9585_v52  ;;  %v9596_v59 = vpack.c.bf16 %v9594_v13, %v9595_v33  ;;  %v9598_v52 = vld [vmem:[#allocation41_spill] sm:$0xff] }
 0x538   : > { %v9599_v30 = vpack.c.bf16 %v9597_v7, %v9598_v52  ;;  %v9608_v33 = vld [vmem:[#allocation53_spill] sm:$0xff]  ;;  %v9611_v52 = vld [vmem:[#allocation102_spill] sm:$0xff] }
 0x53e   : > { %4068 = vmatmul.mubr.bf16.gmra.mrb[88].mxu1 %v2863_v35  ;;  %v9600_v35 = vld [vmem:[#allocation25_spill] sm:$0xff] }
 0x53f   : > { %4075 = vmatprep.mubr.bf16.mxu1 %v9589_v10  ;;  %v2866_v62 = vpack.c.bf16 %v9600_v35, %v8051_v53  ;;  %v9601_v10 = vld [vmem:[#allocation60_spill] sm:$0xff] }
 0x540   : > { %v9603_v16 = vpack.c.bf16 %v9601_v10, %v9602_v5  ;;  %v9615_v5 = vld [vmem:[#allocation108_spill] sm:$0xff] }
 0x546   : > { %4076 = vmatmul.mubr.bf16.gmra.mrb[92].mxu1 %v2864_v9  ;;  %v9604_v9 = vld [vmem:[#allocation36_spill] sm:$0xff] }
 0x547   : > { %4083 = vmatprep.mubr.bf16.mxu1 %v9593_v47  ;;  %v2867_v20 = vpack.c.bf16 %v8051_v53, %v9604_v9  ;;  %v9606_v47 = vld [vmem:[#allocation66_spill] sm:$0xff] }
 0x548   : > { %v9607_v13 = vpack.c.bf16 %v9605_v51, %v9606_v47  ;;  %v9619_v47 = vld [vmem:[#allocation113_spill] sm:$0xff] }
 0x54e   : > { %4084 = vmatmul.mubr.bf16.gmra.mrb[96].mxu1 %v9596_v59  ;;  %v9609_v59 = vld [vmem:[#allocation45_spill] sm:$0xff] }
 0x54f   : > { %4091 = vmatprep.mubr.bf16.mxu1 %v9599_v30  ;;  %v9610_v7 = vpack.c.bf16 %v9608_v33, %v9609_v59  ;;  %v9612_v30 = vld [vmem:[#allocation99_spill] sm:$0xff]  ;;  %v9622_v59 = vld [vmem:[#allocation105_spill] sm:$0xff] }
 0x550   : > { %v9613_v35 = vpack.c.bf16 %v9611_v52, %v9612_v30  ;;  %v9625_v30 = vpack.c.bf16 %v8242_v46, %v8223_v29  ;;  %v2902_v29 = vpack.c.bf16 %v8335_v63, %v8558_v56  ;;  %v9633_v46 = vld [vmem:[#allocation121_spill] sm:$0xff]  ;;  %v9636_v56 = vld [vmem:[#allocation71_spill] sm:$0xff] }
 0x556   : > { %4092 = vmatmul.mubr.bf16.gmra.mrb[100].mxu1 %v2866_v62  ;;  %v9614_v62 = vld [vmem:[#allocation61_spill] sm:$0xff] }
 0x557   : > { %4099 = vmatprep.mubr.bf16.mxu1 %v9603_v16  ;;  %v2869_v10 = vpack.c.bf16 %v9614_v62, %v8051_v53  ;;  %v9616_v16 = vld [vmem:[#allocation103_spill] sm:$0xff] }
 0x558   : > { %v9617_v9 = vpack.c.bf16 %v9615_v5, %v9616_v16  ;;  %v9628_v5 = vld [vmem:[#allocation119_spill] sm:$0xff] }
 0x55e   : > { %4100 = vmatmul.mubr.bf16.gmra.mrb[104].mxu1 %v2867_v20  ;;  %v9618_v20 = vld [vmem:[#allocation96_spill] sm:$0xff] }
 0x55f   : > { %4107 = vmatprep.mubr.bf16.mxu1 %v9607_v13  ;;  %v2870_v51 = vpack.c.bf16 %v8051_v53, %v9618_v20  ;;  %v9620_v13 = vld [vmem:[#allocation112_spill] sm:$0xff] }
 0x560   : > { %v9621_v33 = vpack.c.bf16 %v9619_v47, %v9620_v13  ;;  %v9634_v13 = vld [vmem:[#allocation118_spill] sm:$0xff] }
 0x566   : > { %4108 = vmatmul.mubr.bf16.gmra.mrb[108].mxu1 %v9610_v7  ;;  %v9623_v7 = vld [vmem:[#allocation101_spill] sm:$0xff] }
 0x567   : > { %4115 = vmatprep.mubr.bf16.mxu1 %v9613_v35  ;;  %v9624_v52 = vpack.c.bf16 %v9622_v59, %v9623_v7  ;;  %v9626_v35 = vld [vmem:[#allocation109_spill] sm:$0xff]  ;;  %v8761_v59 = vld [vmem:[#allocation3 + $0x192] sm:$0xff]  ;;  %v2875_v7 = vpack.c.bf16 %v8281_v14, %v8051_v53 }
 0x568   : > { %v2872_v62 = vpack.c.bf16 %v9626_v35, %v8051_v53  ;;  %v9638_v35 = vld [vmem:[#allocation75_spill] sm:$0xff] }
 0x56e   : > { %4116 = vmatmul.mubr.bf16.gmra.mrb[112].mxu1 %v2869_v10  ;;  %v9627_v10 = vld [vmem:[#allocation124_spill] sm:$0xff] }
 0x56f   : > { %4123 = vmatprep.mubr.bf16.mxu1 %v9617_v9  ;;  %v9629_v16 = vpack.c.bf16 %v9627_v10, %v9628_v5  ;;  %v9630_v9 = vld [vmem:[#allocation114_spill] sm:$0xff]  ;;  %v5907_v10 = vld [vmem:[%s8979_s2 + $0x210] sm:$0xff]   ;;  %v9639_v5 = vld [vmem:[#allocation73_spill] sm:$0xff] }
 0x570   : > { %v2873_v20 = vpack.c.bf16 %v8051_v53, %v9630_v9  ;;  %v5909_v9 = vld [vmem:[%s8979_s2 + $0x220] sm:$0xff]  }
 0x576   : > { %4124 = vmatmul.mubr.bf16.gmra.mrb[116].mxu1 %v2870_v51  ;;  %v9631_v51 = vld [vmem:[#allocation127_spill] sm:$0xff] }
 0x577   : > { %4131 = vmatprep.mubr.bf16.mxu1 %v9621_v33  ;;  %v9632_v47 = vpack.c.bf16 %v8306_v28, %v9631_v51  ;;  %v9635_v33 = vpack.c.bf16 %v9633_v46, %v9634_v13  ;;  %v2876_v28 = vpack.c.bf16 %v8051_v53, %v8315_v32  ;;  %v9642_v51 = vld [vmem:[#allocation39_spill] sm:$0xff]  ;;  %v9644_v13 = vld [vmem:[#allocation80_spill] sm:$0xff] }
 0x578   : > { %v9643_v46 = vld [vmem:[#allocation79_spill] sm:$0xff] }
 0x57e   : > { %4132 = vmatmul.mubr.bf16.gmra.mrb[120].mxu1 %v9624_v52  ;;  %v2903_v52 = vpack.c.bf16 %v8761_v59, %v8337_v54 }
 0x57f   : > { %4139 = vmatprep.mubr.bf16.mxu1 %v9625_v30  ;;  %v9637_v30 = vld [vmem:[#allocation30_spill] sm:$0xff] }
 0x586   : > { %4140 = vmatmul.mubr.bf16.gmra.mrb[124].mxu1 %v2872_v62  ;;  %v5906_v62 = vld [vmem:[%s8979_s2 + $0x208] sm:$0xff]  }
 0x587   : > { %4147 = vmatprep.mubr.bf16.mxu1 %v9629_v16  ;;  %v9640_v16 = vld [vmem:[#allocation31_spill] sm:$0xff] }
 0x58e   : > { %4148 = vmatmul.mubr.bf16.gmra.mrb[128].mxu1 %v2873_v20  ;;  %v9641_v20 = vld [vmem:[#allocation76_spill] sm:$0xff] }
 0x58f   : > { %4155 = vmatprep.mubr.bf16.mxu1 %v9632_v47  ;;  %v5910_v47 = vld [vmem:[%s8979_s2 + $0x228] sm:$0xff]  }
 0x596   : > { %4156 = vmatmul.mubr.bf16.gmra.mrb[132].mxu1 %v9635_v33  ;;  %v5912_v33 = vld [vmem:[%s8979_s2 + $0x238] sm:$0xff]  }
 0x597   : > { %4163 = vmatprep.mubr.bf16.mxu1 %v2902_v29  ;;  %v5911_v29 = vld [vmem:[%s8979_s2 + $0x230] sm:$0xff]  }
 0x59e   : > { %4164 = vmatmul.mubr.bf16.gmra.mrb[136].mxu1 %v2875_v7  ;;  %v9645_v7 = vld [vmem:[#allocation50_spill] sm:$0xff] }
 0x59f   : > { %4171 = vmatprep.mubr.bf16.mxu1 %v2903_v52  ;;  %v9646_v52 = vld [vmem:[#allocation84_spill] sm:$0xff] }
 0x5a6   : > { %4172 = vmatmul.mubr.bf16.gmra.mrb[140].mxu1 %v2876_v28  ;;  %v9647_v28 = vld [vmem:[#allocation54_spill] sm:$0xff] }
 0x5a7   : > { %4212 = vmatprep.mubr.bf16.mxu1 %v9636_v56  ;;  %v9648_v56 = vld [vmem:[#allocation88_spill] sm:$0xff] }
 0x5ae   : > { %4213 = vmatmul.mubr.bf16.vlgmr.msra.gmra.mrb[48].mxu1 %v9637_v30  ;;  %v9649_v30 = vld [vmem:[#allocation92_spill] sm:$0xff] }
 0x5af   : > { %4220 = vmatprep.mubr.bf16.mxu1 %v9638_v35  ;;  %5208 = vmatpush3.bf16.msra.mxu1 %v5905_v61  ;;  %v5908_v61 = vld [vmem:[%s8979_s2 + $0x218] sm:$0xff]   ;;  %v9650_v35 = vld [vmem:[#allocation90_spill] sm:$0xff] }
 0x5b0   : > { %5201 = vmatprep.subr.bf16.mxu1 %v5906_v62 }
 0x5b3   : > { %5209 = vmatpush3.bf16.msra.mxu1 %v5906_v62  ;;  %v9651_v62 = vld [vmem:[#allocation5_spill] sm:$0xff] }
 0x5b4   : > { %5202 = vmatprep.subr.bf16.mxu1 %v5907_v10 }
 0x5b6   : > { %4221 = vmatmul.mubr.bf16.gmra.mrb[52].mxu1 %v9639_v5  ;;  %v9653_v5 = vld [vmem:[#allocation12_spill] sm:$0xff] }
 0x5b7   : > { %4228 = vmatprep.mubr.bf16.mxu1 %v9640_v16  ;;  %5210 = vmatpush3.bf16.msra.mxu1 %v5907_v10  ;;  %v9652_v10 = vld [vmem:[#allocation6_spill] sm:$0xff]  ;;  %v9654_v16 = vld [vmem:[#allocation13_spill] sm:$0xff] }
 0x5b8   : > { %5203 = vmatprep.subr.bf16.mxu1 %v5908_v61 }
 0x5bb   : > { %5211 = vmatpush3.bf16.msra.mxu1 %v5908_v61  ;;  %v9655_v61 = vld [vmem:[#allocation21_spill] sm:$0xff] }
 0x5bc   : > { %5204 = vmatprep.subr.bf16.mxu1 %v5909_v9 }
 0x5be   : > { %4229 = vmatmul.mubr.bf16.gmra.mrb[56].mxu1 %v9641_v20  ;;  %v9657_v20 = vld [vmem:[#allocation28_spill] sm:$0xff] }
 0x5bf   : > { %4236 = vmatprep.mubr.bf16.mxu1 %v9642_v51  ;;  %5212 = vmatpush3.bf16.msra.mxu1 %v5909_v9  ;;  %v9656_v9 = vld [vmem:[#allocation22_spill] sm:$0xff]  ;;  %v9658_v51 = vld [vmem:[#allocation29_spill] sm:$0xff] }
 0x5c0   : > { %5205 = vmatprep.subr.bf16.mxu1 %v5910_v47 }
 0x5c3   : > { %5213 = vmatpush3.bf16.msra.mxu1 %v5910_v47  ;;  %v9659_v47 = vld [vmem:[#allocation37_spill] sm:$0xff] }
 0x5c4   : > { %5206 = vmatprep.subr.bf16.mxu1 %v5911_v29 }
 0x5c6   : > { %4237 = vmatmul.mubr.bf16.gmra.mrb[60].mxu1 %v9643_v46  ;;  %v9661_v46 = vld [vmem:[#allocation56_spill] sm:$0xff] }
 0x5c7   : > { %4244 = vmatprep.mubr.bf16.mxu1 %v9644_v13  ;;  %5214 = vmatpush3.bf16.msra.mxu1 %v5911_v29  ;;  %v9660_v29 = vld [vmem:[#allocation40_spill] sm:$0xff]  ;;  %v9662_v13 = vld [vmem:[#allocation57_spill] sm:$0xff] }
 0x5c8   : > { %5207 = vmatprep.subr.bf16.mxu1 %v5912_v33 }
 0x5cb   : > { %5215 = vmatpush3.bf16.msra.mxu1 %v5912_v33  ;;  %v9663_v33 = vld [vmem:[#allocation64_spill] sm:$0xff] }
 0x5ce   : > { %4245 = vmatmul.mubr.bf16.gmra.mrb[64].mxu1 %v9645_v7  ;;  %v9664_v7 = vld [vmem:[#allocation65_spill] sm:$0xff] }
 0x5cf   : > { %4252 = vmatprep.mubr.bf16.mxu1 %v9646_v52  ;;  %v9665_v52 = vld [vmem:[#allocation97_spill] sm:$0xff] }
 0x5d6   : > { %4253 = vmatmul.mubr.bf16.gmra.mrb[68].mxu1 %v9647_v28  ;;  %v9666_v28 = vld [vmem:[#allocation98_spill] sm:$0xff] }
 0x5d7   : > { %4260 = vmatprep.mubr.bf16.mxu1 %v9648_v56  ;;  %v9667_v56 = vld [vmem:[#allocation106_spill] sm:$0xff] }
 0x5de   : > { %4261 = vmatmul.mubr.bf16.gmra.mrb[72].mxu1 %v9649_v30  ;;  %v9668_v30 = vld [vmem:[#allocation107_spill] sm:$0xff] }
 0x5df   : > { %4268 = vmatprep.mubr.bf16.mxu1 %v9650_v35  ;;  %v9669_v35 = vld [vmem:[#allocation110_spill] sm:$0xff] }
 0x5e6   : > { %4269 = vmatmul.mubr.bf16.gmra.mrb[76].mxu1 %v9651_v62  ;;  %v9670_v62 = vld [vmem:[#allocation111_spill] sm:$0xff] }
 0x5e7   : > { %4276 = vmatprep.mubr.bf16.mxu1 %v9652_v10  ;;  %v9671_v10 = vld [vmem:[#allocation115_spill] sm:$0xff] }
 0x5ee   : > { %4277 = vmatmul.mubr.bf16.gmra.mrb[80].mxu1 %v9653_v5  ;;  %v9672_v5 = vld [vmem:[#allocation116_spill] sm:$0xff] }
 0x5ef   : > { %4284 = vmatprep.mubr.bf16.mxu1 %v9654_v16  ;;  %v9673_v16 = vld [vmem:[#allocation122_spill] sm:$0xff] }
 0x5f6   : > { %4285 = vmatmul.mubr.bf16.gmra.mrb[84].mxu1 %v9655_v61  ;;  %v9674_v61 = vld [vmem:[#allocation123_spill] sm:$0xff] }
 0x5f7   : > { %4292 = vmatprep.mubr.bf16.mxu1 %v9656_v9  ;;  %v9675_v9 = vld [vmem:[#allocation125_spill] sm:$0xff] }
 0x5fe   : > { %4293 = vmatmul.mubr.bf16.gmra.mrb[88].mxu1 %v9657_v20  ;;  %v9676_v20 = vld [vmem:[#allocation126_spill] sm:$0xff] }
 0x5ff   : > { %4300 = vmatprep.mubr.bf16.mxu1 %v9658_v51  ;;  %v9677_v51 = vld [vmem:[#allocation128_spill] sm:$0xff] }
 0x606   : > { %4301 = vmatmul.mubr.bf16.gmra.mrb[92].mxu1 %v9659_v47  ;;  %v9678_v47 = vpack.c.bf16 %v8315_v32, %v8281_v14  ;;  %v2909_v32 = vpack.c.bf16 %v8051_v53, %v8051_v53  ;;  %v2916_v14 = vld [vmem:[#allocation3 + $0x19a] sm:$0xff] }
 0x607   : > { %4308 = vmatprep.mubr.bf16.mxu1 %v9660_v29  ;;  %v2910_v29 = vld [vmem:[#allocation3 + $0x199] sm:$0xff] }
 0x60e   : > { %4309 = vmatmul.mubr.bf16.gmra.mrb[96].mxu1 %v9661_v46  ;;  %v2914_v46 = vpack.c.bf16 %v2910_v29, %v8051_v53 }
 0x60f   : > { %4316 = vmatprep.mubr.bf16.mxu1 %v9662_v13  ;;  %v9679_v13 = vpack.c.bf16 %v8333_v55, %v8331_v11  ;;  %v9680_v11 = vpack.c.bf16 %v8337_v54, %v8335_v63  ;;  %v2917_v55 = vld [vmem:[#allocation3 + $0x1a2] sm:$0xff] }
 0x616   : > { %4317 = vmatmul.mubr.bf16.gmra.mrb[100].mxu1 %v9663_v33  ;;  %v2911_v33 = vld [vmem:[#allocation3 + $0x1a1] sm:$0xff] }
 0x617   : > { %4324 = vmatprep.mubr.bf16.mxu1 %v9664_v7  ;;  %v2912_v7 = vld [vmem:[#allocation3 + $0x1a9] sm:$0xff] }
 0x61e   : > { %4325 = vmatmul.mubr.bf16.gmra.mrb[104].mxu1 %v9665_v52  ;;  %v2904_v52 = vld [vmem:[#allocation3 + $0x198] sm:$0xff] }
 0x61f   : > { %4332 = vmatprep.mubr.bf16.mxu1 %v9666_v28  ;;  %v2915_v28 = vpack.c.bf16 %v2912_v7, %v2911_v33 }
 0x626   : > { %4333 = vmatmul.mubr.bf16.gmra.mrb[108].mxu1 %v9667_v56  ;;  %v2908_v56 = vpack.c.bf16 %v2904_v52, %v8553_v44  ;;  %v8850_v44 = vld [vmem:[%s8981_s4] ss:$0 sm:$0xff] }
 0x627   : > { %4340 = vmatprep.mubr.bf16.mxu1 %v9668_v30  ;;  %v2920_v30 = vpack.c.bf16 %v2916_v14, %v8761_v59 }
 0x62e   : > { %4341 = vmatmul.mubr.bf16.gmra.mrb[112].mxu1 %v9669_v35  ;;  %v2918_v35 = vld [vmem:[#allocation3 + $0x1aa] sm:$0xff] }
 0x62f   : > { %4348 = vmatprep.mubr.bf16.mxu1 %v9670_v62  ;;  %v2921_v62 = vpack.c.bf16 %v2918_v35, %v2917_v55 }
 0x636   : > { %4349 = vmatmul.mubr.bf16.gmra.mrb[116].mxu1 %v9671_v10 }
 0x637   : > { %4356 = vmatprep.mubr.bf16.mxu1 %v9672_v5 }
 0x63e   : > { %4357 = vmatmul.mubr.bf16.gmra.mrb[120].mxu1 %v9673_v16 }
 0x63f   : > { %4364 = vmatprep.mubr.bf16.mxu1 %v9674_v61 }
 0x646   : > { %4365 = vmatmul.mubr.bf16.gmra.mrb[124].mxu1 %v9675_v9 }
 0x647   : > { %4372 = vmatprep.mubr.bf16.mxu1 %v9676_v20 }
 0x64e   : > { %4373 = vmatmul.mubr.bf16.gmra.mrb[128].mxu1 %v9677_v51 }
 0x64f   : > { %4380 = vmatprep.mubr.bf16.mxu1 %v9678_v47 }
 0x656   : > { %4381 = vmatmul.mubr.bf16.gmra.mrb[132].mxu1 %v9679_v13 }
 0x657   : > { %4388 = vmatprep.mubr.bf16.mxu1 %v2914_v46 }
 0x65e   : > { %4389 = vmatmul.mubr.bf16.gmra.mrb[136].mxu1 %v2908_v56 }
 0x65f   : > { %4396 = vmatprep.mubr.bf16.mxu1 %v2915_v28 }
 0x666   : > { %4397 = vmatmul.mubr.bf16.gmra.mrb[140].mxu1 %v2909_v32 }
 0x667   : > { %5192 = vmatprep.mubr.bf16.mxu1 %v8566_v21 }
 0x66e   : > { %5193 = vmatmul.mubr.bf16.vlgmr.msra.gmra.mrb[144].mxu1 %v9680_v11 }
 0x66f   : > { %5196 = vmatprep.mubr.bf16.mxu1 %v2920_v30 }
 0x676   : > { %5197 = vmatmul.mubr.bf16.gmra.mrb[148].mxu1 %v2921_v62 }
 0x681   : > { %v4214_v53 = vpop.f32.mrb[48].mxu1 }
 0x682   : > { %v5232_v21 = vadd.f32 %v8850_v44, %v4214_v53  ;;  %v4216_v10 = vpop.f32.mrb[49].mxu1 }
 0x683   : > { %v4217_v5 = vpop.f32.mrb[50].mxu1 }
 0x684   : > { %v4440_v59 = vadd.f32 %v5232_v21, %v8426_v40  ;;  %v5233_v63 = vadd.f32 %v8850_v44, %v4217_v5  ;;  %v4219_v54 = vpop.f32.mrb[51].mxu1 }
 0x686   : > { %v4443_v16 = vadd.f32 %v5233_v63, %v8431_v39  ;;  %v4630_v33 = vmax.f32 %v4440_v59, 0.0 }
 0x689   : > { %v4222_v61 = vpop.f32.mrb[52].mxu1 }
 0x68a   : > { %v5234_v9 = vadd.f32 %v8850_v44, %v4222_v61  ;;  %v4224_v20 = vpop.f32.mrb[53].mxu1 }
 0x68b   : > { %v4225_v51 = vpop.f32.mrb[54].mxu1 }
 0x68c   : > { %v4448_v47 = vadd.f32 %v5234_v9, %v8421_v0  ;;  %v5235_v29 = vadd.f32 %v8850_v44, %v4225_v51  ;;  %v4227_v46 = vpop.f32.mrb[55].mxu1  ;;  %v4631_v0 = vmax.f32 %v4443_v16, 0.0 }
 0x68e   : > { %v4451_v13 = vadd.f32 %v5235_v29, %v8429_v26  ;;  %v4632_v26 = vmax.f32 %v4448_v47, 0.0 }
 0x690   : > { %v4633_v7 = vmax.f32 %v4451_v13, 0.0 }
 0x691   : > { %v4230_v40 = vpop.f32.mrb[56].mxu1 }
 0x692   : > { %v4678_v52 = vmax.f32 %v4630_v33, %v4633_v7  ;;  %v5236_v28 = vadd.f32 %v8850_v44, %v4230_v40  ;;  %v4232_v56 = vpop.f32.mrb[57].mxu1 }
 0x693   : > { %v4233_v39 = vpop.f32.mrb[58].mxu1 }
 0x694   : > { %4702 = vst [vmem:[#allocation2] sm:$0xff] %v4678_v52  ;;  %v4456_v32 = vadd.f32 %v5236_v28, %v8448_v23  ;;  %v5237_v14 = vadd.f32 %v8850_v44, %v4233_v39  ;;  %v4235_v30 = vpop.f32.mrb[59].mxu1 }
 0x696   : > { %v4634_v11 = vmax.f32 %v4456_v32, 0.0  ;;  %v4459_v55 = vadd.f32 %v5237_v14, %v8452_v60 }
 0x698   : > { %v4679_v35 = vmax.f32 %v4631_v0, %v4634_v11  ;;  %v4635_v62 = vmax.f32 %v4459_v55, 0.0 }
 0x699   : > { %v4238_v53 = vpop.f32.mrb[60].mxu1 }
 0x69a   : > { %4703 = vst [vmem:[#allocation2 + $0x8] sm:$0xff] %v4679_v35  ;;  %v4680_v21 = vmax.f32 %v4632_v26, %v4635_v62  ;;  %v5238_v10 = vadd.f32 %v8850_v44, %v4238_v53  ;;  %v4240_v5 = vpop.f32.mrb[61].mxu1 }
 0x69b   : > { %v4241_v59 = vpop.f32.mrb[62].mxu1 }
 0x69c   : > { %4704 = vst [vmem:[#allocation2 + $0x10] sm:$0xff] %v4680_v21  ;;  %v4464_v23 = vadd.f32 %v5238_v10, %v8446_v19  ;;  %v5239_v63 = vadd.f32 %v8850_v44, %v4241_v59  ;;  %v4243_v54 = vpop.f32.mrb[63].mxu1 }
 0x69e   : > { %v4467_v16 = vadd.f32 %v5239_v63, %v8450_v43  ;;  %v4636_v7 = vmax.f32 %v4464_v23, 0.0 }
 0x6a0   : > { %v4637_v0 = vmax.f32 %v4467_v16, 0.0 }
 0x6a1   : > { %v4726_v60 = vld [vmem:[#allocation2 + $0x1] sm:$0xff]  ;;  %v4246_v61 = vpop.f32.mrb[64].mxu1 }
 0x6a2   : > { %v4750_v9 = vmax.f32 %v4678_v52, %v4726_v60  ;;  %v5240_v20 = vadd.f32 %v8850_v44, %v4246_v61  ;;  %v4248_v51 = vpop.f32.mrb[65].mxu1 }
 0x6a3   : > { %v4727_v19 = vld [vmem:[#allocation2 + $0x9] sm:$0xff]  ;;  %v4249_v47 = vpop.f32.mrb[66].mxu1 }
 0x6a4   : > { %4774 = vst [vmem:[%s8872_s17] sm:$0xff] %v4750_v9  ;;  %v4751_v29 = vmax.f32 %v4679_v35, %v4727_v19  ;;  %v4472_v46 = vadd.f32 %v5240_v20, %v8464_v49  ;;  %v5241_v43 = vadd.f32 %v8850_v44, %v4249_v47  ;;  %v4251_v13 = vpop.f32.mrb[67].mxu1 }
 0x6a6   : > { %4775 = vst [vmem:[%s8872_s17 + $0x8] sm:$0xff] %v4751_v29  ;;  %v4475_v33 = vadd.f32 %v5241_v43, %v8468_v38  ;;  %v4638_v38 = vmax.f32 %v4472_v46, 0.0 }
 0x6a8   : > { %v4639_v40 = vmax.f32 %v4475_v33, 0.0 }
 0x6a9   : > { %v4254_v28 = vpop.f32.mrb[68].mxu1 }
 0x6aa   : > { %v4681_v56 = vmax.f32 %v4636_v7, %v4639_v40  ;;  %v5242_v52 = vadd.f32 %v8850_v44, %v4254_v28  ;;  %v4256_v39 = vpop.f32.mrb[69].mxu1 }
 0x6ab   : > { %v4257_v32 = vpop.f32.mrb[70].mxu1 }
 0x6ac   : > { %4705 = vst [vmem:[#allocation2 + $0x18] sm:$0xff] %v4681_v56  ;;  %v4480_v14 = vadd.f32 %v5242_v52, %v8462_v1  ;;  %v5243_v30 = vadd.f32 %v8850_v44, %v4257_v32  ;;  %v4259_v49 = vpop.f32.mrb[71].mxu1 }
 0x6ae   : > { %v4640_v11 = vmax.f32 %v4480_v14, 0.0  ;;  %v4483_v55 = vadd.f32 %v5243_v30, %v8466_v2 }
 0x6b0   : > { %v4682_v26 = vmax.f32 %v4637_v0, %v4640_v11  ;;  %v4641_v35 = vmax.f32 %v4483_v55, 0.0 }
 0x6b1   : > { %v4262_v62 = vpop.f32.mrb[72].mxu1 }
 0x6b2   : > { %4706 = vst [vmem:[#allocation2 + $0x20] sm:$0xff] %v4682_v26  ;;  %v4683_v53 = vmax.f32 %v4638_v38, %v4641_v35  ;;  %v5244_v10 = vadd.f32 %v8850_v44, %v4262_v62  ;;  %v4264_v5 = vpop.f32.mrb[73].mxu1 }
 0x6b3   : > { %v4728_v59 = vld [vmem:[#allocation2 + $0x11] sm:$0xff]  ;;  %v4265_v1 = vpop.f32.mrb[74].mxu1 }
 0x6b4   : > { %v4752_v23 = vmax.f32 %v4680_v21, %v4728_v59  ;;  %4707 = vst [vmem:[#allocation2 + $0x28] sm:$0xff] %v4683_v53  ;;  %v4488_v63 = vadd.f32 %v5244_v10, %v8480_v25  ;;  %v5245_v54 = vadd.f32 %v8850_v44, %v4265_v1  ;;  %v4267_v2 = vpop.f32.mrb[75].mxu1 }
 0x6b6   : > { %4776 = vst [vmem:[%s8872_s17 + $0x10] sm:$0xff] %v4752_v23  ;;  %v4491_v16 = vadd.f32 %v5245_v54, %v8484_v31  ;;  %v4642_v13 = vmax.f32 %v4488_v63, 0.0 }
 0x6b8   : > { %v4643_v32 = vmax.f32 %v4491_v16, 0.0 }
 0x6b9   : > { %v4729_v60 = vld [vmem:[#allocation2 + $0x19] sm:$0xff]  ;;  %v4270_v61 = vpop.f32.mrb[76].mxu1 }
 0x6ba   : > { %v4753_v9 = vmax.f32 %v4681_v56, %v4729_v60  ;;  %v5246_v20 = vadd.f32 %v8850_v44, %v4270_v61  ;;  %v4272_v51 = vpop.f32.mrb[77].mxu1 }
 0x6bb   : > { %v4730_v19 = vld [vmem:[#allocation2 + $0x21] sm:$0xff]  ;;  %v4273_v47 = vpop.f32.mrb[78].mxu1 }
 0x6bc   : > { %4777 = vst [vmem:[%s8872_s17 + $0x18] sm:$0xff] %v4753_v9  ;;  %v4754_v21 = vmax.f32 %v4682_v26, %v4730_v19  ;;  %v4496_v29 = vadd.f32 %v5246_v20, %v8478_v45  ;;  %v5247_v25 = vadd.f32 %v8850_v44, %v4273_v47  ;;  %v4275_v46 = vpop.f32.mrb[79].mxu1 }
 0x6be   : > { %4778 = vst [vmem:[%s8872_s17 + $0x20] sm:$0xff] %v4754_v21  ;;  %v4499_v43 = vadd.f32 %v5247_v25, %v8482_v6  ;;  %v4644_v6 = vmax.f32 %v4496_v29, 0.0 }
 0x6c0   : > { %v4645_v31 = vmax.f32 %v4499_v43, 0.0 }
 0x6c1   : > { %v4278_v33 = vpop.f32.mrb[80].mxu1 }
 0x6c2   : > { %v4684_v7 = vmax.f32 %v4642_v13, %v4645_v31  ;;  %v5248_v40 = vadd.f32 %v8850_v44, %v4278_v33  ;;  %v4280_v28 = vpop.f32.mrb[81].mxu1 }
 0x6c3   : > { %v4281_v56 = vpop.f32.mrb[82].mxu1 }
 0x6c4   : > { %4708 = vst [vmem:[#allocation2 + $0x30] sm:$0xff] %v4684_v7  ;;  %v4504_v52 = vadd.f32 %v5248_v40, %v8496_v27  ;;  %v5249_v39 = vadd.f32 %v8850_v44, %v4281_v56  ;;  %v4283_v45 = vpop.f32.mrb[83].mxu1 }
 0x6c6   : > { %v4646_v14 = vmax.f32 %v4504_v52, 0.0  ;;  %v4507_v30 = vadd.f32 %v5249_v39, %v8500_v50 }
 0x6c8   : > { %v4685_v49 = vmax.f32 %v4643_v32, %v4646_v14  ;;  %v4647_v0 = vmax.f32 %v4507_v30, 0.0 }
 0x6c9   : > { %v4286_v11 = vpop.f32.mrb[84].mxu1 }
 0x6ca   : > { %4709 = vst [vmem:[#allocation2 + $0x38] sm:$0xff] %v4685_v49  ;;  %v4686_v55 = vmax.f32 %v4644_v6, %v4647_v0  ;;  %v5250_v38 = vadd.f32 %v8850_v44, %v4286_v11  ;;  %v4288_v26 = vpop.f32.mrb[85].mxu1 }
 0x6cb   : > { %v4731_v35 = vld [vmem:[#allocation2 + $0x29] sm:$0xff]  ;;  %v4289_v27 = vpop.f32.mrb[86].mxu1 }
 0x6cc   : > { %v4755_v62 = vmax.f32 %v4683_v53, %v4731_v35  ;;  %4710 = vst [vmem:[#allocation2 + $0x40] sm:$0xff] %v4686_v55  ;;  %v4512_v10 = vadd.f32 %v5250_v38, %v8494_v57  ;;  %v5251_v5 = vadd.f32 %v8850_v44, %v4289_v27  ;;  %v4291_v50 = vpop.f32.mrb[87].mxu1 }
 0x6ce   : > { %4779 = vst [vmem:[%s8872_s17 + $0x28] sm:$0xff] %v4755_v62  ;;  %v4515_v59 = vadd.f32 %v5251_v5, %v8498_v3  ;;  %v4648_v51 = vmax.f32 %v4512_v10, 0.0 }
 0x6d0   : > { %v4649_v13 = vmax.f32 %v4515_v59, 0.0 }
 0x6d1   : > { %v4732_v1 = vld [vmem:[#allocation2 + $0x31] sm:$0xff]  ;;  %v4294_v23 = vpop.f32.mrb[88].mxu1 }
 0x6d2   : > { %v4756_v63 = vmax.f32 %v4684_v7, %v4732_v1  ;;  %v5252_v54 = vadd.f32 %v8850_v44, %v4294_v23  ;;  %v4296_v2 = vpop.f32.mrb[89].mxu1 }
 0x6d3   : > { %v4733_v16 = vld [vmem:[#allocation2 + $0x39] sm:$0xff]  ;;  %v4297_v60 = vpop.f32.mrb[90].mxu1 }
 0x6d4   : > { %4780 = vst [vmem:[%s8872_s17 + $0x30] sm:$0xff] %v4756_v63  ;;  %v4757_v53 = vmax.f32 %v4685_v49, %v4733_v16  ;;  %v4520_v61 = vadd.f32 %v5252_v54, %v8512_v17  ;;  %v5253_v57 = vadd.f32 %v8850_v44, %v4297_v60  ;;  %v4299_v9 = vpop.f32.mrb[91].mxu1 }
 0x6d6   : > { %4781 = vst [vmem:[%s8872_s17 + $0x38] sm:$0xff] %v4757_v53  ;;  %v4523_v20 = vadd.f32 %v5253_v57, %v8516_v42  ;;  %v4650_v42 = vmax.f32 %v4520_v61, 0.0 }
 0x6d8   : > { %v4651_v3 = vmax.f32 %v4523_v20, 0.0 }
 0x6d9   : > { %v4302_v19 = vpop.f32.mrb[92].mxu1 }
 0x6da   : > { %v4687_v47 = vmax.f32 %v4648_v51, %v4651_v3  ;;  %v5254_v21 = vadd.f32 %v8850_v44, %v4302_v19  ;;  %v4304_v29 = vpop.f32.mrb[93].mxu1 }
 0x6db   : > { %v4305_v25 = vpop.f32.mrb[94].mxu1 }
 0x6dc   : > { %4711 = vst [vmem:[#allocation2 + $0x48] sm:$0xff] %v4687_v47  ;;  %v4528_v46 = vadd.f32 %v5254_v21, %v8510_v15  ;;  %v5255_v43 = vadd.f32 %v8850_v44, %v4305_v25  ;;  %v4307_v17 = vpop.f32.mrb[95].mxu1 }
 0x6de   : > { %v4652_v31 = vmax.f32 %v4528_v46, 0.0  ;;  %v4531_v33 = vadd.f32 %v5255_v43, %v8514_v18 }
 0x6e0   : > { %v4688_v7 = vmax.f32 %v4649_v13, %v4652_v31  ;;  %v4653_v40 = vmax.f32 %v4531_v33, 0.0 }
 0x6e1   : > { %v4310_v28 = vpop.f32.mrb[96].mxu1 }
 0x6e2   : > { %4712 = vst [vmem:[#allocation2 + $0x50] sm:$0xff] %v4688_v7  ;;  %v4689_v56 = vmax.f32 %v4650_v42, %v4653_v40  ;;  %v5256_v52 = vadd.f32 %v8850_v44, %v4310_v28  ;;  %v4312_v39 = vpop.f32.mrb[97].mxu1 }
 0x6e3   : > { %v4734_v45 = vld [vmem:[#allocation2 + $0x41] sm:$0xff]  ;;  %v4313_v15 = vpop.f32.mrb[98].mxu1 }
 0x6e4   : > { %v4758_v32 = vmax.f32 %v4686_v55, %v4734_v45  ;;  %4713 = vst [vmem:[#allocation2 + $0x58] sm:$0xff] %v4689_v56  ;;  %v4536_v14 = vadd.f32 %v5256_v52, %v8528_v22  ;;  %v5257_v30 = vadd.f32 %v8850_v44, %v4313_v15  ;;  %v4315_v18 = vpop.f32.mrb[99].mxu1 }
 0x6e6   : > { %4782 = vst [vmem:[%s8872_s17 + $0x40] sm:$0xff] %v4758_v32  ;;  %v4539_v6 = vadd.f32 %v5257_v30, %v8532_v34  ;;  %v4654_v50 = vmax.f32 %v4536_v14, 0.0 }
 0x6e8   : > { %v4655_v60 = vmax.f32 %v4539_v6, 0.0 }
 0x6e9   : > { %v4735_v49 = vld [vmem:[#allocation2 + $0x49] sm:$0xff]  ;;  %v4318_v0 = vpop.f32.mrb[100].mxu1 }
 0x6ea   : > { %v4759_v11 = vmax.f32 %v4687_v47, %v4735_v49  ;;  %v5258_v38 = vadd.f32 %v8850_v44, %v4318_v0  ;;  %v4320_v26 = vpop.f32.mrb[101].mxu1 }
 0x6eb   : > { %v4736_v35 = vld [vmem:[#allocation2 + $0x51] sm:$0xff]  ;;  %v4321_v27 = vpop.f32.mrb[102].mxu1 }
 0x6ec   : > { %4783 = vst [vmem:[%s8872_s17 + $0x48] sm:$0xff] %v4759_v11  ;;  %v4760_v55 = vmax.f32 %v4688_v7, %v4736_v35  ;;  %v4544_v62 = vadd.f32 %v5258_v38, %v8526_v48  ;;  %v5259_v22 = vadd.f32 %v8850_v44, %v4321_v27  ;;  %v4323_v10 = vpop.f32.mrb[103].mxu1  ;;  %v9681_v11 = vld [vmem:[#allocation78_spill] sm:$0xff] }
 0x6ee   : > { %4784 = vst [vmem:[%s8872_s17 + $0x50] sm:$0xff] %v4760_v55  ;;  %v4547_v5 = vadd.f32 %v5259_v22, %v8530_v24  ;;  %v4656_v24 = vmax.f32 %v4544_v62, 0.0 }
 0x6f0   : > { %v4657_v34 = vmax.f32 %v4547_v5, 0.0 }
 0x6f1   : > { %v4326_v59 = vpop.f32.mrb[104].mxu1 }
 0x6f2   : > { %v4690_v1 = vmax.f32 %v4654_v50, %v4657_v34  ;;  %v5260_v23 = vadd.f32 %v8850_v44, %v4326_v59  ;;  %v4328_v63 = vpop.f32.mrb[105].mxu1  ;;  %v9682_v50 = vld [vmem:[#allocation35_spill] sm:$0xff] }
 0x6f3   : > { %v4329_v54 = vpop.f32.mrb[106].mxu1 }
 0x6f4   : > { %4714 = vst [vmem:[#allocation2 + $0x60] sm:$0xff] %v4690_v1  ;;  %v4552_v2 = vadd.f32 %v5260_v23, %v8544_v12  ;;  %v5261_v16 = vadd.f32 %v8850_v44, %v4329_v54  ;;  %v4331_v48 = vpop.f32.mrb[107].mxu1  ;;  %v9683_v23 = vld [vmem:[#allocation81_spill] sm:$0xff] }
 0x6f6   : > { %v4658_v53 = vmax.f32 %v4552_v2, 0.0  ;;  %v4555_v61 = vadd.f32 %v5261_v16, %v8548_v37 }
 0x6f8   : > { %v4691_v57 = vmax.f32 %v4655_v60, %v4658_v53  ;;  %v4659_v9 = vmax.f32 %v4555_v61, 0.0 }
 0x6f9   : > { %v4334_v20 = vpop.f32.mrb[108].mxu1 }
 0x6fa   : > { %4715 = vst [vmem:[#allocation2 + $0x68] sm:$0xff] %v4691_v57  ;;  %v4692_v51 = vmax.f32 %v4656_v24, %v4659_v9  ;;  %v5262_v3 = vadd.f32 %v8850_v44, %v4334_v20  ;;  %v4336_v19 = vpop.f32.mrb[109].mxu1 }
 0x6fb   : > { %v4737_v47 = vld [vmem:[#allocation2 + $0x59] sm:$0xff]  ;;  %v4337_v12 = vpop.f32.mrb[110].mxu1 }
 0x6fc   : > { %v4761_v21 = vmax.f32 %v4689_v56, %v4737_v47  ;;  %4716 = vst [vmem:[#allocation2 + $0x70] sm:$0xff] %v4692_v51  ;;  %v4560_v29 = vadd.f32 %v5262_v3, %v8542_v41  ;;  %v5263_v25 = vadd.f32 %v8850_v44, %v4337_v12  ;;  %v4339_v37 = vpop.f32.mrb[111].mxu1  ;;  %v9685_v3 = vld [vmem:[#allocation82_spill] sm:$0xff] }
 0x6fe   : > { %4785 = vst [vmem:[%s8872_s17 + $0x58] sm:$0xff] %v4761_v21  ;;  %v4563_v46 = vadd.f32 %v5263_v25, %v8546_v36  ;;  %v4660_v39 = vmax.f32 %v4560_v29, 0.0 }
 0x700   : > { %v4661_v49 = vmax.f32 %v4563_v46, 0.0 }
 0x701   : > { %v4738_v43 = vld [vmem:[#allocation2 + $0x61] sm:$0xff]  ;;  %v4342_v17 = vpop.f32.mrb[112].mxu1 }
 0x702   : > { %v4762_v13 = vmax.f32 %v4690_v1, %v4738_v43  ;;  %v5264_v31 = vadd.f32 %v8850_v44, %v4342_v17  ;;  %v4344_v33 = vpop.f32.mrb[113].mxu1 }
 0x703   : > { %v4739_v42 = vld [vmem:[#allocation2 + $0x69] sm:$0xff]  ;;  %v4345_v7 = vpop.f32.mrb[114].mxu1 }
 0x704   : > { %4786 = vst [vmem:[%s8872_s17 + $0x60] sm:$0xff] %v4762_v13  ;;  %v4763_v40 = vmax.f32 %v4691_v57, %v4739_v42  ;;  %v4568_v28 = vadd.f32 %v5264_v31, %v8562_v4  ;;  %v5265_v41 = vadd.f32 %v8850_v44, %v4345_v7  ;;  %v4347_v56 = vpop.f32.mrb[115].mxu1  ;;  %v9684_v57 = vld [vmem:[#allocation77_spill] sm:$0xff] }
 0x706   : > { %4787 = vst [vmem:[%s8872_s17 + $0x68] sm:$0xff] %v4763_v40  ;;  %v4571_v52 = vadd.f32 %v5265_v41, %v8570_v58  ;;  %v4662_v58 = vmax.f32 %v4568_v28, 0.0 }
 0x708   : > { %v4663_v36 = vmax.f32 %v4571_v52, 0.0 }
 0x709   : > { %v4350_v45 = vpop.f32.mrb[116].mxu1 }
 0x70a   : > { %v4693_v15 = vmax.f32 %v4660_v39, %v4663_v36  ;;  %v5266_v32 = vadd.f32 %v8850_v44, %v4350_v45  ;;  %v4352_v14 = vpop.f32.mrb[117].mxu1 }
 0x70b   : > { %v4353_v30 = vpop.f32.mrb[118].mxu1 }
 0x70c   : > { %4717 = vst [vmem:[#allocation2 + $0x78] sm:$0xff] %v4693_v15  ;;  %v4576_v18 = vadd.f32 %v5266_v32, %v8560_v8  ;;  %v5267_v6 = vadd.f32 %v8850_v44, %v4353_v30  ;;  %v4355_v4 = vpop.f32.mrb[119].mxu1 }
 0x70e   : > { %v4664_v0 = vmax.f32 %v4576_v18, 0.0  ;;  %v4579_v38 = vadd.f32 %v5267_v6, %v9681_v11 }
 0x710   : > { %v4694_v26 = vmax.f32 %v4661_v49, %v4664_v0  ;;  %v4665_v35 = vmax.f32 %v4579_v38, 0.0 }
 0x711   : > { %v4358_v27 = vpop.f32.mrb[120].mxu1 }
 0x712   : > { %4718 = vst [vmem:[#allocation2 + $0x80] sm:$0xff] %v4694_v26  ;;  %v4695_v55 = vmax.f32 %v4662_v58, %v4665_v35  ;;  %v5268_v62 = vadd.f32 %v8850_v44, %v4358_v27  ;;  %v4360_v22 = vpop.f32.mrb[121].mxu1 }
 0x713   : > { %v4740_v10 = vld [vmem:[#allocation2 + $0x71] sm:$0xff]  ;;  %v4361_v8 = vpop.f32.mrb[122].mxu1 }
 0x714   : > { %v4764_v5 = vmax.f32 %v4692_v51, %v4740_v10  ;;  %4719 = vst [vmem:[#allocation2 + $0x88] sm:$0xff] %v4695_v55  ;;  %v4584_v34 = vadd.f32 %v5268_v62, %v9682_v50  ;;  %v5269_v59 = vadd.f32 %v8850_v44, %v4361_v8  ;;  %v4363_v1 = vpop.f32.mrb[123].mxu1 }
 0x716   : > { %4788 = vst [vmem:[%s8872_s17 + $0x70] sm:$0xff] %v4764_v5  ;;  %v4587_v63 = vadd.f32 %v5269_v59, %v9683_v23  ;;  %v4666_v47 = vmax.f32 %v4584_v34, 0.0 }
 0x718   : > { %v4667_v38 = vmax.f32 %v4587_v63, 0.0 }
 0x719   : > { %v4741_v54 = vld [vmem:[#allocation2 + $0x79] sm:$0xff]  ;;  %v4366_v2 = vpop.f32.mrb[124].mxu1 }
 0x71a   : > { %v4765_v16 = vmax.f32 %v4693_v15, %v4741_v54  ;;  %v5270_v48 = vadd.f32 %v8850_v44, %v4366_v2  ;;  %v4368_v60 = vpop.f32.mrb[125].mxu1 }
 0x71b   : > { %v4742_v53 = vld [vmem:[#allocation2 + $0x81] sm:$0xff]  ;;  %v4369_v61 = vpop.f32.mrb[126].mxu1 }
 0x71c   : > { %4789 = vst [vmem:[%s8872_s17 + $0x78] sm:$0xff] %v4765_v16  ;;  %v4766_v24 = vmax.f32 %v4694_v26, %v4742_v53  ;;  %v4592_v9 = vadd.f32 %v5270_v48, %v9684_v57  ;;  %v5271_v20 = vadd.f32 %v8850_v44, %v4369_v61  ;;  %v4371_v51 = vpop.f32.mrb[127].mxu1 }
 0x71e   : > { %4790 = vst [vmem:[%s8872_s17 + $0x80] sm:$0xff] %v4766_v24  ;;  %v4595_v19 = vadd.f32 %v5271_v20, %v9685_v3  ;;  %v4668_v35 = vmax.f32 %v4592_v9, 0.0 }
 0x720   : > { %v4669_v12 = vmax.f32 %v4595_v19, 0.0 }
 0x721   : > { %v4374_v21 = vpop.f32.mrb[128].mxu1 }
 0x722   : > { %v8955_v29 = vmax.f32 %v4666_v47, %v4669_v12  ;;  %v4376_v25 = vpop.f32.mrb[129].mxu1  ;;  %v5272_v15 = vadd.f32 %v8850_v44, %v4374_v21 }
 0x723   : > { %v4377_v37 = vpop.f32.mrb[130].mxu1 }
 0x724   : > { %4720 = vst [vmem:[#allocation2 + $0x90] sm:$0xff] %v8955_v29  ;;  %v4379_v46 = vpop.f32.mrb[131].mxu1  ;;  %v5273_v6 = vadd.f32 %v8850_v44, %v4377_v37 }
 0x729   : > { %v4382_v43 = vpop.f32.mrb[132].mxu1 }
 0x72a   : > { %v4384_v17 = vpop.f32.mrb[133].mxu1  ;;  %v5274_v45 = vadd.f32 %v8850_v44, %v4382_v43 }
 0x72b   : > { %v4743_v13 = vld [vmem:[#allocation2 + $0x89] sm:$0xff]  ;;  %v4385_v31 = vpop.f32.mrb[134].mxu1 }
 0x72c   : > { %v4767_v33 = vmax.f32 %v4695_v55, %v4743_v13  ;;  %v4387_v42 = vpop.f32.mrb[135].mxu1  ;;  %v5275_v14 = vadd.f32 %v8850_v44, %v4385_v31 }
 0x72e   : > { %4791 = vst [vmem:[%s8872_s17 + $0x88] sm:$0xff] %v4767_v33 }
 0x731   : > { %v4390_v7 = vpop.f32.mrb[136].mxu1 }
 0x732   : > { %v4392_v40 = vpop.f32.mrb[137].mxu1  ;;  %v5276_v22 = vadd.f32 %v8850_v44, %v4390_v7 }
 0x733   : > { %v4393_v28 = vpop.f32.mrb[138].mxu1 }
 0x734   : > { %v4395_v41 = vpop.f32.mrb[139].mxu1  ;;  %v5277_v59 = vadd.f32 %v8850_v44, %v4393_v28 }
 0x739   : > { %v4398_v56 = vpop.f32.mrb[140].mxu1 }
 0x73a   : > { %v4400_v52 = vpop.f32.mrb[141].mxu1  ;;  %v5278_v62 = vadd.f32 %v8850_v44, %v4398_v56 }
 0x73b   : > { %v4401_v39 = vpop.f32.mrb[142].mxu1 }
 0x73c   : > { %v4403_v36 = vpop.f32.mrb[143].mxu1  ;;  %v5279_v5 = vadd.f32 %v8850_v44, %v4401_v39 }
 0x741   : > { %v5194_v32 = vpop.f32.mrb[144].mxu1 }
 0x742   : > { %v4608_v30 = vadd.f32 %v5274_v45, %v5194_v32  ;;  %v4599_v18 = vpop.f32.mrb[145].mxu1 }
 0x743   : > { %v4600_v4 = vadd.f32 %v5272_v15, %v4599_v18  ;;  %v5195_v49 = vpop.f32.mrb[146].mxu1 }
 0x744   : > { %v4611_v0 = vadd.f32 %v5275_v14, %v5195_v49  ;;  %v4602_v11 = vpop.f32.mrb[147].mxu1  ;;  %v4672_v24 = vmax.f32 %v4608_v30, 0.0 }
 0x745   : > { %v4670_v58 = vmax.f32 %v4600_v4, 0.0  ;;  %v4603_v26 = vadd.f32 %v5273_v6, %v4602_v11 }
 0x746   : > { %v4673_v63 = vmax.f32 %v4611_v0, 0.0 }
 0x747   : > { %v4697_v27 = vmax.f32 %v4667_v38, %v4670_v58  ;;  %v4671_v55 = vmax.f32 %v4603_v26, 0.0 }
 0x749   : > { %4721 = vst [vmem:[#allocation2 + $0x98] sm:$0xff] %v4697_v27  ;;  %v4698_v10 = vmax.f32 %v4668_v35, %v4671_v55  ;;  %v5198_v8 = vpop.f32.mrb[148].mxu1 }
 0x74a   : > { %v4624_v50 = vadd.f32 %v5278_v62, %v5198_v8  ;;  %v4615_v34 = vpop.f32.mrb[149].mxu1 }
 0x74b   : > { %4722 = vst [vmem:[#allocation2 + $0xa0] sm:$0xff] %v4698_v10  ;;  %v4616_v1 = vadd.f32 %v5276_v22, %v4615_v34  ;;  %v5199_v23 = vpop.f32.mrb[150].mxu1 }
 0x74c   : > { %v4676_v54 = vmax.f32 %v4624_v50, 0.0  ;;  %v4627_v2 = vadd.f32 %v5279_v5, %v5199_v23  ;;  %v4618_v16 = vpop.f32.mrb[151].mxu1 }
 0x74d   : > { %v4674_v48 = vmax.f32 %v4616_v1, 0.0  ;;  %v4619_v60 = vadd.f32 %v5277_v59, %v4618_v16 }
 0x74e   : > { %v4700_v53 = vmax.f32 %v4673_v63, %v4676_v54  ;;  %v4677_v61 = vmax.f32 %v4627_v2, 0.0 }
 0x74f   : > { %v4675_v57 = vmax.f32 %v4619_v60, 0.0 }
 0x750   : > { %v4744_v9 = vld [vmem:[#allocation2 + $0x91] sm:$0xff]  ;;  %4724 = vst [vmem:[#allocation2 + $0xb0] sm:$0xff] %v4700_v53  ;;  %v4701_v20 = vmax.f32 %v4674_v48, %v4677_v61 }
 0x751   : > { %v4768_v44 = vmax.f32 %v8955_v29, %v4744_v9  ;;  %v4699_v51 = vmax.f32 %v4672_v24, %v4675_v57 }
 0x752   : > { %v4745_v3 = vld [vmem:[#allocation2 + $0x99] sm:$0xff]  ;;  %4725 = vst [vmem:[#allocation2 + $0xb8] sm:$0xff] %v4701_v20 }
 0x753   : > { %4792 = vst [vmem:[%s8872_s17 + $0x90] sm:$0xff] %v4768_v44  ;;  %v4769_v19 = vmax.f32 %v4697_v27, %v4745_v3  ;;  %4723 = vst [vmem:[#allocation2 + $0xa8] sm:$0xff] %v4699_v51 }
 0x755   : > { %4793 = vst [vmem:[%s8872_s17 + $0x98] sm:$0xff] %v4769_v19 }
 0x759   : > { %v4748_v47 = vld [vmem:[#allocation2 + $0xb1] sm:$0xff]  ;;  %v4749_v12 = vld [vmem:[#allocation2 + $0xb9] sm:$0xff] }
 0x75a   : > { %v4772_v21 = vmax.f32 %v4700_v53, %v4748_v47  ;;  %v4773_v25 = vmax.f32 %v4701_v20, %v4749_v12  ;;  %v4746_v37 = vld [vmem:[#allocation2 + $0xa1] sm:$0xff]  ;;  %v4747_v46 = vld [vmem:[#allocation2 + $0xa9] sm:$0xff] }
 0x75b   : > { %v4770_v43 = vmax.f32 %v4698_v10, %v4746_v37  ;;  %v4771_v17 = vmax.f32 %v4699_v51, %v4747_v46 }
 0x75c   : > { %4796 = vst [vmem:[%s8872_s17 + $0xb0] sm:$0xff] %v4772_v21  ;;  %4797 = vst [vmem:[%s8872_s17 + $0xb8] sm:$0xff] %v4773_v25 }
 0x75d   : > { %4794 = vst [vmem:[%s8872_s17 + $0xa0] sm:$0xff] %v4770_v43  ;;  %4795 = vst [vmem:[%s8872_s17 + $0xa8] sm:$0xff] %v4771_v17 }
 0x75e PF: > { %s15_s18 = sadd.s32 1, %s5919_s18  }
 0x75f   : > { %p12_p4 = scmp.ge.s32.totalorder %s15_s18, 4  }
 0x761   :  { %14 = sbr.rel (!%p12_p4) target bundleno = 1 (0x1), region = 70 }

</bundles_post_ra>
